<compile_context>
chip_gen: v5e
topology: v5e:2x2
jax: 0.10.0
libtpu: 0.0.40
codegen_flags: <defaults>
</compile_context>

<pallas_src>
import functools
import math

import jax
import jax.numpy as jnp
from jax.experimental import pallas as pl
from jax.experimental.pallas import tpu as pltpu

_MXU_DTYPE = jnp.bfloat16  # matmul input dtype; accumulation stays f32
_VMEM_LIMIT = 32 * 1024 * 1024


# --------------------------- in-kernel helpers ------------------------------

def _mxu_dot(a, b):
    """MXU matmul: bf16 inputs, f32 accumulation."""
    return jnp.dot(a.astype(_MXU_DTYPE), b.astype(_MXU_DTYPE),
                   preferred_element_type=jnp.float32)


def _ln(x, g, b, eps):
    mu = jnp.mean(x, axis=-1, keepdims=True)
    var = jnp.mean(jnp.square(x - mu), axis=-1, keepdims=True)
    return (x - mu) * jax.lax.rsqrt(var + eps) * g + b


def _gelu(y):
    # TODO(synk): HF BERT/ViT use exact erf-GELU; tanh approximation (~1e-3)
    # is used because erf has no guaranteed Mosaic lowering.
    return 0.5 * y * (1.0 + jnp.tanh(0.7978845608028654 * (y + 0.044715 * y * y * y)))


def _mha_proj(q, k, v, o_w, nh, dh, scale, bias=None):
    """Multi-head attention with the head-merge folded into the output proj.

    q: [Tq, nh*dh], k/v: [Tk, nh*dh], o_w: [nh*dh, Dout], bias: [1, Tk] or None.
    Returns sum_h softmax(q_h k_h^T * scale + bias) v_h @ o_w[h*dh:(h+1)*dh].
    """
    acc = None
    for h in range(nh):                       # nh is small; unrolled at trace time
        sl = slice(h * dh, (h + 1) * dh)
        qh, kh, vh = q[:, sl], k[:, sl], v[:, sl]
        s = jax.lax.dot_general(
            qh.astype(_MXU_DTYPE), kh.astype(_MXU_DTYPE),
            dimension_numbers=(((1,), (1,)), ((), ())),
            preferred_element_type=jnp.float32) * scale
        if bias is not None:
            s = s + bias
        s = s - jnp.max(s, axis=-1, keepdims=True)
        p = jnp.exp(s)
        p = p * pl.reciprocal(jnp.sum(p, axis=-1, keepdims=True), approx=True)
        oh = _mxu_dot(p, vh)                  # [Tq, dh]
        contrib = _mxu_dot(oh, o_w[sl, :])    # [Tq, Dout]
        acc = contrib if acc is None else acc + contrib
    return acc


# --------------------------- small standalone kernels -----------------------

def _linear_kernel(x_ref, w_ref, b_ref, o_ref):
    o_ref[...] = (_mxu_dot(x_ref[...], w_ref[...]) + b_ref[...]).astype(o_ref.dtype)


def linear(x, w, b):
    """x: [M, K], w: [K, N], b: [N] -> [M, N] (whole-array VMEM blocks)."""
    M, _ = x.shape
    N = w.shape[1]
    return pl.pallas_call(
        _linear_kernel,
        out_shape=jax.ShapeDtypeStruct((M, N), jnp.float32),
    )(x, w, b.reshape(1, N))


def _layernorm_kernel(x_ref, g_ref, b_ref, o_ref, *, eps):
    o_ref[...] = _ln(x_ref[...], g_ref[...], b_ref[...], eps).astype(o_ref.dtype)


def layernorm(x, g, b, eps):
    M, D = x.shape
    return pl.pallas_call(
        functools.partial(_layernorm_kernel, eps=eps),
        out_shape=jax.ShapeDtypeStruct((M, D), jnp.float32),
    )(x, g.reshape(1, D), b.reshape(1, D))


# --------------------------- fused ViT block kernel --------------------------

def _vit_block_kernel(*refs, nh, dh, scale, final_ln):
    (x_ref, ln1_g, ln1_b, qkv_w, qkv_b, proj_w, proj_b,
     ln2_g, ln2_b, fc1_w, fc1_b, fc2_w, fc2_b) = refs[:13]
    if final_ln:
        fln_g, fln_b = refs[13:15]
    o_ref = refs[-1]

    D = nh * dh
    x = x_ref[0]                                             # [T, D] f32
    h = _ln(x, ln1_g[...], ln1_b[...], 1e-6)
    qkv = _mxu_dot(h, qkv_w[...]) + qkv_b[...]               # [T, 3D]
    q, k, v = qkv[:, 0:D], qkv[:, D:2 * D], qkv[:, 2 * D:3 * D]
    attn = _mha_proj(q, k, v, proj_w[...], nh, dh, scale) + proj_b[...]
    x = x + attn
    h2 = _ln(x, ln2_g[...], ln2_b[...], 1e-6)
    h2 = _gelu(_mxu_dot(h2, fc1_w[...]) + fc1_b[...])
    h2 = _mxu_dot(h2, fc2_w[...]) + fc2_b[...]
    x = x + h2
    if final_ln:                                             # fused final ViT LN
        x = _ln(x, fln_g[...], fln_b[...], 1e-6)
    o_ref[0] = x.astype(o_ref.dtype)


def _rep_spec(a):
    nd = a.ndim
    return pl.BlockSpec(a.shape, lambda b, _n=nd: (0,) * _n)


def vit_block(x, blk, cfg, final_ln=None):
    B, T, D = x.shape
    nh = cfg["vheads"]
    dh = D // nh
    I = blk["fc1_w"].shape[1]
    weights = [
        blk["ln1_g"].reshape(1, D), blk["ln1_b"].reshape(1, D),
        blk["qkv_w"], blk["qkv_b"].reshape(1, 3 * D),
        blk["proj_w"], blk["proj_b"].reshape(1, D),
        blk["ln2_g"].reshape(1, D), blk["ln2_b"].reshape(1, D),
        blk["fc1_w"], blk["fc1_b"].reshape(1, I),
        blk["fc2_w"], blk["fc2_b"].reshape(1, D),
    ]
    if final_ln is not None:
        weights += [final_ln[0].reshape(1, D), final_ln[1].reshape(1, D)]
    return pl.pallas_call(
        functools.partial(_vit_block_kernel, nh=nh, dh=dh,
                          scale=1.0 / math.sqrt(dh),
                          final_ln=final_ln is not None),
        out_shape=jax.ShapeDtypeStruct((B, T, D), jnp.float32),
        grid=(B,),
        in_specs=[pl.BlockSpec((1, T, D), lambda b: (b, 0, 0))]
                 + [_rep_spec(w) for w in weights],
        out_specs=pl.BlockSpec((1, T, D), lambda b: (b, 0, 0)),
        compiler_params=pltpu.CompilerParams(
            dimension_semantics=("parallel",),
            vmem_limit_bytes=_VMEM_LIMIT),
    )(x, *weights)


# --------------------------- fused BERT layer kernel -------------------------

def _bert_layer_kernel(*refs, nh, dh, scale, cross, pre_ln):
    o_ref = refs[-1]
    it = iter(refs[:-1])
    x_ref = next(it)
    smask_ref = next(it)
    if cross:
        enc_ref = next(it)
        cmask_ref = next(it)
    if pre_ln:
        eln_g = next(it)
        eln_b = next(it)
    (sq_w, sq_b, sk_w, sk_b, sv_w, sv_b,
     so_w, so_b, sln_g, sln_b) = [next(it) for _ in range(10)]
    if cross:
        (cq_w, cq_b, ck_w, ck_b, cv_w, cv_b,
         co_w, co_b, cln_g, cln_b) = [next(it) for _ in range(10)]
    fi_w, fi_b, fo_w, fo_b, fln_g, fln_b = [next(it) for _ in range(6)]

    x = x_ref[0]                                             # [T, D] f32
    if pre_ln:                                               # fused embedding LN
        x = _ln(x, eln_g[...], eln_b[...], 1e-12)

    # additive mask built in-kernel from the raw 0/1 row (HF convention)
    sbias = (1.0 - smask_ref[0]) * -10000.0                  # [1, T]

    # --- self-attention (post-LN, BERT style) ---
    q = _mxu_dot(x, sq_w[...]) + sq_b[...]
    k = _mxu_dot(x, sk_w[...]) + sk_b[...]
    v = _mxu_dot(x, sv_w[...]) + sv_b[...]
    a = _mha_proj(q, k, v, so_w[...], nh, dh, scale, bias=sbias) + so_b[...]
    x = _ln(a + x, sln_g[...], sln_b[...], 1e-12)

    # --- cross-attention over image embeds (multimodal mode only) ---
    if cross:
        enc = enc_ref[0]                                     # [Tk, EW]
        cbias = (1.0 - cmask_ref[0]) * -10000.0              # [1, Tk]
        q = _mxu_dot(x, cq_w[...]) + cq_b[...]
        k = _mxu_dot(enc, ck_w[...]) + ck_b[...]
        v = _mxu_dot(enc, cv_w[...]) + cv_b[...]
        a = _mha_proj(q, k, v, co_w[...], nh, dh, scale, bias=cbias) + co_b[...]
        x = _ln(a + x, cln_g[...], cln_b[...], 1e-12)

    # --- feed-forward ---
    h = _gelu(_mxu_dot(x, fi_w[...]) + fi_b[...])
    h = _mxu_dot(h, fo_w[...]) + fo_b[...]
    x = _ln(h + x, fln_g[...], fln_b[...], 1e-12)
    o_ref[0] = x.astype(o_ref.dtype)


def bert_layer(x, mask3, lyr, cfg, enc=None, enc_mask3=None, pre_ln=None):
    B, T, D = x.shape
    nh = cfg["theads"]
    dh = D // nh
    cross = enc is not None
    TI = lyr["fi_w"].shape[1]

    w_pre = ([pre_ln[0].reshape(1, D), pre_ln[1].reshape(1, D)]
             if pre_ln is not None else [])
    w_self = [lyr["sq_w"], lyr["sq_b"].reshape(1, D),
              lyr["sk_w"], lyr["sk_b"].reshape(1, D),
              lyr["sv_w"], lyr["sv_b"].reshape(1, D),
              lyr["so_w"], lyr["so_b"].reshape(1, D),
              lyr["sln_g"].reshape(1, D), lyr["sln_b"].reshape(1, D)]
    w_cross = ([lyr["cq_w"], lyr["cq_b"].reshape(1, D),
                lyr["ck_w"], lyr["ck_b"].reshape(1, D),
                lyr["cv_w"], lyr["cv_b"].reshape(1, D),
                lyr["co_w"], lyr["co_b"].reshape(1, D),
                lyr["cln_g"].reshape(1, D), lyr["cln_b"].reshape(1, D)]
               if cross else [])
    w_ffn = [lyr["fi_w"], lyr["fi_b"].reshape(1, TI),
             lyr["fo_w"], lyr["fo_b"].reshape(1, D),
             lyr["fln_g"].reshape(1, D), lyr["fln_b"].reshape(1, D)]
    weights = w_pre + w_self + w_cross + w_ffn

    inputs = [x, mask3]
    in_specs = [pl.BlockSpec((1, T, D), lambda b: (b, 0, 0)),
                pl.BlockSpec((1, 1, T), lambda b: (b, 0, 0))]
    if cross:
        Tk, EW = enc.shape[1], enc.shape[2]
        inputs += [enc, enc_mask3]
        in_specs += [pl.BlockSpec((1, Tk, EW), lambda b: (b, 0, 0)),
                     pl.BlockSpec((1, 1, Tk), lambda b: (b, 0, 0))]
    inputs += weights
    in_specs += [_rep_spec(w) for w in weights]

    return pl.pallas_call(
        functools.partial(_bert_layer_kernel, nh=nh, dh=dh,
                          scale=1.0 / math.sqrt(dh), cross=cross,
                          pre_ln=pre_ln is not None),
        out_shape=jax.ShapeDtypeStruct((B, T, D), jnp.float32),
        grid=(B,),
        in_specs=in_specs,
        out_specs=pl.BlockSpec((1, T, D), lambda b: (b, 0, 0)),
        compiler_params=pltpu.CompilerParams(
            dimension_semantics=("parallel",),
            vmem_limit_bytes=_VMEM_LIMIT),
    )(*inputs)


# ----------------------------- model config ---------------------------------

CFG = dict(
    channels=3, img=16, patch=4,          # image: [2, 3, 16, 16], 4x4 patches
    vdim=32, vheads=4, vdepth=2,          # small "ViT-base" stand-in
    tdim=32, theads=4, tdepth=2,          # small "BERT" stand-in
    tvocab=64, tmaxpos=16, tinter=128,
    enc_token_id=63,                      # synthetic tokenizer.enc_token_id
)
CFG["n_patches"] = (CFG["img"] // CFG["patch"]) ** 2


# --------------------------- parameter init ---------------------------------

def init_params(key, cfg):
    keys = iter(jax.random.split(key, 256))

    def nrm(shape):
        return jax.random.normal(next(keys), shape, jnp.float32) * 0.02

    C, P, D, I = cfg["channels"], cfg["patch"], cfg["vdim"], 4 * cfg["vdim"]
    p = {
        "patch_w": nrm((C * P * P, D)), "patch_b": jnp.zeros((D,), jnp.float32),
        "cls_token": nrm((1, 1, D)),
        "pos_embed": nrm((1, cfg["n_patches"] + 1, D)),
        "vit_ln_g": jnp.ones((D,), jnp.float32),
        "vit_ln_b": jnp.zeros((D,), jnp.float32),
        "vit_blocks": [],
    }
    for _ in range(cfg["vdepth"]):
        p["vit_blocks"].append({
            "ln1_g": jnp.ones((D,), jnp.float32), "ln1_b": jnp.zeros((D,), jnp.float32),
            "qkv_w": nrm((D, 3 * D)), "qkv_b": jnp.zeros((3 * D,), jnp.float32),
            "proj_w": nrm((D, D)), "proj_b": jnp.zeros((D,), jnp.float32),
            "ln2_g": jnp.ones((D,), jnp.float32), "ln2_b": jnp.zeros((D,), jnp.float32),
            "fc1_w": nrm((D, I)), "fc1_b": jnp.zeros((I,), jnp.float32),
            "fc2_w": nrm((I, D)), "fc2_b": jnp.zeros((D,), jnp.float32),
        })

    TD, TI, EW = cfg["tdim"], cfg["tinter"], cfg["vdim"]  # encoder_width = vision_width
    p.update({
        "word_emb": nrm((cfg["tvocab"], TD)),
        "pos_emb": nrm((cfg["tmaxpos"], TD)),
        "emb_ln_g": jnp.ones((TD,), jnp.float32),
        "emb_ln_b": jnp.zeros((TD,), jnp.float32),
        "bert_layers": [],
    })
    for _ in range(cfg["tdepth"]):
        p["bert_layers"].append({
            "sq_w": nrm((TD, TD)), "sq_b": jnp.zeros((TD,), jnp.float32),
            "sk_w": nrm((TD, TD)), "sk_b": jnp.zeros((TD,), jnp.float32),
            "sv_w": nrm((TD, TD)), "sv_b": jnp.zeros((TD,), jnp.float32),
            "so_w": nrm((TD, TD)), "so_b": jnp.zeros((TD,), jnp.float32),
            "sln_g": jnp.ones((TD,), jnp.float32), "sln_b": jnp.zeros((TD,), jnp.float32),
            "cq_w": nrm((TD, TD)), "cq_b": jnp.zeros((TD,), jnp.float32),
            "ck_w": nrm((EW, TD)), "ck_b": jnp.zeros((TD,), jnp.float32),
            "cv_w": nrm((EW, TD)), "cv_b": jnp.zeros((TD,), jnp.float32),
            "co_w": nrm((TD, TD)), "co_b": jnp.zeros((TD,), jnp.float32),
            "cln_g": jnp.ones((TD,), jnp.float32), "cln_b": jnp.zeros((TD,), jnp.float32),
            "fi_w": nrm((TD, TI)), "fi_b": jnp.zeros((TI,), jnp.float32),
            "fo_w": nrm((TI, TD)), "fo_b": jnp.zeros((TD,), jnp.float32),
            "fln_g": jnp.ones((TD,), jnp.float32), "fln_b": jnp.zeros((TD,), jnp.float32),
        })
    return p


# ------------------------------ ViT forward ----------------------------------

def vit_forward(p, image, cfg):
    B, C, H, W = image.shape
    P, D = cfg["patch"], cfg["vdim"]
    gH, gW = H // P, W // P
    # Conv2d(kernel=stride=P) == patch extraction + matmul (channel-major flatten).
    patches = image.reshape(B, C, gH, P, gW, P)
    patches = patches.transpose(0, 2, 4, 1, 3, 5).reshape(B, gH * gW, C * P * P)
    x = linear(patches.reshape(B * gH * gW, C * P * P), p["patch_w"], p["patch_b"])
    x = x.reshape(B, gH * gW, D)
    cls = jnp.broadcast_to(p["cls_token"], (B, 1, D))
    x = jnp.concatenate([cls, x], axis=1)
    T = x.shape[1]
    x = x + p["pos_embed"][:, :T, :]

    n_blocks = len(p["vit_blocks"])
    for i, blk in enumerate(p["vit_blocks"]):
        # final ViT LayerNorm fused into the last block
        fln = (p["vit_ln_g"], p["vit_ln_b"]) if i == n_blocks - 1 else None
        x = vit_block(x, blk, cfg, final_ln=fln)     # one fused pallas_call / block

    if n_blocks == 0:   # fallback: apply the final LN standalone
        x = layernorm(x.reshape(B * T, D), p["vit_ln_g"], p["vit_ln_b"], 1e-6)
        x = x.reshape(B, T, D)
    return x


# ------------------------------ BERT forward ---------------------------------

def bert_forward(p, input_ids, attention_mask, cfg,
                 encoder_hidden_states=None, encoder_attention_mask=None):
    B, T = input_ids.shape
    D = cfg["tdim"]

    # word + position embeddings; the embedding LayerNorm is fused into layer 0
    x = jnp.take(p["word_emb"], input_ids, axis=0) + p["pos_emb"][:T][None, :, :]

    # raw 0/1 mask rows; the -10000 additive bias is built inside the kernel
    mask3 = attention_mask.astype(jnp.float32).reshape(B, 1, T)
    cross = encoder_hidden_states is not None
    enc_mask3 = None
    if cross:
        Tk = encoder_hidden_states.shape[1]
        enc_mask3 = encoder_attention_mask.astype(jnp.float32).reshape(B, 1, Tk)

    n_layers = len(p["bert_layers"])
    for li, lyr in enumerate(p["bert_layers"]):
        pre_ln = (p["emb_ln_g"], p["emb_ln_b"]) if li == 0 else None
        x = bert_layer(x, mask3, lyr, cfg,
                       enc=encoder_hidden_states, enc_mask3=enc_mask3,
                       pre_ln=pre_ln)

    if n_layers == 0:   # fallback: apply embedding LN standalone
        x = layernorm(x.reshape(B * T, D), p["emb_ln_g"], p["emb_ln_b"], 1e-12)
        x = x.reshape(B, T, D)
    return x


# ---------------------------- BLIP_Base forward ------------------------------

def blip_base_forward(params, image, input_ids, attention_mask, mode, cfg):
    assert mode in ("image", "text", "multimodal"), \
        "mode parameter must be image, text, or multimodal"
    # TODO(synk): BertTokenizer (string -> ids) has no Pallas equivalent; the
    # wrapper takes pre-tokenized input_ids / attention_mask instead.
    if mode == "image":
        return vit_forward(params, image, cfg)
    elif mode == "text":
        return bert_forward(params, input_ids, attention_mask, cfg)
    else:  # multimodal
        image_embeds = vit_forward(params, image, cfg)
        image_atts = jnp.ones(image_embeds.shape[:-1], dtype=jnp.int32)
        ids = input_ids.at[:, 0].set(cfg["enc_token_id"])
        return bert_forward(params, ids, attention_mask, cfg,
                            encoder_hidden_states=image_embeds,
                            encoder_attention_mask=image_atts)


# --------------------------------- main --------------------------------------

if __name__ == "__main__":
    key = jax.random.PRNGKey(0)
    kp, ki, kt = jax.random.split(key, 3)

    params = init_params(kp, CFG)
    image = jax.random.normal(ki, (2, CFG["channels"], CFG["img"], CFG["img"]), jnp.float32)
    input_ids = jax.random.randint(kt, (2, 8), 0, CFG["tvocab"] - 2)
    attention_mask = jnp.ones((2, 8), jnp.int32)

    fwd_image = jax.jit(functools.partial(blip_base_forward, mode="image", cfg=CFG))
    fwd_text = jax.jit(functools.partial(blip_base_forward, mode="text", cfg=CFG))
    fwd_mm = jax.jit(functools.partial(blip_base_forward, mode="multimodal", cfg=CFG))

    img_out = fwd_image(params, image, input_ids, attention_mask)
    txt_out = fwd_text(params, image, input_ids, attention_mask)
    mm_out = fwd_mm(params, image, input_ids, attention_mask)
    jax.block_until_ready((img_out, txt_out, mm_out))

    assert img_out.shape == (2, CFG["n_patches"] + 1, CFG["vdim"])
    assert txt_out.shape == (2, 8, CFG["tdim"])
    assert mm_out.shape == (2, 8, CFG["tdim"])
    print("KERNEL_OK")
</pallas_src>

<mosaic_0001>
module attributes {stable_mosaic.version = 11 : i64} {
  func.func @_linear_kernel(%arg0: memref<32x48xf32, #tpu.memory_space<vmem>>, %arg1: memref<48x32xf32, #tpu.memory_space<vmem>>, %arg2: memref<1x32xf32, #tpu.memory_space<vmem>>, %arg3: memref<32x32xf32, #tpu.memory_space<vmem>>) attributes {dimension_semantics = [], scalar_prefetch = 0 : i64, scratch_operands = 0 : i64, tpu.core_type = #tpu.core_type<tc>} {
    %c0 = arith.constant 0 : index
    %c0_0 = arith.constant 0 : index
    %0 = vector.load %arg0[%c0, %c0_0] : memref<32x48xf32, #tpu.memory_space<vmem>>, vector<32x48xf32>
    %c0_1 = arith.constant 0 : index
    %c0_2 = arith.constant 0 : index
    %1 = vector.load %arg1[%c0_1, %c0_2] : memref<48x32xf32, #tpu.memory_space<vmem>>, vector<48x32xf32>
    %2 = arith.truncf %0 : vector<32x48xf32> to vector<32x48xbf16>
    %3 = arith.truncf %1 : vector<48x32xf32> to vector<48x32xbf16>
    %cst = arith.constant dense<0.000000e+00> : vector<32x32xf32>
    %4 = tpu.matmul %2, %3, %cst {dimension_numbers = #tpu.dot_dimension_numbers<[1], [0], [0], [1], [0, 0, 1, 1], [], []>} : vector<32x48xbf16>, vector<48x32xbf16>, vector<32x32xf32> -> vector<32x32xf32>
    %c0_3 = arith.constant 0 : index
    %c0_4 = arith.constant 0 : index
    %5 = vector.load %arg2[%c0_3, %c0_4] : memref<1x32xf32, #tpu.memory_space<vmem>>, vector<1x32xf32>
    %6 = vector.broadcast %5 : vector<1x32xf32> to vector<32x32xf32>
    %7 = arith.addf %4, %6 : vector<32x32xf32>
    %c0_5 = arith.constant 0 : index
    %c0_6 = arith.constant 0 : index
    %8 = vector.load %arg3[%c0_5, %c0_6] : memref<32x32xf32, #tpu.memory_space<vmem>>, vector<32x32xf32>
    tpu.vector_store %arg3[%c0_5, %c0_6], %7 {strides = array<i32>} : memref<32x32xf32, #tpu.memory_space<vmem>>, vector<32x32xf32>,
    return
  }
}

module attributes {stable_mosaic.version = 11 : i64} {
  func.func @_vit_block_kernel(%arg0: i32, %arg1: memref<1x17x32xf32, #tpu.memory_space<vmem>>, %arg2: memref<1x32xf32, #tpu.memory_space<vmem>>, %arg3: memref<1x32xf32, #tpu.memory_space<vmem>>, %arg4: memref<32x96xf32, #tpu.memory_space<vmem>>, %arg5: memref<1x96xf32, #tpu.memory_space<vmem>>, %arg6: memref<32x32xf32, #tpu.memory_space<vmem>>, %arg7: memref<1x32xf32, #tpu.memory_space<vmem>>, %arg8: memref<1x32xf32, #tpu.memory_space<vmem>>, %arg9: memref<1x32xf32, #tpu.memory_space<vmem>>, %arg10: memref<32x128xf32, #tpu.memory_space<vmem>>, %arg11: memref<1x128xf32, #tpu.memory_space<vmem>>, %arg12: memref<128x32xf32, #tpu.memory_space<vmem>>, %arg13: memref<1x32xf32, #tpu.memory_space<vmem>>, %arg14: memref<1x32xf32, #tpu.memory_space<vmem>>, %arg15: memref<1x32xf32, #tpu.memory_space<vmem>>, %arg16: memref<1x17x32xf32, #tpu.memory_space<vmem>>) attributes {dimension_semantics = [#tpu.dimension_semantics<parallel>], iteration_bounds = array<i64: 2>, scalar_prefetch = 0 : i64, scratch_operands = 0 : i64, tpu.core_type = #tpu.core_type<tc>, window_params = [{transform_indices = @transform_0, window_bounds = array<i64: 1, 17, 32>}, {pipeline_mode = #tpu.pipeline_mode<synchronous>, transform_indices = @transform_1, window_bounds = array<i64: 1, 32>}, {pipeline_mode = #tpu.pipeline_mode<synchronous>, transform_indices = @transform_2, window_bounds = array<i64: 1, 32>}, {pipeline_mode = #tpu.pipeline_mode<synchronous>, transform_indices = @transform_3, window_bounds = array<i64: 32, 96>}, {pipeline_mode = #tpu.pipeline_mode<synchronous>, transform_indices = @transform_4, window_bounds = array<i64: 1, 96>}, {pipeline_mode = #tpu.pipeline_mode<synchronous>, transform_indices = @transform_5, window_bounds = array<i64: 32, 32>}, {pipeline_mode = #tpu.pipeline_mode<synchronous>, transform_indices = @transform_6, window_bounds = array<i64: 1, 32>}, {pipeline_mode = #tpu.pipeline_mode<synchronous>, transform_indices = @transform_7, window_bounds = array<i64: 1, 32>}, {pipeline_mode = #tpu.pipeline_mode<synchronous>, transform_indices = @transform_8, window_bounds = array<i64: 1, 32>}, {pipeline_mode = #tpu.pipeline_mode<synchronous>, transform_indices = @transform_9, window_bounds = array<i64: 32, 128>}, {pipeline_mode = #tpu.pipeline_mode<synchronous>, transform_indices = @transform_10, window_bounds = array<i64: 1, 128>}, {pipeline_mode = #tpu.pipeline_mode<synchronous>, transform_indices = @transform_11, window_bounds = array<i64: 128, 32>}, {pipeline_mode = #tpu.pipeline_mode<synchronous>, transform_indices = @transform_12, window_bounds = array<i64: 1, 32>}, {pipeline_mode = #tpu.pipeline_mode<synchronous>, transform_indices = @transform_13, window_bounds = array<i64: 1, 32>}, {pipeline_mode = #tpu.pipeline_mode<synchronous>, transform_indices = @transform_14, window_bounds = array<i64: 1, 32>}, {transform_indices = @transform_15, window_bounds = array<i64: 1, 17, 32>}]} {
    %c0 = arith.constant 0 : index
    %c0_0 = arith.constant 0 : index
    %c0_1 = arith.constant 0 : index
    %0 = vector.load %arg1[%c0, %c0_0, %c0_1] : memref<1x17x32xf32, #tpu.memory_space<vmem>>, vector<1x17x32xf32>
    %1 = vector.shape_cast %0 : vector<1x17x32xf32> to vector<17x32xf32>
    %c0_2 = arith.constant 0 : index
    %c0_3 = arith.constant 0 : index
    %2 = vector.load %arg2[%c0_2, %c0_3] : memref<1x32xf32, #tpu.memory_space<vmem>>, vector<1x32xf32>
    %c0_4 = arith.constant 0 : index
    %c0_5 = arith.constant 0 : index
    %3 = vector.load %arg3[%c0_4, %c0_5] : memref<1x32xf32, #tpu.memory_space<vmem>>, vector<1x32xf32>
    %cst = arith.constant dense<0.000000e+00> : vector<17xf32>
    %4 = vector.multi_reduction <add>, %1, %cst [1] : vector<17x32xf32> to vector<17xf32>
    %5 = vector.shape_cast %4 : vector<17xf32> to vector<17x1xf32>
    %cst_6 = arith.constant 3.200000e+01 : f32
    %6 = vector.broadcast %cst_6 : f32 to vector<17x1xf32>
    %7 = arith.divf %5, %6 : vector<17x1xf32>
    %8 = vector.broadcast %7 : vector<17x1xf32> to vector<17x32xf32>
    %9 = arith.subf %1, %8 : vector<17x32xf32>
    %10 = arith.mulf %9, %9 : vector<17x32xf32>
    %cst_7 = arith.constant dense<0.000000e+00> : vector<17xf32>
    %11 = vector.multi_reduction <add>, %10, %cst_7 [1] : vector<17x32xf32> to vector<17xf32>
    %12 = vector.shape_cast %11 : vector<17xf32> to vector<17x1xf32>
    %cst_8 = arith.constant 3.200000e+01 : f32
    %13 = vector.broadcast %cst_8 : f32 to vector<17x1xf32>
    %14 = arith.divf %12, %13 : vector<17x1xf32>
    %15 = vector.broadcast %7 : vector<17x1xf32> to vector<17x32xf32>
    %16 = arith.subf %1, %15 : vector<17x32xf32>
    %cst_9 = arith.constant 9.99999997E-7 : f32
    %17 = vector.broadcast %cst_9 : f32 to vector<17x1xf32>
    %18 = arith.addf %14, %17 : vector<17x1xf32>
    %19 = math.rsqrt %18 : vector<17x1xf32>
    %20 = vector.broadcast %19 : vector<17x1xf32> to vector<17x32xf32>
    %21 = arith.mulf %16, %20 : vector<17x32xf32>
    %22 = vector.broadcast %2 : vector<1x32xf32> to vector<17x32xf32>
    %23 = arith.mulf %21, %22 : vector<17x32xf32>
    %24 = vector.broadcast %3 : vector<1x32xf32> to vector<17x32xf32>
    %25 = arith.addf %23, %24 : vector<17x32xf32>
    %c0_10 = arith.constant 0 : index
    %c0_11 = arith.constant 0 : index
    %26 = vector.load %arg4[%c0_10, %c0_11] : memref<32x96xf32, #tpu.memory_space<vmem>>, vector<32x96xf32>
    %27 = arith.truncf %25 : vector<17x32xf32> to vector<17x32xbf16>
    %28 = arith.truncf %26 : vector<32x96xf32> to vector<32x96xbf16>
    %cst_12 = arith.constant dense<0.000000e+00> : vector<17x96xf32>
    %29 = tpu.matmul %27, %28, %cst_12 {dimension_numbers = #tpu.dot_dimension_numbers<[1], [0], [0], [1], [0, 0, 1, 1], [], []>} : vector<17x32xbf16>, vector<32x96xbf16>, vector<17x96xf32> -> vector<17x96xf32>
    %c0_13 = arith.constant 0 : index
    %c0_14 = arith.constant 0 : index
    %30 = vector.load %arg5[%c0_13, %c0_14] : memref<1x96xf32, #tpu.memory_space<vmem>>, vector<1x96xf32>
    %31 = vector.broadcast %30 : vector<1x96xf32> to vector<17x96xf32>
    %32 = arith.addf %29, %31 : vector<17x96xf32>
    %33 = vector.extract_strided_slice %32 {offsets = [0, 0], sizes = [17, 32], strides = [1, 1]} : vector<17x96xf32> to vector<17x32xf32>
    %34 = vector.extract_strided_slice %32 {offsets = [0, 32], sizes = [17, 32], strides = [1, 1]} : vector<17x96xf32> to vector<17x32xf32>
    %35 = vector.extract_strided_slice %32 {offsets = [0, 64], sizes = [17, 32], strides = [1, 1]} : vector<17x96xf32> to vector<17x32xf32>
    %c0_15 = arith.constant 0 : index
    %c0_16 = arith.constant 0 : index
    %36 = vector.load %arg6[%c0_15, %c0_16] : memref<32x32xf32, #tpu.memory_space<vmem>>, vector<32x32xf32>
    %37 = vector.extract_strided_slice %33 {offsets = [0, 0], sizes = [17, 8], strides = [1, 1]} : vector<17x32xf32> to vector<17x8xf32>
    %38 = vector.extract_strided_slice %34 {offsets = [0, 0], sizes = [17, 8], strides = [1, 1]} : vector<17x32xf32> to vector<17x8xf32>
    %39 = vector.extract_strided_slice %35 {offsets = [0, 0], sizes = [17, 8], strides = [1, 1]} : vector<17x32xf32> to vector<17x8xf32>
    %40 = arith.truncf %37 : vector<17x8xf32> to vector<17x8xbf16>
    %41 = arith.truncf %38 : vector<17x8xf32> to vector<17x8xbf16>
    %cst_17 = arith.constant dense<0.000000e+00> : vector<17x17xf32>
    %42 = tpu.matmul %40, %41, %cst_17 {dimension_numbers = #tpu.dot_dimension_numbers<[1], [1], [0], [0], [0, 0, 1, 0], [], []>} : vector<17x8xbf16>, vector<17x8xbf16>, vector<17x17xf32> -> vector<17x17xf32>
    %cst_18 = arith.constant 0.353553385 : f32
    %43 = vector.broadcast %cst_18 : f32 to vector<17x17xf32>
    %44 = arith.mulf %42, %43 : vector<17x17xf32>
    %cst_19 = arith.constant dense<0xFF800000> : vector<17xf32>
    %45 = vector.multi_reduction <maximumf>, %44, %cst_19 [1] : vector<17x17xf32> to vector<17xf32>
    %46 = vector.shape_cast %45 : vector<17xf32> to vector<17x1xf32>
    %47 = vector.broadcast %46 : vector<17x1xf32> to vector<17x17xf32>
    %48 = arith.subf %44, %47 : vector<17x17xf32>
    %49 = math.exp %48 : vector<17x17xf32>
    %cst_20 = arith.constant dense<0.000000e+00> : vector<17xf32>
    %50 = vector.multi_reduction <add>, %49, %cst_20 [1] : vector<17x17xf32> to vector<17xf32>
    %51 = vector.shape_cast %50 : vector<17xf32> to vector<17x1xf32>
    %52 = tpu.reciprocal %51 {approx = true} : vector<17x1xf32> -> vector<17x1xf32>
    %53 = vector.broadcast %52 : vector<17x1xf32> to vector<17x17xf32>
    %54 = arith.mulf %49, %53 : vector<17x17xf32>
    %55 = arith.truncf %54 : vector<17x17xf32> to vector<17x17xbf16>
    %56 = arith.truncf %39 : vector<17x8xf32> to vector<17x8xbf16>
    %cst_21 = arith.constant dense<0.000000e+00> : vector<17x8xf32>
    %57 = tpu.matmul %55, %56, %cst_21 {dimension_numbers = #tpu.dot_dimension_numbers<[1], [0], [0], [1], [0, 0, 1, 1], [], []>} : vector<17x17xbf16>, vector<17x8xbf16>, vector<17x8xf32> -> vector<17x8xf32>
    %58 = vector.extract_strided_slice %36 {offsets = [0, 0], sizes = [8, 32], strides = [1, 1]} : vector<32x32xf32> to vector<8x32xf32>
    %59 = arith.truncf %57 : vector<17x8xf32> to vector<17x8xbf16>
    %60 = arith.truncf %58 : vector<8x32xf32> to vector<8x32xbf16>
    %cst_22 = arith.constant dense<0.000000e+00> : vector<17x32xf32>
    %61 = tpu.matmul %59, %60, %cst_22 {dimension_numbers = #tpu.dot_dimension_numbers<[1], [0], [0], [1], [0, 0, 1, 1], [], []>} : vector<17x8xbf16>, vector<8x32xbf16>, vector<17x32xf32> -> vector<17x32xf32>
    %62 = vector.extract_strided_slice %33 {offsets = [0, 8], sizes = [17, 8], strides = [1, 1]} : vector<17x32xf32> to vector<17x8xf32>
    %63 = vector.extract_strided_slice %34 {offsets = [0, 8], sizes = [17, 8], strides = [1, 1]} : vector<17x32xf32> to vector<17x8xf32>
    %64 = vector.extract_strided_slice %35 {offsets = [0, 8], sizes = [17, 8], strides = [1, 1]} : vector<17x32xf32> to vector<17x8xf32>
    %65 = arith.truncf %62 : vector<17x8xf32> to vector<17x8xbf16>
    %66 = arith.truncf %63 : vector<17x8xf32> to vector<17x8xbf16>
    %cst_23 = arith.constant dense<0.000000e+00> : vector<17x17xf32>
    %67 = tpu.matmul %65, %66, %cst_23 {dimension_numbers = #tpu.dot_dimension_numbers<[1], [1], [0], [0], [0, 0, 1, 0], [], []>} : vector<17x8xbf16>, vector<17x8xbf16>, vector<17x17xf32> -> vector<17x17xf32>
    %cst_24 = arith.constant 0.353553385 : f32
    %68 = vector.broadcast %cst_24 : f32 to vector<17x17xf32>
    %69 = arith.mulf %67, %68 : vector<17x17xf32>
    %cst_25 = arith.constant dense<0xFF800000> : vector<17xf32>
    %70 = vector.multi_reduction <maximumf>, %69, %cst_25 [1] : vector<17x17xf32> to vector<17xf32>
    %71 = vector.shape_cast %70 : vector<17xf32> to vector<17x1xf32>
    %72 = vector.broadcast %71 : vector<17x1xf32> to vector<17x17xf32>
    %73 = arith.subf %69, %72 : vector<17x17xf32>
    %74 = math.exp %73 : vector<17x17xf32>
    %cst_26 = arith.constant dense<0.000000e+00> : vector<17xf32>
    %75 = vector.multi_reduction <add>, %74, %cst_26 [1] : vector<17x17xf32> to vector<17xf32>
    %76 = vector.shape_cast %75 : vector<17xf32> to vector<17x1xf32>
    %77 = tpu.reciprocal %76 {approx = true} : vector<17x1xf32> -> vector<17x1xf32>
    %78 = vector.broadcast %77 : vector<17x1xf32> to vector<17x17xf32>
    %79 = arith.mulf %74, %78 : vector<17x17xf32>
    %80 = arith.truncf %79 : vector<17x17xf32> to vector<17x17xbf16>
    %81 = arith.truncf %64 : vector<17x8xf32> to vector<17x8xbf16>
    %cst_27 = arith.constant dense<0.000000e+00> : vector<17x8xf32>
    %82 = tpu.matmul %80, %81, %cst_27 {dimension_numbers = #tpu.dot_dimension_numbers<[1], [0], [0], [1], [0, 0, 1, 1], [], []>} : vector<17x17xbf16>, vector<17x8xbf16>, vector<17x8xf32> -> vector<17x8xf32>
    %83 = vector.extract_strided_slice %36 {offsets = [8, 0], sizes = [8, 32], strides = [1, 1]} : vector<32x32xf32> to vector<8x32xf32>
    %84 = arith.truncf %82 : vector<17x8xf32> to vector<17x8xbf16>
    %85 = arith.truncf %83 : vector<8x32xf32> to vector<8x32xbf16>
    %cst_28 = arith.constant dense<0.000000e+00> : vector<17x32xf32>
    %86 = tpu.matmul %84, %85, %cst_28 {dimension_numbers = #tpu.dot_dimension_numbers<[1], [0], [0], [1], [0, 0, 1, 1], [], []>} : vector<17x8xbf16>, vector<8x32xbf16>, vector<17x32xf32> -> vector<17x32xf32>
    %87 = arith.addf %61, %86 : vector<17x32xf32>
    %88 = vector.extract_strided_slice %33 {offsets = [0, 16], sizes = [17, 8], strides = [1, 1]} : vector<17x32xf32> to vector<17x8xf32>
    %89 = vector.extract_strided_slice %34 {offsets = [0, 16], sizes = [17, 8], strides = [1, 1]} : vector<17x32xf32> to vector<17x8xf32>
    %90 = vector.extract_strided_slice %35 {offsets = [0, 16], sizes = [17, 8], strides = [1, 1]} : vector<17x32xf32> to vector<17x8xf32>
    %91 = arith.truncf %88 : vector<17x8xf32> to vector<17x8xbf16>
    %92 = arith.truncf %89 : vector<17x8xf32> to vector<17x8xbf16>
    %cst_29 = arith.constant dense<0.000000e+00> : vector<17x17xf32>
    %93 = tpu.matmul %91, %92, %cst_29 {dimension_numbers = #tpu.dot_dimension_numbers<[1], [1], [0], [0], [0, 0, 1, 0], [], []>} : vector<17x8xbf16>, vector<17x8xbf16>, vector<17x17xf32> -> vector<17x17xf32>
    %cst_30 = arith.constant 0.353553385 : f32
    %94 = vector.broadcast %cst_30 : f32 to vector<17x17xf32>
    %95 = arith.mulf %93, %94 : vector<17x17xf32>
    %cst_31 = arith.constant dense<0xFF800000> : vector<17xf32>
    %96 = vector.multi_reduction <maximumf>, %95, %cst_31 [1] : vector<17x17xf32> to vector<17xf32>
    %97 = vector.shape_cast %96 : vector<17xf32> to vector<17x1xf32>
    %98 = vector.broadcast %97 : vector<17x1xf32> to vector<17x17xf32>
    %99 = arith.subf %95, %98 : vector<17x17xf32>
    %100 = math.exp %99 : vector<17x17xf32>
    %cst_32 = arith.constant dense<0.000000e+00> : vector<17xf32>
    %101 = vector.multi_reduction <add>, %100, %cst_32 [1] : vector<17x17xf32> to vector<17xf32>
    %102 = vector.shape_cast %101 : vector<17xf32> to vector<17x1xf32>
    %103 = tpu.reciprocal %102 {approx = true} : vector<17x1xf32> -> vector<17x1xf32>
    %104 = vector.broadcast %103 : vector<17x1xf32> to vector<17x17xf32>
    %105 = arith.mulf %100, %104 : vector<17x17xf32>
    %106 = arith.truncf %105 : vector<17x17xf32> to vector<17x17xbf16>
    %107 = arith.truncf %90 : vector<17x8xf32> to vector<17x8xbf16>
    %cst_33 = arith.constant dense<0.000000e+00> : vector<17x8xf32>
    %108 = tpu.matmul %106, %107, %cst_33 {dimension_numbers = #tpu.dot_dimension_numbers<[1], [0], [0], [1], [0, 0, 1, 1], [], []>} : vector<17x17xbf16>, vector<17x8xbf16>, vector<17x8xf32> -> vector<17x8xf32>
    %109 = vector.extract_strided_slice %36 {offsets = [16, 0], sizes = [8, 32], strides = [1, 1]} : vector<32x32xf32> to vector<8x32xf32>
    %110 = arith.truncf %108 : vector<17x8xf32> to vector<17x8xbf16>
    %111 = arith.truncf %109 : vector<8x32xf32> to vector<8x32xbf16>
    %cst_34 = arith.constant dense<0.000000e+00> : vector<17x32xf32>
    %112 = tpu.matmul %110, %111, %cst_34 {dimension_numbers = #tpu.dot_dimension_numbers<[1], [0], [0], [1], [0, 0, 1, 1], [], []>} : vector<17x8xbf16>, vector<8x32xbf16>, vector<17x32xf32> -> vector<17x32xf32>
    %113 = arith.addf %87, %112 : vector<17x32xf32>
    %114 = vector.extract_strided_slice %33 {offsets = [0, 24], sizes = [17, 8], strides = [1, 1]} : vector<17x32xf32> to vector<17x8xf32>
    %115 = vector.extract_strided_slice %34 {offsets = [0, 24], sizes = [17, 8], strides = [1, 1]} : vector<17x32xf32> to vector<17x8xf32>
    %116 = vector.extract_strided_slice %35 {offsets = [0, 24], sizes = [17, 8], strides = [1, 1]} : vector<17x32xf32> to vector<17x8xf32>
    %117 = arith.truncf %114 : vector<17x8xf32> to vector<17x8xbf16>
    %118 = arith.truncf %115 : vector<17x8xf32> to vector<17x8xbf16>
    %cst_35 = arith.constant dense<0.000000e+00> : vector<17x17xf32>
    %119 = tpu.matmul %117, %118, %cst_35 {dimension_numbers = #tpu.dot_dimension_numbers<[1], [1], [0], [0], [0, 0, 1, 0], [], []>} : vector<17x8xbf16>, vector<17x8xbf16>, vector<17x17xf32> -> vector<17x17xf32>
    %cst_36 = arith.constant 0.353553385 : f32
    %120 = vector.broadcast %cst_36 : f32 to vector<17x17xf32>
    %121 = arith.mulf %119, %120 : vector<17x17xf32>
    %cst_37 = arith.constant dense<0xFF800000> : vector<17xf32>
    %122 = vector.multi_reduction <maximumf>, %121, %cst_37 [1] : vector<17x17xf32> to vector<17xf32>
    %123 = vector.shape_cast %122 : vector<17xf32> to vector<17x1xf32>
    %124 = vector.broadcast %123 : vector<17x1xf32> to vector<17x17xf32>
    %125 = arith.subf %121, %124 : vector<17x17xf32>
    %126 = math.exp %125 : vector<17x17xf32>
    %cst_38 = arith.constant dense<0.000000e+00> : vector<17xf32>
    %127 = vector.multi_reduction <add>, %126, %cst_38 [1] : vector<17x17xf32> to vector<17xf32>
    %128 = vector.shape_cast %127 : vector<17xf32> to vector<17x1xf32>
    %129 = tpu.reciprocal %128 {approx = true} : vector<17x1xf32> -> vector<17x1xf32>
    %130 = vector.broadcast %129 : vector<17x1xf32> to vector<17x17xf32>
    %131 = arith.mulf %126, %130 : vector<17x17xf32>
    %132 = arith.truncf %131 : vector<17x17xf32> to vector<17x17xbf16>
    %133 = arith.truncf %116 : vector<17x8xf32> to vector<17x8xbf16>
    %cst_39 = arith.constant dense<0.000000e+00> : vector<17x8xf32>
    %134 = tpu.matmul %132, %133, %cst_39 {dimension_numbers = #tpu.dot_dimension_numbers<[1], [0], [0], [1], [0, 0, 1, 1], [], []>} : vector<17x17xbf16>, vector<17x8xbf16>, vector<17x8xf32> -> vector<17x8xf32>
    %135 = vector.extract_strided_slice %36 {offsets = [24, 0], sizes = [8, 32], strides = [1, 1]} : vector<32x32xf32> to vector<8x32xf32>
    %136 = arith.truncf %134 : vector<17x8xf32> to vector<17x8xbf16>
    %137 = arith.truncf %135 : vector<8x32xf32> to vector<8x32xbf16>
    %cst_40 = arith.constant dense<0.000000e+00> : vector<17x32xf32>
    %138 = tpu.matmul %136, %137, %cst_40 {dimension_numbers = #tpu.dot_dimension_numbers<[1], [0], [0], [1], [0, 0, 1, 1], [], []>} : vector<17x8xbf16>, vector<8x32xbf16>, vector<17x32xf32> -> vector<17x32xf32>
    %139 = arith.addf %113, %138 : vector<17x32xf32>
    %c0_41 = arith.constant 0 : index
    %c0_42 = arith.constant 0 : index
    %140 = vector.load %arg7[%c0_41, %c0_42] : memref<1x32xf32, #tpu.memory_space<vmem>>, vector<1x32xf32>
    %141 = vector.broadcast %140 : vector<1x32xf32> to vector<17x32xf32>
    %142 = arith.addf %139, %141 : vector<17x32xf32>
    %143 = arith.addf %1, %142 : vector<17x32xf32>
    %c0_43 = arith.constant 0 : index
    %c0_44 = arith.constant 0 : index
    %144 = vector.load %arg8[%c0_43, %c0_44] : memref<1x32xf32, #tpu.memory_space<vmem>>, vector<1x32xf32>
    %c0_45 = arith.constant 0 : index
    %c0_46 = arith.constant 0 : index
    %145 = vector.load %arg9[%c0_45, %c0_46] : memref<1x32xf32, #tpu.memory_space<vmem>>, vector<1x32xf32>
    %cst_47 = arith.constant dense<0.000000e+00> : vector<17xf32>
    %146 = vector.multi_reduction <add>, %143, %cst_47 [1] : vector<17x32xf32> to vector<17xf32>
    %147 = vector.shape_cast %146 : vector<17xf32> to vector<17x1xf32>
    %cst_48 = arith.constant 3.200000e+01 : f32
    %148 = vector.broadcast %cst_48 : f32 to vector<17x1xf32>
    %149 = arith.divf %147, %148 : vector<17x1xf32>
    %150 = vector.broadcast %149 : vector<17x1xf32> to vector<17x32xf32>
    %151 = arith.subf %143, %150 : vector<17x32xf32>
    %152 = arith.mulf %151, %151 : vector<17x32xf32>
    %cst_49 = arith.constant dense<0.000000e+00> : vector<17xf32>
    %153 = vector.multi_reduction <add>, %152, %cst_49 [1] : vector<17x32xf32> to vector<17xf32>
    %154 = vector.shape_cast %153 : vector<17xf32> to vector<17x1xf32>
    %cst_50 = arith.constant 3.200000e+01 : f32
    %155 = vector.broadcast %cst_50 : f32 to vector<17x1xf32>
    %156 = arith.divf %154, %155 : vector<17x1xf32>
    %157 = vector.broadcast %149 : vector<17x1xf32> to vector<17x32xf32>
    %158 = arith.subf %143, %157 : vector<17x32xf32>
    %cst_51 = arith.constant 9.99999997E-7 : f32
    %159 = vector.broadcast %cst_51 : f32 to vector<17x1xf32>
    %160 = arith.addf %156, %159 : vector<17x1xf32>
    %161 = math.rsqrt %160 : vector<17x1xf32>
    %162 = vector.broadcast %161 : vector<17x1xf32> to vector<17x32xf32>
    %163 = arith.mulf %158, %162 : vector<17x32xf32>
    %164 = vector.broadcast %144 : vector<1x32xf32> to vector<17x32xf32>
    %165 = arith.mulf %163, %164 : vector<17x32xf32>
    %166 = vector.broadcast %145 : vector<1x32xf32> to vector<17x32xf32>
    %167 = arith.addf %165, %166 : vector<17x32xf32>
    %c0_52 = arith.constant 0 : index
    %c0_53 = arith.constant 0 : index
    %168 = vector.load %arg10[%c0_52, %c0_53] : memref<32x128xf32, #tpu.memory_space<vmem>>, vector<32x128xf32>
    %169 = arith.truncf %167 : vector<17x32xf32> to vector<17x32xbf16>
    %170 = arith.truncf %168 : vector<32x128xf32> to vector<32x128xbf16>
    %cst_54 = arith.constant dense<0.000000e+00> : vector<17x128xf32>
    %171 = tpu.matmul %169, %170, %cst_54 {dimension_numbers = #tpu.dot_dimension_numbers<[1], [0], [0], [1], [0, 0, 1, 1], [], []>} : vector<17x32xbf16>, vector<32x128xbf16>, vector<17x128xf32> -> vector<17x128xf32>
    %c0_55 = arith.constant 0 : index
    %c0_56 = arith.constant 0 : index
    %172 = vector.load %arg11[%c0_55, %c0_56] : memref<1x128xf32, #tpu.memory_space<vmem>>, vector<1x128xf32>
    %173 = vector.broadcast %172 : vector<1x128xf32> to vector<17x128xf32>
    %174 = arith.addf %171, %173 : vector<17x128xf32>
    %cst_57 = arith.constant 5.000000e-01 : f32
    %175 = vector.broadcast %cst_57 : f32 to vector<17x128xf32>
    %176 = arith.mulf %175, %174 : vector<17x128xf32>
    %cst_58 = arith.constant 4.471500e-02 : f32
    %177 = vector.broadcast %cst_58 : f32 to vector<17x128xf32>
    %178 = arith.mulf %177, %174 : vector<17x128xf32>
    %179 = arith.mulf %178, %174 : vector<17x128xf32>
    %180 = arith.mulf %179, %174 : vector<17x128xf32>
    %181 = arith.addf %174, %180 : vector<17x128xf32>
    %cst_59 = arith.constant 0.797884583 : f32
    %182 = vector.broadcast %cst_59 : f32 to vector<17x128xf32>
    %183 = arith.mulf %182, %181 : vector<17x128xf32>
    %184 = math.tanh %183 : vector<17x128xf32>
    %cst_60 = arith.constant 1.000000e+00 : f32
    %185 = vector.broadcast %cst_60 : f32 to vector<17x128xf32>
    %186 = arith.addf %185, %184 : vector<17x128xf32>
    %187 = arith.mulf %176, %186 : vector<17x128xf32>
    %c0_61 = arith.constant 0 : index
    %c0_62 = arith.constant 0 : index
    %188 = vector.load %arg12[%c0_61, %c0_62] : memref<128x32xf32, #tpu.memory_space<vmem>>, vector<128x32xf32>
    %189 = arith.truncf %187 : vector<17x128xf32> to vector<17x128xbf16>
    %190 = arith.truncf %188 : vector<128x32xf32> to vector<128x32xbf16>
    %cst_63 = arith.constant dense<0.000000e+00> : vector<17x32xf32>
    %191 = tpu.matmul %189, %190, %cst_63 {dimension_numbers = #tpu.dot_dimension_numbers<[1], [0], [0], [1], [0, 0, 1, 1], [], []>} : vector<17x128xbf16>, vector<128x32xbf16>, vector<17x32xf32> -> vector<17x32xf32>
    %c0_64 = arith.constant 0 : index
    %c0_65 = arith.constant 0 : index
    %192 = vector.load %arg13[%c0_64, %c0_65] : memref<1x32xf32, #tpu.memory_space<vmem>>, vector<1x32xf32>
    %193 = vector.broadcast %192 : vector<1x32xf32> to vector<17x32xf32>
    %194 = arith.addf %191, %193 : vector<17x32xf32>
    %195 = arith.addf %143, %194 : vector<17x32xf32>
    %c0_66 = arith.constant 0 : index
    %c0_67 = arith.constant 0 : index
    %196 = vector.load %arg14[%c0_66, %c0_67] : memref<1x32xf32, #tpu.memory_space<vmem>>, vector<1x32xf32>
    %c0_68 = arith.constant 0 : index
    %c0_69 = arith.constant 0 : index
    %197 = vector.load %arg15[%c0_68, %c0_69] : memref<1x32xf32, #tpu.memory_space<vmem>>, vector<1x32xf32>
    %cst_70 = arith.constant dense<0.000000e+00> : vector<17xf32>
    %198 = vector.multi_reduction <add>, %195, %cst_70 [1] : vector<17x32xf32> to vector<17xf32>
    %199 = vector.shape_cast %198 : vector<17xf32> to vector<17x1xf32>
    %cst_71 = arith.constant 3.200000e+01 : f32
    %200 = vector.broadcast %cst_71 : f32 to vector<17x1xf32>
    %201 = arith.divf %199, %200 : vector<17x1xf32>
    %202 = vector.broadcast %201 : vector<17x1xf32> to vector<17x32xf32>
    %203 = arith.subf %195, %202 : vector<17x32xf32>
    %204 = arith.mulf %203, %203 : vector<17x32xf32>
    %cst_72 = arith.constant dense<0.000000e+00> : vector<17xf32>
    %205 = vector.multi_reduction <add>, %204, %cst_72 [1] : vector<17x32xf32> to vector<17xf32>
    %206 = vector.shape_cast %205 : vector<17xf32> to vector<17x1xf32>
    %cst_73 = arith.constant 3.200000e+01 : f32
    %207 = vector.broadcast %cst_73 : f32 to vector<17x1xf32>
    %208 = arith.divf %206, %207 : vector<17x1xf32>
    %209 = vector.broadcast %201 : vector<17x1xf32> to vector<17x32xf32>
    %210 = arith.subf %195, %209 : vector<17x32xf32>
    %cst_74 = arith.constant 9.99999997E-7 : f32
    %211 = vector.broadcast %cst_74 : f32 to vector<17x1xf32>
    %212 = arith.addf %208, %211 : vector<17x1xf32>
    %213 = math.rsqrt %212 : vector<17x1xf32>
    %214 = vector.broadcast %213 : vector<17x1xf32> to vector<17x32xf32>
    %215 = arith.mulf %210, %214 : vector<17x32xf32>
    %216 = vector.broadcast %196 : vector<1x32xf32> to vector<17x32xf32>
    %217 = arith.mulf %215, %216 : vector<17x32xf32>
    %218 = vector.broadcast %197 : vector<1x32xf32> to vector<17x32xf32>
    %219 = arith.addf %217, %218 : vector<17x32xf32>
    %c0_75 = arith.constant 0 : index
    %c0_76 = arith.constant 0 : index
    %c0_77 = arith.constant 0 : index
    %220 = vector.load %arg16[%c0_75, %c0_76, %c0_77] : memref<1x17x32xf32, #tpu.memory_space<vmem>>, vector<1x17x32xf32>
    %221 = vector.shape_cast %220 : vector<1x17x32xf32> to vector<17x32xf32>
    %222 = vector.shape_cast %219 : vector<17x32xf32> to vector<1x17x32xf32>
    tpu.vector_store %arg16[%c0_75, %c0_76, %c0_77], %222 {strides = array<i32>} : memref<1x17x32xf32, #tpu.memory_space<vmem>>, vector<1x17x32xf32>,
    return
  }
  func.func @transform_0(%arg0: i32) -> (i32, i32, i32) {
    %c0_i32 = arith.constant 0 : i32
    %c0_i32_0 = arith.constant 0 : i32
    %c0_i32_1 = arith.constant 0 : i32
    return %arg0, %c0_i32, %c0_i32_0 : i32, i32, i32
  }
  func.func @transform_1(%arg0: i32) -> (i32, i32) {
    %c0_i32 = arith.constant 0 : i32
    %c0_i32_0 = arith.constant 0 : i32
    %c0_i32_1 = arith.constant 0 : i32
    return %c0_i32, %c0_i32_0 : i32, i32
  }
  func.func @transform_2(%arg0: i32) -> (i32, i32) {
    %c0_i32 = arith.constant 0 : i32
    %c0_i32_0 = arith.constant 0 : i32
    %c0_i32_1 = arith.constant 0 : i32
    return %c0_i32, %c0_i32_0 : i32, i32
  }
  func.func @transform_3(%arg0: i32) -> (i32, i32) {
    %c0_i32 = arith.constant 0 : i32
    %c0_i32_0 = arith.constant 0 : i32
    %c0_i32_1 = arith.constant 0 : i32
    return %c0_i32, %c0_i32_0 : i32, i32
  }
  func.func @transform_4(%arg0: i32) -> (i32, i32) {
    %c0_i32 = arith.constant 0 : i32
    %c0_i32_0 = arith.constant 0 : i32
    %c0_i32_1 = arith.constant 0 : i32
    return %c0_i32, %c0_i32_0 : i32, i32
  }
  func.func @transform_5(%arg0: i32) -> (i32, i32) {
    %c0_i32 = arith.constant 0 : i32
    %c0_i32_0 = arith.constant 0 : i32
    %c0_i32_1 = arith.constant 0 : i32
    return %c0_i32, %c0_i32_0 : i32, i32
  }
  func.func @transform_6(%arg0: i32) -> (i32, i32) {
    %c0_i32 = arith.constant 0 : i32
    %c0_i32_0 = arith.constant 0 : i32
    %c0_i32_1 = arith.constant 0 : i32
    return %c0_i32, %c0_i32_0 : i32, i32
  }
  func.func @transform_7(%arg0: i32) -> (i32, i32) {
    %c0_i32 = arith.constant 0 : i32
    %c0_i32_0 = arith.constant 0 : i32
    %c0_i32_1 = arith.constant 0 : i32
    return %c0_i32, %c0_i32_0 : i32, i32
  }
  func.func @transform_8(%arg0: i32) -> (i32, i32) {
    %c0_i32 = arith.constant 0 : i32
    %c0_i32_0 = arith.constant 0 : i32
    %c0_i32_1 = arith.constant 0 : i32
    return %c0_i32, %c0_i32_0 : i32, i32
  }
  func.func @transform_9(%arg0: i32) -> (i32, i32) {
    %c0_i32 = arith.constant 0 : i32
    %c0_i32_0 = arith.constant 0 : i32
    %c0_i32_1 = arith.constant 0 : i32
    return %c0_i32, %c0_i32_0 : i32, i32
  }
  func.func @transform_10(%arg0: i32) -> (i32, i32) {
    %c0_i32 = arith.constant 0 : i32
    %c0_i32_0 = arith.constant 0 : i32
    %c0_i32_1 = arith.constant 0 : i32
    return %c0_i32, %c0_i32_0 : i32, i32
  }
  func.func @transform_11(%arg0: i32) -> (i32, i32) {
    %c0_i32 = arith.constant 0 : i32
    %c0_i32_0 = arith.constant 0 : i32
    %c0_i32_1 = arith.constant 0 : i32
    return %c0_i32, %c0_i32_0 : i32, i32
  }
  func.func @transform_12(%arg0: i32) -> (i32, i32) {
    %c0_i32 = arith.constant 0 : i32
    %c0_i32_0 = arith.constant 0 : i32
    %c0_i32_1 = arith.constant 0 : i32
    return %c0_i32, %c0_i32_0 : i32, i32
  }
  func.func @transform_13(%arg0: i32) -> (i32, i32) {
    %c0_i32 = arith.constant 0 : i32
    %c0_i32_0 = arith.constant 0 : i32
    %c0_i32_1 = arith.constant 0 : i32
    return %c0_i32, %c0_i32_0 : i32, i32
  }
  func.func @transform_14(%arg0: i32) -> (i32, i32) {
    %c0_i32 = arith.constant 0 : i32
    %c0_i32_0 = arith.constant 0 : i32
    %c0_i32_1 = arith.constant 0 : i32
    return %c0_i32, %c0_i32_0 : i32, i32
  }
  func.func @transform_15(%arg0: i32) -> (i32, i32, i32) {
    %c0_i32 = arith.constant 0 : i32
    %c0_i32_0 = arith.constant 0 : i32
    %c0_i32_1 = arith.constant 0 : i32
    return %arg0, %c0_i32, %c0_i32_0 : i32, i32, i32
  }
}

module attributes {stable_mosaic.version = 11 : i64} {
  func.func @_vit_block_kernel(%arg0: i32, %arg1: memref<1x17x32xf32, #tpu.memory_space<vmem>>, %arg2: memref<1x32xf32, #tpu.memory_space<vmem>>, %arg3: memref<1x32xf32, #tpu.memory_space<vmem>>, %arg4: memref<32x96xf32, #tpu.memory_space<vmem>>, %arg5: memref<1x96xf32, #tpu.memory_space<vmem>>, %arg6: memref<32x32xf32, #tpu.memory_space<vmem>>, %arg7: memref<1x32xf32, #tpu.memory_space<vmem>>, %arg8: memref<1x32xf32, #tpu.memory_space<vmem>>, %arg9: memref<1x32xf32, #tpu.memory_space<vmem>>, %arg10: memref<32x128xf32, #tpu.memory_space<vmem>>, %arg11: memref<1x128xf32, #tpu.memory_space<vmem>>, %arg12: memref<128x32xf32, #tpu.memory_space<vmem>>, %arg13: memref<1x32xf32, #tpu.memory_space<vmem>>, %arg14: memref<1x17x32xf32, #tpu.memory_space<vmem>>) attributes {dimension_semantics = [#tpu.dimension_semantics<parallel>], iteration_bounds = array<i64: 2>, scalar_prefetch = 0 : i64, scratch_operands = 0 : i64, tpu.core_type = #tpu.core_type<tc>, window_params = [{transform_indices = @transform_0, window_bounds = array<i64: 1, 17, 32>}, {pipeline_mode = #tpu.pipeline_mode<synchronous>, transform_indices = @transform_1, window_bounds = array<i64: 1, 32>}, {pipeline_mode = #tpu.pipeline_mode<synchronous>, transform_indices = @transform_2, window_bounds = array<i64: 1, 32>}, {pipeline_mode = #tpu.pipeline_mode<synchronous>, transform_indices = @transform_3, window_bounds = array<i64: 32, 96>}, {pipeline_mode = #tpu.pipeline_mode<synchronous>, transform_indices = @transform_4, window_bounds = array<i64: 1, 96>}, {pipeline_mode = #tpu.pipeline_mode<synchronous>, transform_indices = @transform_5, window_bounds = array<i64: 32, 32>}, {pipeline_mode = #tpu.pipeline_mode<synchronous>, transform_indices = @transform_6, window_bounds = array<i64: 1, 32>}, {pipeline_mode = #tpu.pipeline_mode<synchronous>, transform_indices = @transform_7, window_bounds = array<i64: 1, 32>}, {pipeline_mode = #tpu.pipeline_mode<synchronous>, transform_indices = @transform_8, window_bounds = array<i64: 1, 32>}, {pipeline_mode = #tpu.pipeline_mode<synchronous>, transform_indices = @transform_9, window_bounds = array<i64: 32, 128>}, {pipeline_mode = #tpu.pipeline_mode<synchronous>, transform_indices = @transform_10, window_bounds = array<i64: 1, 128>}, {pipeline_mode = #tpu.pipeline_mode<synchronous>, transform_indices = @transform_11, window_bounds = array<i64: 128, 32>}, {pipeline_mode = #tpu.pipeline_mode<synchronous>, transform_indices = @transform_12, window_bounds = array<i64: 1, 32>}, {transform_indices = @transform_13, window_bounds = array<i64: 1, 17, 32>}]} {
    %c0 = arith.constant 0 : index
    %c0_0 = arith.constant 0 : index
    %c0_1 = arith.constant 0 : index
    %0 = vector.load %arg1[%c0, %c0_0, %c0_1] : memref<1x17x32xf32, #tpu.memory_space<vmem>>, vector<1x17x32xf32>
    %1 = vector.shape_cast %0 : vector<1x17x32xf32> to vector<17x32xf32>
    %c0_2 = arith.constant 0 : index
    %c0_3 = arith.constant 0 : index
    %2 = vector.load %arg2[%c0_2, %c0_3] : memref<1x32xf32, #tpu.memory_space<vmem>>, vector<1x32xf32>
    %c0_4 = arith.constant 0 : index
    %c0_5 = arith.constant 0 : index
    %3 = vector.load %arg3[%c0_4, %c0_5] : memref<1x32xf32, #tpu.memory_space<vmem>>, vector<1x32xf32>
    %cst = arith.constant dense<0.000000e+00> : vector<17xf32>
    %4 = vector.multi_reduction <add>, %1, %cst [1] : vector<17x32xf32> to vector<17xf32>
    %5 = vector.shape_cast %4 : vector<17xf32> to vector<17x1xf32>
    %cst_6 = arith.constant 3.200000e+01 : f32
    %6 = vector.broadcast %cst_6 : f32 to vector<17x1xf32>
    %7 = arith.divf %5, %6 : vector<17x1xf32>
    %8 = vector.broadcast %7 : vector<17x1xf32> to vector<17x32xf32>
    %9 = arith.subf %1, %8 : vector<17x32xf32>
    %10 = arith.mulf %9, %9 : vector<17x32xf32>
    %cst_7 = arith.constant dense<0.000000e+00> : vector<17xf32>
    %11 = vector.multi_reduction <add>, %10, %cst_7 [1] : vector<17x32xf32> to vector<17xf32>
    %12 = vector.shape_cast %11 : vector<17xf32> to vector<17x1xf32>
    %cst_8 = arith.constant 3.200000e+01 : f32
    %13 = vector.broadcast %cst_8 : f32 to vector<17x1xf32>
    %14 = arith.divf %12, %13 : vector<17x1xf32>
    %15 = vector.broadcast %7 : vector<17x1xf32> to vector<17x32xf32>
    %16 = arith.subf %1, %15 : vector<17x32xf32>
    %cst_9 = arith.constant 9.99999997E-7 : f32
    %17 = vector.broadcast %cst_9 : f32 to vector<17x1xf32>
    %18 = arith.addf %14, %17 : vector<17x1xf32>
    %19 = math.rsqrt %18 : vector<17x1xf32>
    %20 = vector.broadcast %19 : vector<17x1xf32> to vector<17x32xf32>
    %21 = arith.mulf %16, %20 : vector<17x32xf32>
    %22 = vector.broadcast %2 : vector<1x32xf32> to vector<17x32xf32>
    %23 = arith.mulf %21, %22 : vector<17x32xf32>
    %24 = vector.broadcast %3 : vector<1x32xf32> to vector<17x32xf32>
    %25 = arith.addf %23, %24 : vector<17x32xf32>
    %c0_10 = arith.constant 0 : index
    %c0_11 = arith.constant 0 : index
    %26 = vector.load %arg4[%c0_10, %c0_11] : memref<32x96xf32, #tpu.memory_space<vmem>>, vector<32x96xf32>
    %27 = arith.truncf %25 : vector<17x32xf32> to vector<17x32xbf16>
    %28 = arith.truncf %26 : vector<32x96xf32> to vector<32x96xbf16>
    %cst_12 = arith.constant dense<0.000000e+00> : vector<17x96xf32>
    %29 = tpu.matmul %27, %28, %cst_12 {dimension_numbers = #tpu.dot_dimension_numbers<[1], [0], [0], [1], [0, 0, 1, 1], [], []>} : vector<17x32xbf16>, vector<32x96xbf16>, vector<17x96xf32> -> vector<17x96xf32>
    %c0_13 = arith.constant 0 : index
    %c0_14 = arith.constant 0 : index
    %30 = vector.load %arg5[%c0_13, %c0_14] : memref<1x96xf32, #tpu.memory_space<vmem>>, vector<1x96xf32>
    %31 = vector.broadcast %30 : vector<1x96xf32> to vector<17x96xf32>
    %32 = arith.addf %29, %31 : vector<17x96xf32>
    %33 = vector.extract_strided_slice %32 {offsets = [0, 0], sizes = [17, 32], strides = [1, 1]} : vector<17x96xf32> to vector<17x32xf32>
    %34 = vector.extract_strided_slice %32 {offsets = [0, 32], sizes = [17, 32], strides = [1, 1]} : vector<17x96xf32> to vector<17x32xf32>
    %35 = vector.extract_strided_slice %32 {offsets = [0, 64], sizes = [17, 32], strides = [1, 1]} : vector<17x96xf32> to vector<17x32xf32>
    %c0_15 = arith.constant 0 : index
    %c0_16 = arith.constant 0 : index
    %36 = vector.load %arg6[%c0_15, %c0_16] : memref<32x32xf32, #tpu.memory_space<vmem>>, vector<32x32xf32>
    %37 = vector.extract_strided_slice %33 {offsets = [0, 0], sizes = [17, 8], strides = [1, 1]} : vector<17x32xf32> to vector<17x8xf32>
    %38 = vector.extract_strided_slice %34 {offsets = [0, 0], sizes = [17, 8], strides = [1, 1]} : vector<17x32xf32> to vector<17x8xf32>
    %39 = vector.extract_strided_slice %35 {offsets = [0, 0], sizes = [17, 8], strides = [1, 1]} : vector<17x32xf32> to vector<17x8xf32>
    %40 = arith.truncf %37 : vector<17x8xf32> to vector<17x8xbf16>
    %41 = arith.truncf %38 : vector<17x8xf32> to vector<17x8xbf16>
    %cst_17 = arith.constant dense<0.000000e+00> : vector<17x17xf32>
    %42 = tpu.matmul %40, %41, %cst_17 {dimension_numbers = #tpu.dot_dimension_numbers<[1], [1], [0], [0], [0, 0, 1, 0], [], []>} : vector<17x8xbf16>, vector<17x8xbf16>, vector<17x17xf32> -> vector<17x17xf32>
    %cst_18 = arith.constant 0.353553385 : f32
    %43 = vector.broadcast %cst_18 : f32 to vector<17x17xf32>
    %44 = arith.mulf %42, %43 : vector<17x17xf32>
    %cst_19 = arith.constant dense<0xFF800000> : vector<17xf32>
    %45 = vector.multi_reduction <maximumf>, %44, %cst_19 [1] : vector<17x17xf32> to vector<17xf32>
    %46 = vector.shape_cast %45 : vector<17xf32> to vector<17x1xf32>
    %47 = vector.broadcast %46 : vector<17x1xf32> to vector<17x17xf32>
    %48 = arith.subf %44, %47 : vector<17x17xf32>
    %49 = math.exp %48 : vector<17x17xf32>
    %cst_20 = arith.constant dense<0.000000e+00> : vector<17xf32>
    %50 = vector.multi_reduction <add>, %49, %cst_20 [1] : vector<17x17xf32> to vector<17xf32>
    %51 = vector.shape_cast %50 : vector<17xf32> to vector<17x1xf32>
    %52 = tpu.reciprocal %51 {approx = true} : vector<17x1xf32> -> vector<17x1xf32>
    %53 = vector.broadcast %52 : vector<17x1xf32> to vector<17x17xf32>
    %54 = arith.mulf %49, %53 : vector<17x17xf32>
    %55 = arith.truncf %54 : vector<17x17xf32> to vector<17x17xbf16>
    %56 = arith.truncf %39 : vector<17x8xf32> to vector<17x8xbf16>
    %cst_21 = arith.constant dense<0.000000e+00> : vector<17x8xf32>
    %57 = tpu.matmul %55, %56, %cst_21 {dimension_numbers = #tpu.dot_dimension_numbers<[1], [0], [0], [1], [0, 0, 1, 1], [], []>} : vector<17x17xbf16>, vector<17x8xbf16>, vector<17x8xf32> -> vector<17x8xf32>
    %58 = vector.extract_strided_slice %36 {offsets = [0, 0], sizes = [8, 32], strides = [1, 1]} : vector<32x32xf32> to vector<8x32xf32>
    %59 = arith.truncf %57 : vector<17x8xf32> to vector<17x8xbf16>
    %60 = arith.truncf %58 : vector<8x32xf32> to vector<8x32xbf16>
    %cst_22 = arith.constant dense<0.000000e+00> : vector<17x32xf32>
    %61 = tpu.matmul %59, %60, %cst_22 {dimension_numbers = #tpu.dot_dimension_numbers<[1], [0], [0], [1], [0, 0, 1, 1], [], []>} : vector<17x8xbf16>, vector<8x32xbf16>, vector<17x32xf32> -> vector<17x32xf32>
    %62 = vector.extract_strided_slice %33 {offsets = [0, 8], sizes = [17, 8], strides = [1, 1]} : vector<17x32xf32> to vector<17x8xf32>
    %63 = vector.extract_strided_slice %34 {offsets = [0, 8], sizes = [17, 8], strides = [1, 1]} : vector<17x32xf32> to vector<17x8xf32>
    %64 = vector.extract_strided_slice %35 {offsets = [0, 8], sizes = [17, 8], strides = [1, 1]} : vector<17x32xf32> to vector<17x8xf32>
    %65 = arith.truncf %62 : vector<17x8xf32> to vector<17x8xbf16>
    %66 = arith.truncf %63 : vector<17x8xf32> to vector<17x8xbf16>
    %cst_23 = arith.constant dense<0.000000e+00> : vector<17x17xf32>
    %67 = tpu.matmul %65, %66, %cst_23 {dimension_numbers = #tpu.dot_dimension_numbers<[1], [1], [0], [0], [0, 0, 1, 0], [], []>} : vector<17x8xbf16>, vector<17x8xbf16>, vector<17x17xf32> -> vector<17x17xf32>
    %cst_24 = arith.constant 0.353553385 : f32
    %68 = vector.broadcast %cst_24 : f32 to vector<17x17xf32>
    %69 = arith.mulf %67, %68 : vector<17x17xf32>
    %cst_25 = arith.constant dense<0xFF800000> : vector<17xf32>
    %70 = vector.multi_reduction <maximumf>, %69, %cst_25 [1] : vector<17x17xf32> to vector<17xf32>
    %71 = vector.shape_cast %70 : vector<17xf32> to vector<17x1xf32>
    %72 = vector.broadcast %71 : vector<17x1xf32> to vector<17x17xf32>
    %73 = arith.subf %69, %72 : vector<17x17xf32>
    %74 = math.exp %73 : vector<17x17xf32>
    %cst_26 = arith.constant dense<0.000000e+00> : vector<17xf32>
    %75 = vector.multi_reduction <add>, %74, %cst_26 [1] : vector<17x17xf32> to vector<17xf32>
    %76 = vector.shape_cast %75 : vector<17xf32> to vector<17x1xf32>
    %77 = tpu.reciprocal %76 {approx = true} : vector<17x1xf32> -> vector<17x1xf32>
    %78 = vector.broadcast %77 : vector<17x1xf32> to vector<17x17xf32>
    %79 = arith.mulf %74, %78 : vector<17x17xf32>
    %80 = arith.truncf %79 : vector<17x17xf32> to vector<17x17xbf16>
    %81 = arith.truncf %64 : vector<17x8xf32> to vector<17x8xbf16>
    %cst_27 = arith.constant dense<0.000000e+00> : vector<17x8xf32>
    %82 = tpu.matmul %80, %81, %cst_27 {dimension_numbers = #tpu.dot_dimension_numbers<[1], [0], [0], [1], [0, 0, 1, 1], [], []>} : vector<17x17xbf16>, vector<17x8xbf16>, vector<17x8xf32> -> vector<17x8xf32>
    %83 = vector.extract_strided_slice %36 {offsets = [8, 0], sizes = [8, 32], strides = [1, 1]} : vector<32x32xf32> to vector<8x32xf32>
    %84 = arith.truncf %82 : vector<17x8xf32> to vector<17x8xbf16>
    %85 = arith.truncf %83 : vector<8x32xf32> to vector<8x32xbf16>
    %cst_28 = arith.constant dense<0.000000e+00> : vector<17x32xf32>
    %86 = tpu.matmul %84, %85, %cst_28 {dimension_numbers = #tpu.dot_dimension_numbers<[1], [0], [0], [1], [0, 0, 1, 1], [], []>} : vector<17x8xbf16>, vector<8x32xbf16>, vector<17x32xf32> -> vector<17x32xf32>
    %87 = arith.addf %61, %86 : vector<17x32xf32>
    %88 = vector.extract_strided_slice %33 {offsets = [0, 16], sizes = [17, 8], strides = [1, 1]} : vector<17x32xf32> to vector<17x8xf32>
    %89 = vector.extract_strided_slice %34 {offsets = [0, 16], sizes = [17, 8], strides = [1, 1]} : vector<17x32xf32> to vector<17x8xf32>
    %90 = vector.extract_strided_slice %35 {offsets = [0, 16], sizes = [17, 8], strides = [1, 1]} : vector<17x32xf32> to vector<17x8xf32>
    %91 = arith.truncf %88 : vector<17x8xf32> to vector<17x8xbf16>
    %92 = arith.truncf %89 : vector<17x8xf32> to vector<17x8xbf16>
    %cst_29 = arith.constant dense<0.000000e+00> : vector<17x17xf32>
    %93 = tpu.matmul %91, %92, %cst_29 {dimension_numbers = #tpu.dot_dimension_numbers<[1], [1], [0], [0], [0, 0, 1, 0], [], []>} : vector<17x8xbf16>, vector<17x8xbf16>, vector<17x17xf32> -> vector<17x17xf32>
    %cst_30 = arith.constant 0.353553385 : f32
    %94 = vector.broadcast %cst_30 : f32 to vector<17x17xf32>
    %95 = arith.mulf %93, %94 : vector<17x17xf32>
    %cst_31 = arith.constant dense<0xFF800000> : vector<17xf32>
    %96 = vector.multi_reduction <maximumf>, %95, %cst_31 [1] : vector<17x17xf32> to vector<17xf32>
    %97 = vector.shape_cast %96 : vector<17xf32> to vector<17x1xf32>
    %98 = vector.broadcast %97 : vector<17x1xf32> to vector<17x17xf32>
    %99 = arith.subf %95, %98 : vector<17x17xf32>
    %100 = math.exp %99 : vector<17x17xf32>
    %cst_32 = arith.constant dense<0.000000e+00> : vector<17xf32>
    %101 = vector.multi_reduction <add>, %100, %cst_32 [1] : vector<17x17xf32> to vector<17xf32>
    %102 = vector.shape_cast %101 : vector<17xf32> to vector<17x1xf32>
    %103 = tpu.reciprocal %102 {approx = true} : vector<17x1xf32> -> vector<17x1xf32>
    %104 = vector.broadcast %103 : vector<17x1xf32> to vector<17x17xf32>
    %105 = arith.mulf %100, %104 : vector<17x17xf32>
    %106 = arith.truncf %105 : vector<17x17xf32> to vector<17x17xbf16>
    %107 = arith.truncf %90 : vector<17x8xf32> to vector<17x8xbf16>
    %cst_33 = arith.constant dense<0.000000e+00> : vector<17x8xf32>
    %108 = tpu.matmul %106, %107, %cst_33 {dimension_numbers = #tpu.dot_dimension_numbers<[1], [0], [0], [1], [0, 0, 1, 1], [], []>} : vector<17x17xbf16>, vector<17x8xbf16>, vector<17x8xf32> -> vector<17x8xf32>
    %109 = vector.extract_strided_slice %36 {offsets = [16, 0], sizes = [8, 32], strides = [1, 1]} : vector<32x32xf32> to vector<8x32xf32>
    %110 = arith.truncf %108 : vector<17x8xf32> to vector<17x8xbf16>
    %111 = arith.truncf %109 : vector<8x32xf32> to vector<8x32xbf16>
    %cst_34 = arith.constant dense<0.000000e+00> : vector<17x32xf32>
    %112 = tpu.matmul %110, %111, %cst_34 {dimension_numbers = #tpu.dot_dimension_numbers<[1], [0], [0], [1], [0, 0, 1, 1], [], []>} : vector<17x8xbf16>, vector<8x32xbf16>, vector<17x32xf32> -> vector<17x32xf32>
    %113 = arith.addf %87, %112 : vector<17x32xf32>
    %114 = vector.extract_strided_slice %33 {offsets = [0, 24], sizes = [17, 8], strides = [1, 1]} : vector<17x32xf32> to vector<17x8xf32>
    %115 = vector.extract_strided_slice %34 {offsets = [0, 24], sizes = [17, 8], strides = [1, 1]} : vector<17x32xf32> to vector<17x8xf32>
    %116 = vector.extract_strided_slice %35 {offsets = [0, 24], sizes = [17, 8], strides = [1, 1]} : vector<17x32xf32> to vector<17x8xf32>
    %117 = arith.truncf %114 : vector<17x8xf32> to vector<17x8xbf16>
    %118 = arith.truncf %115 : vector<17x8xf32> to vector<17x8xbf16>
    %cst_35 = arith.constant dense<0.000000e+00> : vector<17x17xf32>
    %119 = tpu.matmul %117, %118, %cst_35 {dimension_numbers = #tpu.dot_dimension_numbers<[1], [1], [0], [0], [0, 0, 1, 0], [], []>} : vector<17x8xbf16>, vector<17x8xbf16>, vector<17x17xf32> -> vector<17x17xf32>
    %cst_36 = arith.constant 0.353553385 : f32
    %120 = vector.broadcast %cst_36 : f32 to vector<17x17xf32>
    %121 = arith.mulf %119, %120 : vector<17x17xf32>
    %cst_37 = arith.constant dense<0xFF800000> : vector<17xf32>
    %122 = vector.multi_reduction <maximumf>, %121, %cst_37 [1] : vector<17x17xf32> to vector<17xf32>
    %123 = vector.shape_cast %122 : vector<17xf32> to vector<17x1xf32>
    %124 = vector.broadcast %123 : vector<17x1xf32> to vector<17x17xf32>
    %125 = arith.subf %121, %124 : vector<17x17xf32>
    %126 = math.exp %125 : vector<17x17xf32>
    %cst_38 = arith.constant dense<0.000000e+00> : vector<17xf32>
    %127 = vector.multi_reduction <add>, %126, %cst_38 [1] : vector<17x17xf32> to vector<17xf32>
    %128 = vector.shape_cast %127 : vector<17xf32> to vector<17x1xf32>
    %129 = tpu.reciprocal %128 {approx = true} : vector<17x1xf32> -> vector<17x1xf32>
    %130 = vector.broadcast %129 : vector<17x1xf32> to vector<17x17xf32>
    %131 = arith.mulf %126, %130 : vector<17x17xf32>
    %132 = arith.truncf %131 : vector<17x17xf32> to vector<17x17xbf16>
    %133 = arith.truncf %116 : vector<17x8xf32> to vector<17x8xbf16>
    %cst_39 = arith.constant dense<0.000000e+00> : vector<17x8xf32>
    %134 = tpu.matmul %132, %133, %cst_39 {dimension_numbers = #tpu.dot_dimension_numbers<[1], [0], [0], [1], [0, 0, 1, 1], [], []>} : vector<17x17xbf16>, vector<17x8xbf16>, vector<17x8xf32> -> vector<17x8xf32>
    %135 = vector.extract_strided_slice %36 {offsets = [24, 0], sizes = [8, 32], strides = [1, 1]} : vector<32x32xf32> to vector<8x32xf32>
    %136 = arith.truncf %134 : vector<17x8xf32> to vector<17x8xbf16>
    %137 = arith.truncf %135 : vector<8x32xf32> to vector<8x32xbf16>
    %cst_40 = arith.constant dense<0.000000e+00> : vector<17x32xf32>
    %138 = tpu.matmul %136, %137, %cst_40 {dimension_numbers = #tpu.dot_dimension_numbers<[1], [0], [0], [1], [0, 0, 1, 1], [], []>} : vector<17x8xbf16>, vector<8x32xbf16>, vector<17x32xf32> -> vector<17x32xf32>
    %139 = arith.addf %113, %138 : vector<17x32xf32>
    %c0_41 = arith.constant 0 : index
    %c0_42 = arith.constant 0 : index
    %140 = vector.load %arg7[%c0_41, %c0_42] : memref<1x32xf32, #tpu.memory_space<vmem>>, vector<1x32xf32>
    %141 = vector.broadcast %140 : vector<1x32xf32> to vector<17x32xf32>
    %142 = arith.addf %139, %141 : vector<17x32xf32>
    %143 = arith.addf %1, %142 : vector<17x32xf32>
    %c0_43 = arith.constant 0 : index
    %c0_44 = arith.constant 0 : index
    %144 = vector.load %arg8[%c0_43, %c0_44] : memref<1x32xf32, #tpu.memory_space<vmem>>, vector<1x32xf32>
    %c0_45 = arith.constant 0 : index
    %c0_46 = arith.constant 0 : index
    %145 = vector.load %arg9[%c0_45, %c0_46] : memref<1x32xf32, #tpu.memory_space<vmem>>, vector<1x32xf32>
    %cst_47 = arith.constant dense<0.000000e+00> : vector<17xf32>
    %146 = vector.multi_reduction <add>, %143, %cst_47 [1] : vector<17x32xf32> to vector<17xf32>
    %147 = vector.shape_cast %146 : vector<17xf32> to vector<17x1xf32>
    %cst_48 = arith.constant 3.200000e+01 : f32
    %148 = vector.broadcast %cst_48 : f32 to vector<17x1xf32>
    %149 = arith.divf %147, %148 : vector<17x1xf32>
    %150 = vector.broadcast %149 : vector<17x1xf32> to vector<17x32xf32>
    %151 = arith.subf %143, %150 : vector<17x32xf32>
    %152 = arith.mulf %151, %151 : vector<17x32xf32>
    %cst_49 = arith.constant dense<0.000000e+00> : vector<17xf32>
    %153 = vector.multi_reduction <add>, %152, %cst_49 [1] : vector<17x32xf32> to vector<17xf32>
    %154 = vector.shape_cast %153 : vector<17xf32> to vector<17x1xf32>
    %cst_50 = arith.constant 3.200000e+01 : f32
    %155 = vector.broadcast %cst_50 : f32 to vector<17x1xf32>
    %156 = arith.divf %154, %155 : vector<17x1xf32>
    %157 = vector.broadcast %149 : vector<17x1xf32> to vector<17x32xf32>
    %158 = arith.subf %143, %157 : vector<17x32xf32>
    %cst_51 = arith.constant 9.99999997E-7 : f32
    %159 = vector.broadcast %cst_51 : f32 to vector<17x1xf32>
    %160 = arith.addf %156, %159 : vector<17x1xf32>
    %161 = math.rsqrt %160 : vector<17x1xf32>
    %162 = vector.broadcast %161 : vector<17x1xf32> to vector<17x32xf32>
    %163 = arith.mulf %158, %162 : vector<17x32xf32>
    %164 = vector.broadcast %144 : vector<1x32xf32> to vector<17x32xf32>
    %165 = arith.mulf %163, %164 : vector<17x32xf32>
    %166 = vector.broadcast %145 : vector<1x32xf32> to vector<17x32xf32>
    %167 = arith.addf %165, %166 : vector<17x32xf32>
    %c0_52 = arith.constant 0 : index
    %c0_53 = arith.constant 0 : index
    %168 = vector.load %arg10[%c0_52, %c0_53] : memref<32x128xf32, #tpu.memory_space<vmem>>, vector<32x128xf32>
    %169 = arith.truncf %167 : vector<17x32xf32> to vector<17x32xbf16>
    %170 = arith.truncf %168 : vector<32x128xf32> to vector<32x128xbf16>
    %cst_54 = arith.constant dense<0.000000e+00> : vector<17x128xf32>
    %171 = tpu.matmul %169, %170, %cst_54 {dimension_numbers = #tpu.dot_dimension_numbers<[1], [0], [0], [1], [0, 0, 1, 1], [], []>} : vector<17x32xbf16>, vector<32x128xbf16>, vector<17x128xf32> -> vector<17x128xf32>
    %c0_55 = arith.constant 0 : index
    %c0_56 = arith.constant 0 : index
    %172 = vector.load %arg11[%c0_55, %c0_56] : memref<1x128xf32, #tpu.memory_space<vmem>>, vector<1x128xf32>
    %173 = vector.broadcast %172 : vector<1x128xf32> to vector<17x128xf32>
    %174 = arith.addf %171, %173 : vector<17x128xf32>
    %cst_57 = arith.constant 5.000000e-01 : f32
    %175 = vector.broadcast %cst_57 : f32 to vector<17x128xf32>
    %176 = arith.mulf %175, %174 : vector<17x128xf32>
    %cst_58 = arith.constant 4.471500e-02 : f32
    %177 = vector.broadcast %cst_58 : f32 to vector<17x128xf32>
    %178 = arith.mulf %177, %174 : vector<17x128xf32>
    %179 = arith.mulf %178, %174 : vector<17x128xf32>
    %180 = arith.mulf %179, %174 : vector<17x128xf32>
    %181 = arith.addf %174, %180 : vector<17x128xf32>
    %cst_59 = arith.constant 0.797884583 : f32
    %182 = vector.broadcast %cst_59 : f32 to vector<17x128xf32>
    %183 = arith.mulf %182, %181 : vector<17x128xf32>
    %184 = math.tanh %183 : vector<17x128xf32>
    %cst_60 = arith.constant 1.000000e+00 : f32
    %185 = vector.broadcast %cst_60 : f32 to vector<17x128xf32>
    %186 = arith.addf %185, %184 : vector<17x128xf32>
    %187 = arith.mulf %176, %186 : vector<17x128xf32>
    %c0_61 = arith.constant 0 : index
    %c0_62 = arith.constant 0 : index
    %188 = vector.load %arg12[%c0_61, %c0_62] : memref<128x32xf32, #tpu.memory_space<vmem>>, vector<128x32xf32>
    %189 = arith.truncf %187 : vector<17x128xf32> to vector<17x128xbf16>
    %190 = arith.truncf %188 : vector<128x32xf32> to vector<128x32xbf16>
    %cst_63 = arith.constant dense<0.000000e+00> : vector<17x32xf32>
    %191 = tpu.matmul %189, %190, %cst_63 {dimension_numbers = #tpu.dot_dimension_numbers<[1], [0], [0], [1], [0, 0, 1, 1], [], []>} : vector<17x128xbf16>, vector<128x32xbf16>, vector<17x32xf32> -> vector<17x32xf32>
    %c0_64 = arith.constant 0 : index
    %c0_65 = arith.constant 0 : index
    %192 = vector.load %arg13[%c0_64, %c0_65] : memref<1x32xf32, #tpu.memory_space<vmem>>, vector<1x32xf32>
    %193 = vector.broadcast %192 : vector<1x32xf32> to vector<17x32xf32>
    %194 = arith.addf %191, %193 : vector<17x32xf32>
    %195 = arith.addf %143, %194 : vector<17x32xf32>
    %c0_66 = arith.constant 0 : index
    %c0_67 = arith.constant 0 : index
    %c0_68 = arith.constant 0 : index
    %196 = vector.load %arg14[%c0_66, %c0_67, %c0_68] : memref<1x17x32xf32, #tpu.memory_space<vmem>>, vector<1x17x32xf32>
    %197 = vector.shape_cast %196 : vector<1x17x32xf32> to vector<17x32xf32>
    %198 = vector.shape_cast %195 : vector<17x32xf32> to vector<1x17x32xf32>
    tpu.vector_store %arg14[%c0_66, %c0_67, %c0_68], %198 {strides = array<i32>} : memref<1x17x32xf32, #tpu.memory_space<vmem>>, vector<1x17x32xf32>,
    return
  }
  func.func @transform_0(%arg0: i32) -> (i32, i32, i32) {
    %c0_i32 = arith.constant 0 : i32
    %c0_i32_0 = arith.constant 0 : i32
    %c0_i32_1 = arith.constant 0 : i32
    return %arg0, %c0_i32, %c0_i32_0 : i32, i32, i32
  }
  func.func @transform_1(%arg0: i32) -> (i32, i32) {
    %c0_i32 = arith.constant 0 : i32
    %c0_i32_0 = arith.constant 0 : i32
    %c0_i32_1 = arith.constant 0 : i32
    return %c0_i32, %c0_i32_0 : i32, i32
  }
  func.func @transform_2(%arg0: i32) -> (i32, i32) {
    %c0_i32 = arith.constant 0 : i32
    %c0_i32_0 = arith.constant 0 : i32
    %c0_i32_1 = arith.constant 0 : i32
    return %c0_i32, %c0_i32_0 : i32, i32
  }
  func.func @transform_3(%arg0: i32) -> (i32, i32) {
    %c0_i32 = arith.constant 0 : i32
    %c0_i32_0 = arith.constant 0 : i32
    %c0_i32_1 = arith.constant 0 : i32
    return %c0_i32, %c0_i32_0 : i32, i32
  }
  func.func @transform_4(%arg0: i32) -> (i32, i32) {
    %c0_i32 = arith.constant 0 : i32
    %c0_i32_0 = arith.constant 0 : i32
    %c0_i32_1 = arith.constant 0 : i32
    return %c0_i32, %c0_i32_0 : i32, i32
  }
  func.func @transform_5(%arg0: i32) -> (i32, i32) {
    %c0_i32 = arith.constant 0 : i32
    %c0_i32_0 = arith.constant 0 : i32
    %c0_i32_1 = arith.constant 0 : i32
    return %c0_i32, %c0_i32_0 : i32, i32
  }
  func.func @transform_6(%arg0: i32) -> (i32, i32) {
    %c0_i32 = arith.constant 0 : i32
    %c0_i32_0 = arith.constant 0 : i32
    %c0_i32_1 = arith.constant 0 : i32
    return %c0_i32, %c0_i32_0 : i32, i32
  }
  func.func @transform_7(%arg0: i32) -> (i32, i32) {
    %c0_i32 = arith.constant 0 : i32
    %c0_i32_0 = arith.constant 0 : i32
    %c0_i32_1 = arith.constant 0 : i32
    return %c0_i32, %c0_i32_0 : i32, i32
  }
  func.func @transform_8(%arg0: i32) -> (i32, i32) {
    %c0_i32 = arith.constant 0 : i32
    %c0_i32_0 = arith.constant 0 : i32
    %c0_i32_1 = arith.constant 0 : i32
    return %c0_i32, %c0_i32_0 : i32, i32
  }
  func.func @transform_9(%arg0: i32) -> (i32, i32) {
    %c0_i32 = arith.constant 0 : i32
    %c0_i32_0 = arith.constant 0 : i32
    %c0_i32_1 = arith.constant 0 : i32
    return %c0_i32, %c0_i32_0 : i32, i32
  }
  func.func @transform_10(%arg0: i32) -> (i32, i32) {
    %c0_i32 = arith.constant 0 : i32
    %c0_i32_0 = arith.constant 0 : i32
    %c0_i32_1 = arith.constant 0 : i32
    return %c0_i32, %c0_i32_0 : i32, i32
  }
  func.func @transform_11(%arg0: i32) -> (i32, i32) {
    %c0_i32 = arith.constant 0 : i32
    %c0_i32_0 = arith.constant 0 : i32
    %c0_i32_1 = arith.constant 0 : i32
    return %c0_i32, %c0_i32_0 : i32, i32
  }
  func.func @transform_12(%arg0: i32) -> (i32, i32) {
    %c0_i32 = arith.constant 0 : i32
    %c0_i32_0 = arith.constant 0 : i32
    %c0_i32_1 = arith.constant 0 : i32
    return %c0_i32, %c0_i32_0 : i32, i32
  }
  func.func @transform_13(%arg0: i32) -> (i32, i32, i32) {
    %c0_i32 = arith.constant 0 : i32
    %c0_i32_0 = arith.constant 0 : i32
    %c0_i32_1 = arith.constant 0 : i32
    return %arg0, %c0_i32, %c0_i32_0 : i32, i32, i32
  }
}

</mosaic_0001>

<bundles_post_ra>
// kernel: blip_base_forward.3
= control target key start
LH: loop header
LB: loop body
LE: loop exit
PB: predicated region body
PF: predicated region fallthrough
CT: control target
= control target key end

     0   :  { %vm34_vm0 = vcmask 392192   ;;  %vm60_vm1 = vcmask 261120   ;;  %s140_s1 = inlined_call_operand.vmem [shape: f32[48,32], index: 1, kind: input, shape index: {}]   ;;  %s141_s2 = inlined_call_operand.vmem [shape: f32[1,32], index: 2, kind: input, shape index: {}]   ;;  %s142_s0 = inlined_call_operand.vmem [shape: f32[32,48], index: 0, kind: input, shape index: {}]   ;;  %s143_s3 = inlined_call_operand.vmem [shape: f32[32,32], index: 3, kind: output, shape index: {}]  }
   0x1   :  { %v23_v0 = vld [vmem:[%s140_s1 + $0x20] sm:$0xff]  ;;  %v24_v1 = vld [vmem:[%s140_s1 + $0x28] sm:$0xff]  ;;  %v21_v2 = vld [vmem:[%s140_s1 + $0x10] sm:$0xff] }
   0x2   :  { %v29_v3 = vpack.c.bf16 %v24_v1, %v23_v0  ;;  %v22_v4 = vld [vmem:[%s140_s1 + $0x18] sm:$0xff]  ;;  %v19_v6 = vld [vmem:[%s140_s1] sm:$0xff]  ;;  %v20_v7 = vld [vmem:[%s140_s1 + $0x8] sm:$0xff] }
   0x3   :  { %v28_v5 = vpack.c.bf16 %v22_v4, %v21_v2  ;;  %v15_v8 = vld [vmem:[%s142_s0] sm:$0xff]  ;;  %v27_v9 = vpack.c.bf16 %v20_v7, %v19_v6  ;;  %v16_v10 = vld [vmem:[%s142_s0 + $0x8] sm:$0xff]  ;;  %v17_v11 = vld [vmem:[%s142_s0 + $0x10] sm:$0xff] }
   0x4   :  { %46 = vmatpush.bf16.msra.mxu0 %v29_v3  ;;  %71 = vmatpush.bf16.msra.mxu1 %v29_v3  ;;  %v18_v12 = vld [vmem:[%s142_s0 + $0x18] sm:$0xff]  ;;  %v25_v13 = vpack.c.bf16 %v16_v10, %v15_v8  ;;  %v74_v15 = vld [vmem:[%s141_s2] ss:$0 sm:$0xff] }
   0x5   :  { %v26_v14 = vpack.c.bf16 %v18_v12, %v17_v11 }
   0x8   :  { %47 = vmatpush.bf16.msra.mxu0 %v28_v5  ;;  %72 = vmatpush.bf16.msra.mxu1 %v28_v5 }
   0xc   :  { %48 = vmatpush.bf16.msra.mxu0 %v27_v9  ;;  %73 = vmatpush.bf16.msra.mxu1 %v27_v9 }
   0xf   :  { %69 = vmatmul.msk.bf16.vlgmr.msra.gmra.mxu0 %vm34_vm0, %v25_v13  ;;  %70 = vmatmul.msk.bf16.vlgmr.msra.gmra.mxu1 %vm34_vm0, %v26_v14 }
  0x8c   :  { %v50_v16 = vpop.f32.mrf.mxu0  ;;  %v55_v17 = vpop.f32.mrf.mxu1 }
  0x8d   :  { %v51_v18 = vadd.f32 %v74_v15, %v50_v16  ;;  %v56_v19 = vadd.f32 %v74_v15, %v55_v17 }
  0x8f   :  { %61 = vst.msk [vmem:[%s143_s3] sm:$0xff] %vm60_vm1, %v51_v18 }
  0x90   :  { %63 = vst.msk [vmem:[%s143_s3 + $0x10] sm:$0xff] %vm60_vm1, %v56_v19 }
  0x94   :  { %v52_v20 = vpop.f32.mrf.mxu0  ;;  %v57_v21 = vpop.f32.mrf.mxu1 }
  0x95   :  { %v53_v22 = vadd.f32 %v74_v15, %v52_v20  ;;  %v58_v23 = vadd.f32 %v74_v15, %v57_v21 }
  0x97   :  { %62 = vst.msk [vmem:[%s143_s3 + $0x8] sm:$0xff] %vm60_vm1, %v53_v22 }
  0x98   :  { %64 = vst.msk [vmem:[%s143_s3 + $0x18] sm:$0xff] %vm60_vm1, %v58_v23 }

// kernel: blip_base_forward.5
= control target key start
LH: loop header
LB: loop body
LE: loop exit
PB: predicated region body
PF: predicated region fallthrough
CT: control target
= control target key end

     0   :  { %s1781_s18 = smov 0   ;;  %s2139_s0 = inlined_call_operand.vmem [shape: f32[2,17,32], index: 0, kind: input, shape index: {}]   ;;  %s2140_s1 = inlined_call_operand.vmem [shape: f32[1,32], index: 1, kind: input, shape index: {}]   ;;  %s2141_s2 = inlined_call_operand.vmem [shape: f32[1,32], index: 2, kind: input, shape index: {}]   ;;  %s2142_s3 = inlined_call_operand.vmem [shape: f32[32,96], index: 3, kind: input, shape index: {}]   ;;  %s2143_s4 = inlined_call_operand.vmem [shape: f32[1,96], index: 4, kind: input, shape index: {}]   ;;  %s2144_s5 = inlined_call_operand.vmem [shape: f32[32,32], index: 5, kind: input, shape index: {}]   ;;  %s2145_s6 = inlined_call_operand.vmem [shape: f32[1,32], index: 6, kind: input, shape index: {}]   ;;  %s2146_s7 = inlined_call_operand.vmem [shape: f32[1,32], index: 7, kind: input, shape index: {}]   ;;  %s2147_s8 = inlined_call_operand.vmem [shape: f32[1,32], index: 8, kind: input, shape index: {}]   ;;  %s2148_s9 = inlined_call_operand.vmem [shape: f32[32,128], index: 9, kind: input, shape index: {}]   ;;  %s2149_s10 = inlined_call_operand.vmem [shape: f32[1,128], index: 10, kind: input, shape index: {}]   ;;  %s2150_s11 = inlined_call_operand.vmem [shape: f32[128,32], index: 11, kind: input, shape index: {}]   ;;  %s2151_s12 = inlined_call_operand.vmem [shape: f32[1,32], index: 12, kind: input, shape index: {}]   ;;  %s2152_s13 = inlined_call_operand.vmem [shape: f32[1,32], index: 13, kind: input, shape index: {}]   ;;  %s2153_s14 = inlined_call_operand.vmem [shape: f32[1,32], index: 14, kind: input, shape index: {}]   ;;  %s2154_s15 = inlined_call_operand.vmem [shape: f32[2,17,32], index: 15, kind: output, shape index: {}]  }
   0x1 LB: > { %s1535_s19 = sadd.s32 4294967295, %s1686_s18   ;;  %p1539_p0 = scmp.ge.s32.totalorder %s1686_s18, 1  ;;  %s1686_s18 = sphi %s1781_s18, %s25_s18  }
   0x2   : > { %p437_p1 = scmp.lt.s32.totalorder %s1686_s18, 3 }
   0x4   : > { %p438_p2 = pnand %p1539_p0, %p437_p1 }
   0x5   : > { %p485_p3 = scmp.lt.s32.totalorder (!%p438_p2), %s1535_s19, 1  ;;  %s1689_s26 = smov (!%p438_p2), 96  }
   0x6   : > { %441 = sbr.rel (%p438_p2) target bundleno = 2696 (0xa88), region = 80  ;;  %s1690_s27 = smov (!%p438_p2), 64  }
   0x7   : > { %s1692_s28 = smov (!%p438_p2), 88   ;;  %s1693_s29 = smov (!%p438_p2), 72  }
   0x8   : > { %s1694_s30 = smov (!%p438_p2), 80   ;;  %s1695_s16 = smov (!%p438_p2), 112  }
   0x9   : > { %s1696_s17 = smov (!%p438_p2), 120   ;;  %s1697_s21 = smov (!%p438_p2), 104  }
   0xa   : > { %s1698_s24 = smov (!%p438_p2), 56   ;;  %s1699_s25 = smov (!%p438_p2), 48  }
   0xb   : > { %s2156_s19 = smov (!%p485_p3, %s1535_s19), 1  ;;  %vm501_vm0 = vcmask 261120   ;;  %vm508_vm1 = vcmask 253952   ;;  %v1688_v6 = vmov 32.0   ;;  %v590_v28 = vld [vmem:[%s2142_s3 + $0x10] sm:$0xff]  ;;  %v591_v29 = vld [vmem:[%s2142_s3 + $0x18] sm:$0xff] }
   0xc   : > { %s1574_s20 = smul.u32 24, %s2156_s19  ;;  %1606 = vrcp.f32 %v1688_v6  ;;  %v595_v30 = vpack.c.bf16 %v591_v29, %v590_v28  ;;  %v588_v33 = vld [vmem:[%s2142_s3] sm:$0xff]  ;;  %v589_v34 = vld [vmem:[%s2142_s3 + $0x8] sm:$0xff]  ;;  %vm718_vm12 = vcmask 1040384   ;;  %v1691_v28 = vmov 0  }
   0xd   : > { %v594_v35 = vpack.c.bf16 %v589_v34, %v588_v33  ;;  %v1596_v57 = vld [vmem:[%s2140_s1] ss:$0 sm:$0xff]  ;;  %v1859_v29 = vsel %vm718_vm12, 65535, %v1691_v28  ;;  %vm636_vm13 = vcmask 64512   ;;  %vm670_vm14 = vcmask 138240  }
   0xe   : > { %s489_s23 = scalar_lea.vmem %s2139_s0, %s1574_s20  ;;  %612 = vmatpush.bf16.msra.mxu0 %v595_v30  ;;  %vm677_vm15 = vcmask 131072  }
   0xf   : > { %v1797_v0 = vld [vmem:[%s489_s23] sm:$0xff]  ;;  %v1799_v1 = vld [vmem:[%s489_s23 + $0x10] sm:$0x1]  ;;  %v1805_v4 = vld [vmem:[%s489_s23 + $0x8] sm:$0xff] }
  0x10   : > { %v502_v2 = vsel %vm501_vm0, %v1797_v0, 0.0  ;;  %v509_v3 = vsel %vm508_vm1, %v1799_v1, 0.0  ;;  %v505_v5 = vsel %vm501_vm0, %v1805_v4, 0.0 }
  0x11   : > { %503 = vadd.xlane.f32.xlu0 %v502_v2  ;;  %510 = vadd.xlane.f32.xlu1 %v509_v3  ;;  %v1597_v2 = vld [vmem:[%s2141_s2] ss:$0 sm:$0xff] }
  0x12   : > { %v1607_v7 = vpop.eup %1606  ;;  %613 = vmatpush.bf16.msra.mxu0 %v594_v35 }
  0x13   : > { %v513_v8 = vmul.f32 32.0, %v1607_v7  ;;  %vm517_vm2 = vweird.f32 %v1607_v7 }
  0x15   : > { %v514_v9 = vsub.f32 1.0, %v513_v8 }
  0x17   : > { %v515_v10 = vmul.f32 %v1607_v7, %v514_v9 }
  0x19   : > { %506 = vadd.xlane.f32.xlu0 %v505_v5  ;;  %v516_v11 = vadd.f32 %v1607_v7, %v515_v10 }
  0x1b   : > { %v1809_v12 = vsel %vm517_vm2, %v1607_v7, %v516_v11  ;;  %vm862_vm2 = vcmask 1043456  }
  0x84   : > { %v504_v13 = vpop.xlane.xlu0 %503  ;;  %v511_v17 = vpop.xlane.xlu1 %510 }
  0x85   : > { %v519_v14 = vmul.f32 %v1809_v12, %v504_v13  ;;  %v521_v21 = vmul.f32 %v1809_v12, %v511_v17 }
  0x87   : > { %v522_v15 = vsub.f32 %v1797_v0, %v519_v14  ;;  %v1818_v23 = vsub.f32 %v1799_v1, %v521_v21 }
  0x89   : > { %v525_v16 = vmul.f32 %v522_v15, %v522_v15  ;;  %v527_v26 = vmul.f32 %v1818_v23, %v1818_v23 }
  0x8b   : > { %v528_v18 = vsel %vm501_vm0, %v525_v16, 0.0  ;;  %v534_v27 = vsel %vm508_vm1, %v527_v26, 0.0 }
  0x8c   : > { %529 = vadd.xlane.f32.xlu1 %v528_v18  ;;  %v507_v19 = vpop.xlane.xlu0 %506  ;;  %v1598_v18 = vld [vmem:[%s2143_s4] ss:$0 sm:$0xff] }
  0x8d   : > { %v520_v20 = vmul.f32 %v1809_v12, %v507_v19 }
  0x8f   : > { %v523_v22 = vsub.f32 %v1805_v4, %v520_v20 }
  0x91   : > { %v526_v24 = vmul.f32 %v523_v22, %v523_v22 }
  0x93   : > { %v531_v25 = vsel %vm501_vm0, %v526_v24, 0.0 }
  0x94   : > { %532 = vadd.xlane.f32.xlu2 %v531_v25 }
  0x9c   : > { %535 = vadd.xlane.f32.xlu2 %v534_v27 }
  0xff   : > { %v530_v31 = vpop.xlane.xlu1 %529 }
 0x100   : > { %v537_v32 = vmul.f32 %v530_v31, %v1809_v12 }
 0x102   : > { %v540_v36 = vadd.f32 1e-06, %v537_v32 }
 0x104   : > { %1608 = vrsqrt.f32 %v540_v36  ;;  %vm549_vm4 = vweird.f32 %v540_v36 }
 0x107   : > { %v533_v37 = vpop.xlane.xlu2 %532 }
 0x108   : > { %v538_v38 = vmul.f32 %v533_v37, %v1809_v12 }
 0x10a   : > { %v1609_v39 = vpop.eup %1608  ;;  %v541_v40 = vadd.f32 1e-06, %v538_v38 }
 0x10b   : > { %v544_v41 = vmul.f32 %v1609_v39, %v540_v36  ;;  %vm550_vm3 = vweird.f32 %v1609_v39 }
 0x10c   : > { %1610 = vrsqrt.f32 %v541_v40  ;;  %vm551_vm5 = vmor %vm549_vm4, %vm550_vm3  ;;  %vm559_vm7 = vweird.f32 %v541_v40 }
 0x10d   : > { %v545_v42 = vmul.f32 %v1609_v39, %v544_v41 }
 0x10f   : > { %v546_v43 = vmul.f32 0.5, %v545_v42  ;;  %v536_v44 = vpop.xlane.xlu2 %535 }
 0x110   : > { %v539_v45 = vmul.f32 %v536_v44, %v1809_v12 }
 0x111   : > { %v547_v46 = vsub.f32 1.5, %v546_v43 }
 0x112   : > { %v1611_v47 = vpop.eup %1610  ;;  %v542_v48 = vadd.f32 1e-06, %v539_v45 }
 0x113   : > { %v548_v49 = vmul.f32 %v1609_v39, %v547_v46  ;;  %v554_v50 = vmul.f32 %v1611_v47, %v541_v40  ;;  %vm560_vm6 = vweird.f32 %v1611_v47 }
 0x114   : > { %1612 = vrsqrt.f32 %v542_v48  ;;  %vm561_vm8 = vmor %vm559_vm7, %vm560_vm6  ;;  %vm569_vm9 = vweird.f32 %v542_v48 }
 0x115   : > { %v555_v51 = vmul.f32 %v1611_v47, %v554_v50  ;;  %v552_v52 = vsel %vm551_vm5, %v1609_v39, %v548_v49 }
 0x116   : > { %v573_v56 = vmul.f32 %v552_v52, %v522_v15 }
 0x117   : > { %v556_v53 = vmul.f32 0.5, %v555_v51 }
 0x118   : > { %v579_v63 = vmul.f32 %v1596_v57, %v573_v56 }
 0x119   : > { %v557_v54 = vsub.f32 1.5, %v556_v53 }
 0x11a   : > { %v1613_v55 = vpop.eup %1612  ;;  %v585_v7 = vadd.f32 %v1597_v2, %v579_v63 }
 0x11b   : > { %v558_v58 = vmul.f32 %v1611_v47, %v557_v54  ;;  %v564_v59 = vmul.f32 %v1613_v55, %v542_v48  ;;  %vm570_vm10 = vweird.f32 %v1613_v55 }
 0x11c   : > { %vm571_vm11 = vmor %vm569_vm9, %vm570_vm10 }
 0x11d   : > { %v562_v60 = vsel %vm561_vm8, %v1611_v47, %v558_v58  ;;  %v565_v61 = vmul.f32 %v1613_v55, %v564_v59 }
 0x11e   : > { %v574_v62 = vmul.f32 %v562_v60, %v523_v22  ;;  %v624_v60 = vld [vmem:[%s2144_s5] sm:$0xff] }
 0x11f   : > { %v566_v3 = vmul.f32 0.5, %v565_v61  ;;  %v744_v61 = vpack.c.bf16 %v624_v60, %v624_v60 }
 0x120   : > { %v580_v5 = vmul.f32 %v1596_v57, %v574_v62 }
 0x121   : > { %v567_v6 = vsub.f32 1.5, %v566_v3  ;;  %v891_v62 = vsel %vm862_vm2, %v744_v61, 0 }
 0x122   : > { %v586_v8 = vadd.f32 %v1597_v2, %v580_v5 }
 0x123   : > { %v568_v9 = vmul.f32 %v1613_v55, %v567_v6 }
 0x124   : > { %v592_v10 = vpack.c.bf16 %v586_v8, %v585_v7 }
 0x125   : > { %v572_v11 = vsel %vm571_vm11, %v1613_v55, %v568_v9 }
 0x126   : > { %1542 = vmatmul.msk.bf16.vlgmr.msra.gmra.mxu0 %vm501_vm0, %v592_v10  ;;  %v575_v13 = vmul.f32 %v572_v11, %v1818_v23 }
 0x128   : > { %v581_v14 = vmul.f32 %v1596_v57, %v575_v13 }
 0x12a   : > { %v587_v15 = vadd.f32 %v1597_v2, %v581_v14 }
 0x12c   : > { %v593_v16 = vpack.c.bf16 %v587_v15, %v587_v15 }
 0x136   : > { %1543 = vmatmul.msk.bf16.gmra.mxu0 %vm501_vm0, %v593_v16 }
 0x1a3   : > { %v615_v17 = vpop.f32.mrf.mxu0 }
 0x1a4   : > { %v616_v20 = vadd.f32 %v1598_v18, %v615_v17 }
 0x1ab   : > { %v617_v19 = vpop.f32.mrf.mxu0 }
 0x1ac   : > { %v618_v21 = vadd.f32 %v1598_v18, %v617_v19 }
 0x1ae   : > { %v1851_v22 = vpack.c.bf16 %v618_v21, %v616_v20 }
 0x1b0   : > { %632 = vrot.lane.b32.xlu1 %v1851_v22, %s1689_s26 }
 0x1b3   : > { %v620_v24 = vpop.f32.mrf.mxu0 }
 0x1b4   : > { %v621_v23 = vadd.f32 %v1598_v18, %v620_v24 }
 0x1b6   : > { %v1854_v25 = vpack.c.bf16 %v621_v23, %v621_v23 }
 0x1b8   : > { %709 = vrot.lane.b32.xlu1 %v1854_v25, %s1690_s27  ;;  %634 = vrot.lane.b32.xlu0 %v1854_v25, %s1689_s26  ;;  %s1700_s26 = smov 40  }
 0x1bb   : > { %v622_v26 = vpop.f32.mrf.mxu0 }
 0x222   : > { %v633_v27 = vpop.permute.xlu1 %632 }
 0x223   : > { %v644_v34 = vsel %vm636_vm13, %v633_v27, 0 }
 0x22a   : > { %v710_v30 = vpop.permute.xlu1 %709  ;;  %v635_v31 = vpop.permute.xlu0 %634 }
 0x22b   : > { %v647_v32 = vsel %vm636_vm13, %v635_v31, 0  ;;  %v722_v33 = vand.u32 %v1859_v29, %v710_v30 }
 0x22c   : > { %655 = vmatpush.bf16.xpose.msra.mxu1 %v647_v32  ;;  %1572 = vmatpush.bf16.xpose.msra.mxu3 %v647_v32 }
 0x22d   : > { %730 = vmatpush.bf16.msra.mxu2 %v722_v33 }
 0x234   : > { %656 = vmatpush.bf16.xpose.msra.mxu1 %v644_v34  ;;  %1573 = vmatpush.bf16.xpose.msra.mxu3 %v644_v34 }
 0x23b   : > { %1544 = vmatmul.msk.bf16.vlgmr.msra.gmra.mxu1 %vm636_vm13, %v1851_v22  ;;  %1545 = vmatmul.msk.bf16.vlgmr.msra.gmra.mxu3 %vm636_vm13, %v1854_v25 }
 0x23c   : > { %900 = vmatpush.bf16.msrb.mxu1 %v891_v62 }
 0x2b8   : > { %v658_v35 = vpop.f32.mrf.mxu1 }
 0x2b9   : > { %v667_v36 = vmul.f32 0.35355338, %v658_v35 }
 0x2bb   : > { %v671_v37 = vsel %vm670_vm14, %v667_v36, -inf }
 0x2bc   : > { %672 = vmax.xlane.f32.xlu2 %v671_v37 }
 0x2be   : > { %v663_v38 = vpop.f32.mrf.mxu3 }
 0x2bf   : > { %v669_v43 = vmul.f32 0.35355338, %v663_v38 }
 0x2c0   : > { %v660_v39 = vpop.f32.mrf.mxu1 }
 0x2c1   : > { %v668_v40 = vmul.f32 0.35355338, %v660_v39  ;;  %v678_v44 = vsel %vm677_vm15, %v669_v43, -inf }
 0x2c3   : > { %v674_v41 = vsel %vm670_vm14, %v668_v40, -inf }
 0x2c4   : > { %675 = vmax.xlane.f32.xlu2 %v674_v41 }
 0x2c6   : > { %v665_v42 = vpop.f32.mrf.mxu3 }
 0x2cc   : > { %679 = vmax.xlane.f32.xlu2 %v678_v44 }
 0x32f   : > { %v673_v45 = vpop.xlane.xlu2 %672 }
 0x330   : > { %v681_v46 = vsub.f32 %v667_v36, %v673_v45 }
 0x332   : > { %v684_v47 = vmul.f32 1.442695, %v681_v46 }
 0x334   : > { %1614 = vpow2.f32 %v684_v47 }
 0x337   : > { %v676_v48 = vpop.xlane.xlu2 %675 }
 0x338   : > { %v682_v49 = vsub.f32 %v668_v40, %v676_v48 }
 0x33a   : > { %v1615_v50 = vpop.eup %1614  ;;  %v686_v51 = vmul.f32 1.442695, %v682_v49 }
 0x33b   : > { %v690_v52 = vsel %vm670_vm14, %v1615_v50, 0.0 }
 0x33c   : > { %1616 = vpow2.f32 %v686_v51  ;;  %691 = vadd.xlane.f32.xlu0 %v690_v52 }
 0x33f   : > { %v680_v53 = vpop.xlane.xlu2 %679 }
 0x340   : > { %v683_v54 = vsub.f32 %v669_v43, %v680_v53 }
 0x342   : > { %v1617_v55 = vpop.eup %1616  ;;  %v688_v56 = vmul.f32 1.442695, %v683_v54 }
 0x343   : > { %v693_v57 = vsel %vm670_vm14, %v1617_v55, 0.0 }
 0x344   : > { %1618 = vpow2.f32 %v688_v56  ;;  %694 = vadd.xlane.f32.xlu2 %v693_v57 }
 0x34a   : > { %v1619_v58 = vpop.eup %1618 }
 0x34b   : > { %v696_v59 = vsel %vm677_vm15, %v1619_v58, 0.0 }
 0x34c   : > { %697 = vadd.xlane.f32.xlu1 %v696_v59 }
 0x350   : > { %749 = vrot.lane.b32.xlu0 %v1851_v22, %s1692_s28 }
 0x358   : > { %1058 = vrot.lane.b32.xlu0 %v1854_v25, %s1693_s29 }
 0x35c   : > { %707 = vrot.lane.b32.xlu2 %v1851_v22, %s1690_s27 }
 0x360   : > { %1056 = vrot.lane.b32.xlu0 %v1851_v22, %s1693_s29  ;;  %s494_s29 = scalar_lea.vmem %s2154_s15, %s1574_s20 }
 0x364   : > { %751 = vrot.lane.b32.xlu2 %v1854_v25, %s1692_s28 }
 0x365   : > { %917 = vrot.lane.b32.xlu1 %v1854_v25, %s1694_s30 }
 0x368   : > { %913 = vrot.lane.b32.xlu0 %v1854_v25, %s1695_s16 }
 0x36c   : > { %745 = vrot.lane.b32.xlu2 %v1851_v22, %s1696_s17 }
 0x36d   : > { %1054 = vrot.lane.b32.xlu1 %v1854_v25, %s1697_s21 }
 0x374   : > { %747 = vrot.lane.b32.xlu2 %v1854_v25, %s1696_s17 }
 0x37c   : > { %915 = vrot.lane.b32.xlu2 %v1851_v22, %s1694_s30 }
 0x384   : > { %911 = vrot.lane.b32.xlu2 %v1851_v22, %s1695_s16 }
 0x38c   : > { %1052 = vrot.lane.b32.xlu2 %v1851_v22, %s1697_s21 }
 0x3af   : > { %v692_v63 = vpop.xlane.xlu0 %691 }
 0x3b0   : > { %1620 = vrcp.f32 %v692_v63 }
 0x3b6   : > { %v1621_v3 = vpop.eup %1620 }
 0x3b7   : > { %v695_v2 = vpop.xlane.xlu2 %694  ;;  %v702_v7 = vmul.f32 %v1621_v3, %v1615_v50 }
 0x3b8   : > { %1622 = vrcp.f32 %v695_v2 }
 0x3be   : > { %v1623_v5 = vpop.eup %1622 }
 0x3bf   : > { %v708_v6 = vpop.permute.xlu2 %707  ;;  %v703_v8 = vmul.f32 %v1623_v5, %v1617_v55  ;;  %v698_v9 = vpop.xlane.xlu1 %697 }
 0x3c0   : > { %731 = vmatpush.bf16.msra.mxu2 %v708_v6  ;;  %1624 = vrcp.f32 %v698_v9 }
 0x3c1   : > { %v705_v10 = vpack.c.bf16 %v703_v8, %v702_v7 }
 0x3c2   : > { %v750_v11 = vpop.permute.xlu0 %749 }
 0x3c3   : > { %1546 = vmatmul.msk.bf16.vlgmr.msra.gmra.mxu2 %vm670_vm14, %v705_v10  ;;  %v760_v20 = vsel %vm636_vm13, %v750_v11, 0 }
 0x3c6   : > { %v1625_v15 = vpop.eup %1624 }
 0x3c7   : > { %v752_v13 = vpop.permute.xlu2 %751  ;;  %v704_v18 = vmul.f32 %v1625_v15, %v1619_v58 }
 0x3c8   : > { %v763_v14 = vsel %vm636_vm13, %v752_v13, 0 }
 0x3c9   : > { %771 = vmatpush.bf16.xpose.msrb.mxu3 %v763_v14  ;;  %v706_v21 = vpack.c.bf16 %v704_v18, %v704_v18 }
 0x3ca   : > { %v1059_v16 = vpop.permute.xlu0 %1058 }
 0x3cb   : > { %v1070_v17 = vsel %vm636_vm13, %v1059_v16, 0 }
 0x3cc   : > { %1078 = vmatpush.bf16.xpose.msra.mxu1 %v1070_v17 }
 0x3cf   : > { %v746_v19 = vpop.permute.xlu2 %745 }
 0x3d1   : > { %772 = vmatpush.bf16.xpose.msrb.mxu3 %v760_v20 }
 0x3d2   : > { %v1057_v24 = vpop.permute.xlu0 %1056 }
 0x3d3   : > { %v1067_v23 = vsel %vm636_vm13, %v1057_v24, 0  ;;  %1547 = vmatmul.msk.bf16.gmra.mxu2 %vm670_vm14, %v706_v21 }
 0x3d4   : > { %1079 = vmatpush.bf16.xpose.msra.mxu1 %v1067_v23 }
 0x3d7   : > { %v918_v26 = vpop.permute.xlu1 %917  ;;  %v748_v27 = vpop.permute.xlu2 %747 }
 0x3d8   : > { %v929_v28 = vsel %vm636_vm13, %v918_v26, 0  ;;  %1548 = vmatmul.msk.bf16.vlgmr.msrb.gmra.mxu3 %vm636_vm13, %v746_v19 }
 0x3d9   : > { %937 = vmatpush.bf16.xpose.msra.mxu3 %v929_v28 }
 0x3da   : > { %v914_v33 = vpop.permute.xlu0 %913 }
 0x3df   : > { %v916_v30 = vpop.permute.xlu2 %915  ;;  %v1055_v54 = vpop.permute.xlu1 %1054 }
 0x3e0   : > { %v926_v31 = vsel %vm636_vm13, %v916_v30, 0 }
 0x3e1   : > { %938 = vmatpush.bf16.xpose.msra.mxu3 %v926_v31 }
 0x3e7   : > { %v912_v32 = vpop.permute.xlu2 %911 }
 0x3e8   : > { %1549 = vmatmul.msk.bf16.gmra.mxu3 %vm636_vm13, %v748_v27 }
 0x3ef   : > { %v1053_v49 = vpop.permute.xlu2 %1052 }
 0x3f8   : > { %1556 = vmatmul.msk.bf16.vlgmr.msra.gmra.mxu3 %vm636_vm13, %v912_v32 }
 0x408   : > { %1557 = vmatmul.msk.bf16.gmra.mxu3 %vm636_vm13, %v914_v33 }
 0x446   : > { %v733_v34 = vpop.f32.mrf.mxu2 }
 0x44e   : > { %v735_v35 = vpop.f32.mrf.mxu2 }
 0x44f   : > { %v742_v36 = vpack.c.bf16 %v735_v35, %v733_v34 }
 0x451   : > { %1554 = vmatmul.msk.bf16.vlgmr.msrb.gmra.mxu1 %vm636_vm13, %v742_v36 }
 0x456   : > { %v738_v37 = vpop.f32.mrf.mxu2 }
 0x457   : > { %v743_v42 = vpack.c.bf16 %v738_v37, %v738_v37 }
 0x45b   : > { %v774_v38 = vpop.f32.mrf.mxu3 }
 0x45c   : > { %v783_v39 = vmul.f32 0.35355338, %v774_v38 }
 0x45e   : > { %v740_v40 = vpop.f32.mrf.mxu2  ;;  %v786_v41 = vsel %vm670_vm14, %v783_v39, -inf }
 0x45f   : > { %787 = vmax.xlane.f32.xlu2 %v786_v41 }
 0x461   : > { %1555 = vmatmul.msk.bf16.gmra.mxu1 %vm636_vm13, %v743_v42 }
 0x463   : > { %v776_v43 = vpop.f32.mrf.mxu3 }
 0x464   : > { %v784_v44 = vmul.f32 0.35355338, %v776_v43 }
 0x466   : > { %v789_v45 = vsel %vm670_vm14, %v784_v44, -inf }
 0x467   : > { %790 = vmax.xlane.f32.xlu0 %v789_v45 }
 0x46b   : > { %v779_v46 = vpop.f32.mrf.mxu3 }
 0x46c   : > { %v785_v47 = vmul.f32 0.35355338, %v779_v46 }
 0x46e   : > { %v792_v48 = vsel %vm677_vm15, %v785_v47, -inf }
 0x46f   : > { %793 = vmax.xlane.f32.xlu1 %v792_v48 }
 0x471   : > { %1562 = vmatmul.msk.bf16.vlgmr.msra.gmra.mxu1 %vm636_vm13, %v1053_v49 }
 0x473   : > { %v781_v50 = vpop.f32.mrf.mxu3 }
 0x47b   : > { %v940_v51 = vpop.f32.mrf.mxu3 }
 0x47c   : > { %v949_v52 = vmul.f32 0.35355338, %v940_v51 }
 0x47e   : > { %v952_v53 = vsel %vm670_vm14, %v949_v52, -inf }
 0x47f   : > { %953 = vmax.xlane.f32.xlu2 %v952_v53 }
 0x481   : > { %1563 = vmatmul.msk.bf16.gmra.mxu1 %vm636_vm13, %v1055_v54 }
 0x483   : > { %v942_v55 = vpop.f32.mrf.mxu3 }
 0x484   : > { %v950_v56 = vmul.f32 0.35355338, %v942_v55 }
 0x486   : > { %v955_v57 = vsel %vm670_vm14, %v950_v56, -inf }
 0x487   : > { %956 = vmax.xlane.f32.xlu0 %v955_v57 }
 0x48b   : > { %v945_v58 = vpop.f32.mrf.mxu3 }
 0x48c   : > { %v1934_v27 = vmul.f32 0.35355338, %v945_v58 }
 0x48e   : > { %v958_v30 = vsel %vm677_vm15, %v1934_v27, -inf }
 0x493   : > { %v947_v59 = vpop.f32.mrf.mxu3 }
 0x4ce   : > { %v1913_v60 = vpop.f32.mrf.mxu1 }
 0x4d2   : > { %v788_v61 = vpop.xlane.xlu2 %787 }
 0x4d3   : > { %v795_v62 = vsub.f32 %v783_v39, %v788_v61 }
 0x4d5   : > { %v798_v63 = vmul.f32 1.442695, %v795_v62 }
 0x4d6   : > { %v1915_v2 = vpop.f32.mrf.mxu1 }
 0x4d7   : > { %1626 = vpow2.f32 %v798_v63 }
 0x4da   : > { %v791_v3 = vpop.xlane.xlu0 %790 }
 0x4db   : > { %v796_v5 = vsub.f32 %v784_v44, %v791_v3 }
 0x4dd   : > { %v1917_v6 = vpop.eup %1626  ;;  %v800_v7 = vmul.f32 1.442695, %v796_v5 }
 0x4de   : > { %v1919_v8 = vpop.f32.mrf.mxu1  ;;  %v804_v9 = vsel %vm670_vm14, %v1917_v6, 0.0 }
 0x4df   : > { %1628 = vpow2.f32 %v800_v7  ;;  %805 = vadd.xlane.f32.xlu0 %v804_v9 }
 0x4e2   : > { %v794_v11 = vpop.xlane.xlu1 %793 }
 0x4e3   : > { %v797_v15 = vsub.f32 %v785_v47, %v794_v11 }
 0x4e5   : > { %v1923_v10 = vpop.eup %1628  ;;  %v802_v16 = vmul.f32 1.442695, %v797_v15 }
 0x4e6   : > { %v909_v13 = vpop.f32.mrf.mxu1  ;;  %v807_v14 = vsel %vm670_vm14, %v1923_v10, 0.0 }
 0x4e7   : > { %808 = vadd.xlane.f32.xlu1 %v807_v14  ;;  %1630 = vpow2.f32 %v802_v16 }
 0x4ed   : > { %v1929_v20 = vpop.eup %1630 }
 0x4ee   : > { %v1081_v17 = vpop.f32.mrf.mxu1  ;;  %v810_v23 = vsel %vm677_vm15, %v1929_v20, 0.0 }
 0x4ef   : > { %v1090_v18 = vmul.f32 0.35355338, %v1081_v17 }
 0x4f1   : > { %v1093_v19 = vsel %vm670_vm14, %v1090_v18, -inf }
 0x4f2   : > { %1094 = vmax.xlane.f32.xlu1 %v1093_v19  ;;  %v954_v32 = vpop.xlane.xlu2 %953 }
 0x4f3   : > { %821 = vrot.lane.b32.xlu0 %v1851_v22, %s1698_s24  ;;  %v961_v33 = vsub.f32 %v949_v52, %v954_v32 }
 0x4f5   : > { %v964_v34 = vmul.f32 1.442695, %v961_v33  ;;  %v625_v33 = vld [vmem:[%s2144_s5 + $0x8] sm:$0xff] }
 0x4f6   : > { %v1083_v21 = vpop.f32.mrf.mxu1 }
 0x4f7   : > { %v1091_v24 = vmul.f32 0.35355338, %v1083_v21  ;;  %1632 = vpow2.f32 %v964_v34  ;;  %v855_v34 = vpack.c.bf16 %v625_v33, %v625_v33 }
 0x4f9   : > { %v1096_v26 = vsel %vm670_vm14, %v1091_v24, -inf }
 0x4fa   : > { %811 = vadd.xlane.f32.xlu1 %v810_v23  ;;  %1097 = vmax.xlane.f32.xlu2 %v1096_v26  ;;  %v957_v37 = vpop.xlane.xlu0 %956 }
 0x4fb   : > { %v962_v38 = vsub.f32 %v950_v56, %v957_v37 }
 0x4fd   : > { %v1939_v35 = vpop.eup %1632  ;;  %v966_v39 = vmul.f32 1.442695, %v962_v38 }
 0x4fe   : > { %v1086_v28 = vpop.f32.mrf.mxu1  ;;  %v970_v36 = vsel %vm670_vm14, %v1939_v35, 0.0 }
 0x4ff   : > { %1634 = vpow2.f32 %v966_v39  ;;  %v1947_v42 = vmul.f32 0.35355338, %v1086_v28 }
 0x501   : > { %v1099_v43 = vsel %vm677_vm15, %v1947_v42, -inf }
 0x502   : > { %959 = vmax.xlane.f32.xlu1 %v958_v30 }
 0x505   : > { %v1635_v40 = vpop.eup %1634 }
 0x506   : > { %v1088_v31 = vpop.f32.mrf.mxu1  ;;  %v973_v41 = vsel %vm670_vm14, %v1635_v40, 0.0 }
 0x512   : > { %823 = vrot.lane.b32.xlu2 %v1854_v25, %s1698_s24 }
 0x51b   : > { %989 = vrot.lane.b32.xlu1 %v1854_v25, %s1699_s25 }
 0x51d   : > { %971 = vadd.xlane.f32.xlu0 %v970_v36 }
 0x531   : > { %1130 = vrot.lane.b32.xlu0 %v1854_v25, %s1700_s26 }
 0x53b   : > { %974 = vadd.xlane.f32.xlu2 %v973_v41 }
 0x545   : > { %1100 = vmax.xlane.f32.xlu1 %v1099_v43 }
 0x552   : > { %v806_v49 = vpop.xlane.xlu0 %805 }
 0x553   : > { %987 = vrot.lane.b32.xlu2 %v1851_v22, %s1699_s25 }
 0x55a   : > { %v809_v44 = vpop.xlane.xlu1 %808 }
 0x565   : > { %v1095_v45 = vpop.xlane.xlu1 %1094  ;;  %v822_v62 = vpop.permute.xlu0 %821 }
 0x566   : > { %v1102_v46 = vsub.f32 %v1090_v18, %v1095_v45 }
 0x568   : > { %v1105_v47 = vmul.f32 1.442695, %v1102_v46 }
 0x56a   : > { %1636 = vpow2.f32 %v1105_v47 }
 0x56b   : > { %1638 = vrcp.f32 %v809_v44 }
 0x56c   : > { %1640 = vrcp.f32 %v806_v49 }
 0x56d   : > { %v1098_v48 = vpop.xlane.xlu2 %1097  ;;  %v812_v63 = vpop.xlane.xlu1 %811 }
 0x56e   : > { %v1103_v25 = vsub.f32 %v1091_v24, %v1098_v48 }
 0x570   : > { %v1952_v50 = vpop.eup %1636  ;;  %v1107_v51 = vmul.f32 1.442695, %v1103_v25  ;;  %v626_v25 = vld [vmem:[%s2144_s5 + $0x10] sm:$0xff] }
 0x571   : > { %v1111_v52 = vsel %vm670_vm14, %v1952_v50, 0.0  ;;  %v1639_v54 = vpop.eup %1638 }
 0x572   : > { %1642 = vpow2.f32 %v1107_v51  ;;  %1112 = vadd.xlane.f32.xlu1 %v1111_v52  ;;  %v1641_v56 = vpop.eup %1640  ;;  %v817_v58 = vmul.f32 %v1639_v54, %v1923_v10  ;;  %v1021_v51 = vpack.c.bf16 %v626_v25, %v626_v25 }
 0x573   : > { %v816_v61 = vmul.f32 %v1641_v56, %v1917_v6  ;;  %1644 = vrcp.f32 %v812_v63 }
 0x575   : > { %v824_v53 = vpop.permute.xlu2 %823  ;;  %v819_v3 = vpack.c.bf16 %v817_v58, %v816_v61  ;;  %v960_v5 = vpop.xlane.xlu1 %959 }
 0x576   : > { %v833_v55 = vand.u32 %v824_v53, %v1859_v29  ;;  %v963_v16 = vsub.f32 %v1934_v27, %v960_v5 }
 0x578   : > { %v1643_v57 = vpop.eup %1642  ;;  %841 = vmatpush.bf16.msrb.mxu0 %v833_v55  ;;  %v968_v18 = vmul.f32 1.442695, %v963_v16 }
 0x579   : > { %v1114_v59 = vsel %vm670_vm14, %v1643_v57, 0.0  ;;  %v1645_v7 = vpop.eup %1644 }
 0x57a   : > { %1115 = vadd.xlane.f32.xlu1 %v1114_v59  ;;  %v818_v9 = vmul.f32 %v1645_v7, %v1929_v20 }
 0x57c   : > { %842 = vmatpush.bf16.msrb.mxu0 %v822_v62  ;;  %v820_v13 = vpack.c.bf16 %v818_v9, %v818_v9 }
 0x57f   : > { %1550 = vmatmul.msk.bf16.vlgmr.msrb.gmra.mxu0 %vm670_vm14, %v819_v3  ;;  %v627_v3 = vld [vmem:[%s2144_s5 + $0x18] sm:$0xff] }
 0x580   : > { %v1162_v5 = vpack.c.bf16 %v627_v3, %v627_v3  ;;  %v1283_v3 = vld [vmem:[%s2148_s9] sm:$0xff] }
 0x582   : > { %v1170_v7 = vsel %vm862_vm2, %v1162_v5, 0  ;;  %v1284_v5 = vld [vmem:[%s2148_s9 + $0x8] sm:$0xff] }
 0x58d   : > { %v990_v11 = vpop.permute.xlu1 %989 }
 0x58e   : > { %v999_v10 = vand.u32 %v990_v11, %v1859_v29 }
 0x58f   : > { %1551 = vmatmul.msk.bf16.gmra.mxu0 %vm670_vm14, %v820_v13 }
 0x590   : > { %1007 = vmatpush.bf16.msra.mxu0 %v999_v10  ;;  %v972_v6 = vpop.xlane.xlu0 %971 }
 0x591   : > { %1646 = vrcp.f32 %v972_v6 }
 0x593   : > { %1128 = vrot.lane.b32.xlu1 %v1851_v22, %s1700_s26 }
 0x597   : > { %v1647_v19 = vpop.eup %1646 }
 0x598   : > { %v982_v21 = vmul.f32 %v1647_v19, %v1939_v35  ;;  %v864_v35 = vsel %vm862_vm2, %v855_v34, 0 }
 0x599   : > { %873 = vmatpush.bf16.msrb.mxu2 %v864_v35 }
 0x5a3   : > { %v1131_v14 = vpop.permute.xlu0 %1130 }
 0x5a4   : > { %v1140_v15 = vand.u32 %v1131_v14, %v1859_v29 }
 0x5a6   : > { %1148 = vmatpush.bf16.msrb.mxu3 %v1140_v15 }
 0x5ae   : > { %v975_v17 = vpop.xlane.xlu2 %974 }
 0x5af   : > { %1648 = vrcp.f32 %v975_v17 }
 0x5b0   : > { %1650 = vpow2.f32 %v968_v18 }
 0x5b5   : > { %v1649_v20 = vpop.eup %1648 }
 0x5b6   : > { %v983_v24 = vmul.f32 %v1649_v20, %v1635_v40  ;;  %v988_v23 = vpop.permute.xlu2 %987  ;;  %v1651_v28 = vpop.eup %1650 }
 0x5b7   : > { %1008 = vmatpush.bf16.msra.mxu0 %v988_v23  ;;  %v976_v30 = vsel %vm677_vm15, %v1651_v28, 0.0 }
 0x5b8   : > { %v985_v22 = vpack.c.bf16 %v983_v24, %v982_v21  ;;  %v1101_v26 = vpop.xlane.xlu1 %1100 }
 0x5b9   : > { %v1104_v29 = vsub.f32 %v1947_v42, %v1101_v26  ;;  %v1599_v26 = vld [vmem:[%s2145_s6] ss:$0 sm:$0xff] }
 0x5ba   : > { %1558 = vmatmul.msk.bf16.vlgmr.msra.gmra.mxu0 %vm670_vm14, %v985_v22 }
 0x5bb   : > { %v1109_v27 = vmul.f32 1.442695, %v1104_v29  ;;  %1179 = vmatpush.bf16.msrb.mxu0 %v1170_v7  ;;  %v1289_v7 = vpack.c.bf16 %v1284_v5, %v1283_v3  ;;  %v1351_v3 = vld [vmem:[%s2150_s11 + $0x28] sm:$0xff] }
 0x5bd   : > { %1652 = vpow2.f32 %v1109_v27  ;;  %977 = vadd.xlane.f32.xlu1 %v976_v30 }
 0x5c3   : > { %v1653_v31 = vpop.eup %1652 }
 0x5c4   : > { %v1117_v32 = vsel %vm677_vm15, %v1653_v31, 0.0 }
 0x5c5   : > { %1118 = vadd.xlane.f32.xlu0 %v1117_v32 }
 0x5e5   : > { %v1113_v36 = vpop.xlane.xlu1 %1112 }
 0x5ed   : > { %v1116_v37 = vpop.xlane.xlu1 %1115 }
 0x5ee   : > { %1654 = vrcp.f32 %v1116_v37 }
 0x5ef   : > { %1656 = vrcp.f32 %v1113_v36 }
 0x5f4   : > { %v1655_v39 = vpop.eup %1654 }
 0x5f5   : > { %v1657_v40 = vpop.eup %1656  ;;  %v1124_v41 = vmul.f32 %v1655_v39, %v1643_v57 }
 0x5f6   : > { %v1123_v43 = vmul.f32 %v1657_v40, %v1952_v50  ;;  %v1029_v50 = vsel %vm862_vm2, %v1021_v51, 0 }
 0x5f7   : > { %1038 = vmatpush.bf16.msra.mxu2 %v1029_v50 }
 0x5f8   : > { %v1126_v46 = vpack.c.bf16 %v1124_v41, %v1123_v43 }
 0x5fc   : > { %v844_v38 = vpop.f32.mrf.mxu0 }
 0x604   : > { %v846_v42 = vpop.f32.mrf.mxu0 }
 0x605   : > { %v853_v44 = vpack.c.bf16 %v846_v42, %v844_v38  ;;  %v1129_v45 = vpop.permute.xlu1 %1128 }
 0x606   : > { %1149 = vmatpush.bf16.msrb.mxu3 %v1129_v45 }
 0x607   : > { %1552 = vmatmul.msk.bf16.vlgmr.msrb.gmra.mxu2 %vm636_vm13, %v853_v44 }
 0x609   : > { %1564 = vmatmul.msk.bf16.vlgmr.msrb.gmra.mxu3 %vm670_vm14, %v1126_v46 }
 0x60c   : > { %v849_v47 = vpop.f32.mrf.mxu0 }
 0x60d   : > { %v854_v49 = vpack.c.bf16 %v849_v47, %v849_v47 }
 0x614   : > { %v851_v48 = vpop.f32.mrf.mxu0 }
 0x617   : > { %1553 = vmatmul.msk.bf16.gmra.mxu2 %vm636_vm13, %v854_v49 }
 0x630   : > { %v978_v52 = vpop.xlane.xlu1 %977 }
 0x631   : > { %1658 = vrcp.f32 %v978_v52 }
 0x637   : > { %v1659_v53 = vpop.eup %1658  ;;  %v1010_v54 = vpop.f32.mrf.mxu0 }
 0x638   : > { %v1119_v55 = vpop.xlane.xlu0 %1118  ;;  %v984_v56 = vmul.f32 %v1659_v53, %v1651_v28 }
 0x639   : > { %1660 = vrcp.f32 %v1119_v55 }
 0x63a   : > { %v986_v57 = vpack.c.bf16 %v984_v56, %v984_v56 }
 0x63c   : > { %1559 = vmatmul.msk.bf16.gmra.mxu0 %vm670_vm14, %v986_v57 }
 0x63f   : > { %v1661_v58 = vpop.eup %1660  ;;  %v1012_v59 = vpop.f32.mrf.mxu0 }
 0x640   : > { %v1019_v61 = vpack.c.bf16 %v1012_v59, %v1010_v54  ;;  %v1125_v62 = vmul.f32 %v1661_v58, %v1653_v31  ;;  %v1285_v58 = vld [vmem:[%s2148_s9 + $0x10] sm:$0xff]  ;;  %v1286_v59 = vld [vmem:[%s2148_s9 + $0x18] sm:$0xff] }
 0x642   : > { %1560 = vmatmul.msk.bf16.vlgmr.msra.gmra.mxu2 %vm636_vm13, %v1019_v61  ;;  %v1127_v63 = vpack.c.bf16 %v1125_v62, %v1125_v62  ;;  %v1290_v61 = vpack.c.bf16 %v1286_v59, %v1285_v58  ;;  %v1352_v59 = vld [vmem:[%s2150_s11 + $0x30] sm:$0xff] }
 0x644   : > { %1565 = vmatmul.msk.bf16.gmra.mxu3 %vm670_vm14, %v1127_v63  ;;  %1307 = vmatpush.bf16.msrb.mxu2 %v1290_v61  ;;  %v1353_v61 = vld [vmem:[%s2150_s11 + $0x38] sm:$0xff] }
 0x648   : > { %1308 = vmatpush.bf16.msrb.mxu2 %v1289_v7  ;;  %v1348_v7 = vld [vmem:[%s2150_s11 + $0x10] sm:$0xff] }
 0x68a   : > { %v875_v9 = vpop.f32.mrf.mxu2 }
 0x68b   : > { %v903_v23 = vadd.f32 %v1913_v60, %v875_v9 }
 0x68c   : > { %v1151_v11 = vpop.f32.mrf.mxu3 }
 0x692   : > { %v877_v13 = vpop.f32.mrf.mxu2 }
 0x693   : > { %v905_v31 = vadd.f32 %v1915_v2, %v877_v13 }
 0x694   : > { %v1153_v10 = vpop.f32.mrf.mxu3 }
 0x695   : > { %v1160_v6 = vpack.c.bf16 %v1153_v10, %v1151_v11 }
 0x697   : > { %1566 = vmatmul.msk.bf16.vlgmr.msrb.gmra.mxu0 %vm636_vm13, %v1160_v6 }
 0x69a   : > { %v880_v14 = vpop.f32.mrf.mxu2 }
 0x69b   : > { %v908_v2 = vadd.f32 %v1919_v8, %v880_v14 }
 0x6a2   : > { %v882_v15 = vpop.f32.mrf.mxu2 }
 0x6b9   : > { %v1015_v16 = vpop.f32.mrf.mxu0 }
 0x6ba   : > { %v1020_v17 = vpack.c.bf16 %v1015_v16, %v1015_v16 }
 0x6bc   : > { %1561 = vmatmul.msk.bf16.gmra.mxu2 %vm636_vm13, %v1020_v17 }
 0x6c1   : > { %v1017_v18 = vpop.f32.mrf.mxu0 }
 0x6c5   : > { %v1040_v24 = vpop.f32.mrf.mxu2 }
 0x6c6   : > { %v1049_v22 = vadd.f32 %v1040_v24, %v903_v23 }
 0x6c7   : > { %v1156_v19 = vpop.f32.mrf.mxu3 }
 0x6c8   : > { %v1161_v20 = vpack.c.bf16 %v1156_v19, %v1156_v19 }
 0x6ca   : > { %1567 = vmatmul.msk.bf16.gmra.mxu0 %vm636_vm13, %v1161_v20 }
 0x6cd   : > { %v1042_v30 = vpop.f32.mrf.mxu2 }
 0x6ce   : > { %v1050_v33 = vadd.f32 %v1042_v30, %v905_v31  ;;  %v1601_v30 = vld [vmem:[%s2147_s8] ss:$0 sm:$0xff] }
 0x6cf   : > { %v1158_v21 = vpop.f32.mrf.mxu3 }
 0x714   : > { %v1181_v28 = vpop.f32.mrf.mxu0 }
 0x715   : > { %v1190_v29 = vadd.f32 %v1181_v28, %v1049_v22 }
 0x717   : > { %v1197_v27 = vadd.f32 %v1599_v26, %v1190_v29 }
 0x719   : > { %v2001_v32 = vadd.f32 %v1197_v27, %v1797_v0 }
 0x71b   : > { %v1205_v34 = vsel %vm501_vm0, %v2001_v32, 0.0 }
 0x71c   : > { %1206 = vadd.xlane.f32.xlu2 %v1205_v34  ;;  %v1183_v60 = vpop.f32.mrf.mxu0 }
 0x71d   : > { %v1191_v35 = vadd.f32 %v1183_v60, %v1050_v33 }
 0x71f   : > { %v1198_v36 = vadd.f32 %v1599_v26, %v1191_v35 }
 0x721   : > { %v2006_v37 = vadd.f32 %v1198_v36, %v1805_v4 }
 0x723   : > { %v1208_v38 = vsel %vm501_vm0, %v2006_v37, 0.0 }
 0x724   : > { %1209 = vadd.xlane.f32.xlu1 %v1208_v38 }
 0x73f   : > { %v1045_v39 = vpop.f32.mrf.mxu2 }
 0x740   : > { %v1051_v0 = vadd.f32 %v1045_v39, %v908_v2 }
 0x747   : > { %v1047_v40 = vpop.f32.mrf.mxu2  ;;  %v1186_v41 = vpop.f32.mrf.mxu0 }
 0x748   : > { %v1192_v42 = vadd.f32 %v1186_v41, %v1051_v0 }
 0x74a   : > { %v1199_v43 = vadd.f32 %v1599_v26, %v1192_v42  ;;  %v1600_v26 = vld [vmem:[%s2146_s7] ss:$0 sm:$0xff] }
 0x74c   : > { %v2012_v44 = vadd.f32 %v1199_v43, %v1799_v1 }
 0x74e   : > { %v1211_v45 = vsel %vm508_vm1, %v2012_v44, 0.0 }
 0x74f   : > { %1212 = vadd.xlane.f32.xlu0 %v1211_v45  ;;  %v1188_v4 = vpop.f32.mrf.mxu0 }
 0x78f   : > { %v1207_v46 = vpop.xlane.xlu2 %1206 }
 0x790   : > { %v1214_v47 = vmul.f32 %v1207_v46, %v1809_v12 }
 0x792   : > { %v1217_v48 = vsub.f32 %v2001_v32, %v1214_v47 }
 0x794   : > { %v1220_v49 = vmul.f32 %v1217_v48, %v1217_v48 }
 0x796   : > { %v1223_v8 = vsel %vm501_vm0, %v1220_v49, 0.0 }
 0x797   : > { %1224 = vadd.xlane.f32.xlu1 %v1223_v8  ;;  %v1210_v25 = vpop.xlane.xlu1 %1209  ;;  %v1360_v8 = vld [vmem:[%s2150_s11 + $0x70] sm:$0xff] }
 0x798   : > { %v1215_v51 = vmul.f32 %v1210_v25, %v1809_v12  ;;  %v1361_v25 = vld [vmem:[%s2150_s11 + $0x78] sm:$0xff] }
 0x79a   : > { %v1218_v1 = vsub.f32 %v2006_v37, %v1215_v51  ;;  %v1371_v51 = vpack.c.bf16 %v1361_v25, %v1360_v8  ;;  %v1603_v25 = vld [vmem:[%s2151_s12] ss:$0 sm:$0xff] }
 0x79c   : > { %v1221_v50 = vmul.f32 %v1218_v1, %v1218_v1  ;;  %1376 = vmatpush.bf16.msrb.mxu1 %v1371_v51 }
 0x79e   : > { %v1226_v52 = vsel %vm501_vm0, %v1221_v50, 0.0  ;;  %v1359_v50 = vld [vmem:[%s2150_s11 + $0x68] sm:$0xff] }
 0x79f   : > { %1227 = vadd.xlane.f32.xlu2 %v1226_v52 }
 0x7c2   : > { %v1213_v53 = vpop.xlane.xlu0 %1212 }
 0x7c3   : > { %v1216_v54 = vmul.f32 %v1213_v53, %v1809_v12  ;;  %v1356_v53 = vld [vmem:[%s2150_s11 + $0x50] sm:$0xff] }
 0x7c5   : > { %v2024_v55 = vsub.f32 %v2012_v44, %v1216_v54  ;;  %v1357_v54 = vld [vmem:[%s2150_s11 + $0x58] sm:$0xff] }
 0x7c7   : > { %v1222_v56 = vmul.f32 %v2024_v55, %v2024_v55 }
 0x7c9   : > { %v1229_v57 = vsel %vm508_vm1, %v1222_v56, 0.0  ;;  %v1354_v56 = vld [vmem:[%s2150_s11 + $0x40] sm:$0xff] }
 0x7ca   : > { %1230 = vadd.xlane.f32.xlu0 %v1229_v57  ;;  %v1355_v57 = vld [vmem:[%s2150_s11 + $0x48] sm:$0xff] }
 0x7cb   : > { %v1368_v58 = vpack.c.bf16 %v1355_v57, %v1354_v56 }
 0x80a   : > { %v1225_v62 = vpop.xlane.xlu1 %1224 }
 0x80b   : > { %v1232_v63 = vmul.f32 %v1225_v62, %v1809_v12  ;;  %v1367_v62 = vpack.c.bf16 %v1353_v61, %v1352_v59 }
 0x80d   : > { %v1235_v9 = vadd.f32 1e-06, %v1232_v63  ;;  %v1350_v63 = vld [vmem:[%s2150_s11 + $0x20] sm:$0xff] }
 0x80e   : > { %v1366_v5 = vpack.c.bf16 %v1351_v3, %v1350_v63 }
 0x80f   : > { %1662 = vrsqrt.f32 %v1235_v9  ;;  %vm1244_vm4 = vweird.f32 %v1235_v9 }
 0x812   : > { %v1228_v11 = vpop.xlane.xlu2 %1227 }
 0x813   : > { %v1233_v13 = vmul.f32 %v1228_v11, %v1809_v12 }
 0x815   : > { %v1663_v10 = vpop.eup %1662  ;;  %v1236_v6 = vadd.f32 1e-06, %v1233_v13  ;;  %v1346_v13 = vld [vmem:[%s2150_s11] sm:$0xff] }
 0x816   : > { %v1239_v14 = vmul.f32 %v1663_v10, %v1235_v9  ;;  %vm1245_vm3 = vweird.f32 %v1663_v10  ;;  %v1349_v9 = vld [vmem:[%s2150_s11 + $0x18] sm:$0xff] }
 0x817   : > { %1664 = vrsqrt.f32 %v1236_v6  ;;  %vm1246_vm5 = vmor %vm1244_vm4, %vm1245_vm3  ;;  %vm1254_vm7 = vweird.f32 %v1236_v6  ;;  %v1365_v11 = vpack.c.bf16 %v1349_v9, %v1348_v7 }
 0x818   : > { %v1240_v15 = vmul.f32 %v1663_v10, %v1239_v14  ;;  %v1602_v14 = vld [vmem:[%s2149_s10] ss:$0 sm:$0xff] }
 0x81a   : > { %v1241_v16 = vmul.f32 0.5, %v1240_v15 }
 0x81c   : > { %v1242_v17 = vsub.f32 1.5, %v1241_v16 }
 0x81d   : > { %v1665_v18 = vpop.eup %1664 }
 0x81e   : > { %v1243_v19 = vmul.f32 %v1663_v10, %v1242_v17  ;;  %v1249_v20 = vmul.f32 %v1665_v18, %v1236_v6  ;;  %vm1255_vm6 = vweird.f32 %v1665_v18 }
 0x81f   : > { %vm1256_vm8 = vmor %vm1254_vm7, %vm1255_vm6 }
 0x820   : > { %v1250_v21 = vmul.f32 %v1665_v18, %v1249_v20  ;;  %v1247_v24 = vsel %vm1246_vm5, %v1663_v10, %v1243_v19  ;;  %v1347_v10 = vld [vmem:[%s2150_s11 + $0x8] sm:$0xff] }
 0x821   : > { %v1268_v28 = vmul.f32 %v1247_v24, %v1217_v48  ;;  %v1364_v6 = vpack.c.bf16 %v1347_v10, %v1346_v13 }
 0x822   : > { %v1251_v23 = vmul.f32 0.5, %v1250_v21 }
 0x823   : > { %v1274_v31 = vmul.f32 %v1600_v26, %v1268_v28 }
 0x824   : > { %v1252_v22 = vsub.f32 1.5, %v1251_v23 }
 0x825   : > { %v1280_v60 = vadd.f32 %v1601_v30, %v1274_v31 }
 0x826   : > { %v1253_v29 = vmul.f32 %v1665_v18, %v1252_v22 }
 0x828   : > { %v1257_v27 = vsel %vm1256_vm8, %v1665_v18, %v1253_v29 }
 0x829   : > { %v1269_v33 = vmul.f32 %v1257_v27, %v1218_v1  ;;  %v1358_v1 = vld [vmem:[%s2150_s11 + $0x60] sm:$0xff] }
 0x82a   : > { %v1370_v52 = vpack.c.bf16 %v1359_v50, %v1358_v1 }
 0x82b   : > { %v1275_v34 = vmul.f32 %v1600_v26, %v1269_v33 }
 0x82c   : > { %1377 = vmatpush.bf16.msrb.mxu1 %v1370_v52 }
 0x82d   : > { %v1281_v35 = vadd.f32 %v1601_v30, %v1275_v34 }
 0x82f   : > { %v1287_v36 = vpack.c.bf16 %v1281_v35, %v1280_v60 }
 0x831   : > { %1568 = vmatmul.msk.bf16.vlgmr.msrb.gmra.mxu2 %vm501_vm0, %v1287_v36 }
 0x83d   : > { %v1231_v38 = vpop.xlane.xlu0 %1230 }
 0x83e   : > { %v1234_v39 = vmul.f32 %v1231_v38, %v1809_v12 }
 0x840   : > { %v1237_v2 = vadd.f32 1e-06, %v1234_v39 }
 0x842   : > { %1666 = vrsqrt.f32 %v1237_v2  ;;  %vm1264_vm10 = vweird.f32 %v1237_v2 }
 0x848   : > { %v1667_v0 = vpop.eup %1666 }
 0x849   : > { %v1259_v40 = vmul.f32 %v1667_v0, %v1237_v2  ;;  %vm1265_vm9 = vweird.f32 %v1667_v0 }
 0x84a   : > { %vm1266_vm11 = vmor %vm1264_vm10, %vm1265_vm9 }
 0x84b   : > { %v1260_v41 = vmul.f32 %v1667_v0, %v1259_v40 }
 0x84d   : > { %v1261_v42 = vmul.f32 0.5, %v1260_v41 }
 0x84f   : > { %v1262_v43 = vsub.f32 1.5, %v1261_v42 }
 0x851   : > { %v1263_v45 = vmul.f32 %v1667_v0, %v1262_v43 }
 0x853   : > { %v1267_v4 = vsel %vm1266_vm11, %v1667_v0, %v1263_v45 }
 0x854   : > { %v1270_v46 = vmul.f32 %v1267_v4, %v2024_v55  ;;  %v1369_v55 = vpack.c.bf16 %v1357_v54, %v1356_v53 }
 0x856   : > { %v1276_v47 = vmul.f32 %v1600_v26, %v1270_v46  ;;  %1378 = vmatpush.bf16.msrb.mxu1 %v1369_v55 }
 0x858   : > { %v1282_v48 = vadd.f32 %v1601_v30, %v1276_v47 }
 0x85a   : > { %v1288_v49 = vpack.c.bf16 %v1282_v48, %v1282_v48  ;;  %1379 = vmatpush.bf16.msrb.mxu1 %v1368_v58 }
 0x85c   : > { %1569 = vmatmul.msk.bf16.gmra.mxu2 %vm501_vm0, %v1288_v49 }
 0x85e   : > { %1380 = vmatpush.bf16.msrb.mxu1 %v1367_v62 }
 0x862   : > { %1381 = vmatpush.bf16.msrb.mxu1 %v1366_v5 }
 0x866   : > { %1382 = vmatpush.bf16.msrb.mxu1 %v1365_v11 }
 0x86a   : > { %1383 = vmatpush.bf16.msrb.mxu1 %v1364_v6 }
 0x8b4   : > { %v1310_v15 = vpop.f32.mrf.mxu2 }
 0x8b5   : > { %v1311_v16 = vadd.f32 %v1602_v14, %v1310_v15 }
 0x8b7   : > { %v1322_v17 = vmul.f32 0.044715, %v1311_v16  ;;  %v1319_v34 = vmul.f32 0.5, %v1311_v16 }
 0x8b9   : > { %v1325_v18 = vmul.f32 %v1322_v17, %v1311_v16 }
 0x8bb   : > { %v1328_v19 = vmul.f32 %v1325_v18, %v1311_v16 }
 0x8bc   : > { %v1312_v20 = vpop.f32.mrf.mxu2 }
 0x8bd   : > { %v1331_v21 = vadd.f32 %v1328_v19, %v1311_v16  ;;  %v1313_v24 = vadd.f32 %v1602_v14, %v1312_v20 }
 0x8bf   : > { %v1323_v23 = vmul.f32 0.044715, %v1313_v24  ;;  %v1334_v22 = vmul.f32 0.7978846, %v1331_v21  ;;  %v1320_v60 = vmul.f32 0.5, %v1313_v24 }
 0x8c1   : > { %v1326_v26 = vmul.f32 %v1323_v23, %v1313_v24  ;;  %1668 = vtanh.f32 %v1334_v22 }
 0x8c3   : > { %v1329_v28 = vmul.f32 %v1326_v26, %v1313_v24 }
 0x8c5   : > { %v1332_v29 = vadd.f32 %v1329_v28, %v1313_v24 }
 0x8c7   : > { %v1335_v27 = vmul.f32 0.7978846, %v1332_v29  ;;  %v1669_v30 = vpop.eup %1668 }
 0x8c8   : > { %v1340_v31 = vadd.f32 1.0, %v1669_v30 }
 0x8c9   : > { %1670 = vtanh.f32 %v1335_v27 }
 0x8ca   : > { %v1343_v36 = vmul.f32 %v1340_v31, %v1319_v34 }
 0x8cf   : > { %v1671_v33 = vpop.eup %1670 }
 0x8d0   : > { %v1341_v35 = vadd.f32 1.0, %v1671_v33  ;;  %v1604_v33 = vld [vmem:[%s2152_s13] ss:$0 sm:$0xff] }
 0x8d2   : > { %v1344_v38 = vmul.f32 %v1341_v35, %v1320_v60  ;;  %v1605_v35 = vld [vmem:[%s2153_s14] ss:$0 sm:$0xff] }
 0x8d4   : > { %v1362_v39 = vpack.c.bf16 %v1344_v38, %v1343_v36 }
 0x8d6   : > { %1384 = vmatmul.bf16.vlgmr.msrb.gmra.mxu1 %v1362_v39 }
 0x8df   : > { %v1315_v2 = vpop.f32.mrf.mxu2 }
 0x8e0   : > { %v1316_v0 = vadd.f32 %v1602_v14, %v1315_v2 }
 0x8e2   : > { %v1324_v40 = vmul.f32 0.044715, %v1316_v0  ;;  %v1321_v47 = vmul.f32 0.5, %v1316_v0 }
 0x8e4   : > { %v1327_v41 = vmul.f32 %v1324_v40, %v1316_v0 }
 0x8e6   : > { %v1330_v42 = vmul.f32 %v1327_v41, %v1316_v0 }
 0x8e7   : > { %v1317_v43 = vpop.f32.mrf.mxu2 }
 0x8e8   : > { %v1333_v45 = vadd.f32 %v1330_v42, %v1316_v0 }
 0x8ea   : > { %v1336_v4 = vmul.f32 0.7978846, %v1333_v45 }
 0x8ec   : > { %1672 = vtanh.f32 %v1336_v4 }
 0x8f2   : > { %v1673_v46 = vpop.eup %1672 }
 0x8f3   : > { %v1342_v48 = vadd.f32 1.0, %v1673_v46 }
 0x8f5   : > { %v1345_v49 = vmul.f32 %v1342_v48, %v1321_v47 }
 0x8f7   : > { %v1363_v8 = vpack.c.bf16 %v1345_v49, %v1345_v49 }
 0x8f9   : > { %1389 = vmatmul.bf16.gmra.mxu1 %v1363_v8 }
 0x953   : > { %v1385_v51 = vpop.f32.mrf.mxu1 }
 0x954   : > { %v1386_v1 = vadd.f32 %v1603_v25, %v1385_v51 }
 0x956   : > { %v1394_v50 = vadd.f32 %v1386_v1, %v2001_v32 }
 0x958   : > { %v1399_v52 = vsel %vm501_vm0, %v1394_v50, 0.0 }
 0x959   : > { %1400 = vadd.xlane.f32.xlu1 %v1399_v52 }
 0x95b   : > { %v1387_v53 = vpop.f32.mrf.mxu1 }
 0x95c   : > { %v1388_v54 = vadd.f32 %v1603_v25, %v1387_v53 }
 0x95e   : > { %v1395_v55 = vadd.f32 %v1388_v54, %v2006_v37 }
 0x960   : > { %v1402_v56 = vsel %vm501_vm0, %v1395_v55, 0.0 }
 0x961   : > { %1403 = vadd.xlane.f32.xlu2 %v1402_v56 }
 0x976   : > { %v1390_v57 = vpop.f32.mrf.mxu1 }
 0x977   : > { %v1391_v58 = vadd.f32 %v1603_v25, %v1390_v57 }
 0x979   : > { %v1396_v59 = vadd.f32 %v1391_v58, %v2012_v44 }
 0x97b   : > { %v1405_v61 = vsel %vm508_vm1, %v1396_v59, 0.0 }
 0x97c   : > { %1406 = vadd.xlane.f32.xlu0 %v1405_v61 }
 0x97e   : > { %v1392_v62 = vpop.f32.mrf.mxu1 }
 0x9cc   : > { %v1401_v63 = vpop.xlane.xlu1 %1400 }
 0x9cd   : > { %v1408_v32 = vmul.f32 %v1401_v63, %v1809_v12 }
 0x9cf   : > { %v1411_v3 = vsub.f32 %v1394_v50, %v1408_v32 }
 0x9d1   : > { %v1414_v5 = vmul.f32 %v1411_v3, %v1411_v3 }
 0x9d3   : > { %v1417_v7 = vsel %vm501_vm0, %v1414_v5, 0.0 }
 0x9d4   : > { %v1404_v9 = vpop.xlane.xlu2 %1403  ;;  %1418 = vadd.xlane.f32.xlu1 %v1417_v7 }
 0x9d5   : > { %v1409_v37 = vmul.f32 %v1404_v9, %v1809_v12 }
 0x9d7   : > { %v1412_v11 = vsub.f32 %v1395_v55, %v1409_v37 }
 0x9d9   : > { %v1415_v13 = vmul.f32 %v1412_v11, %v1412_v11 }
 0x9db   : > { %v1420_v10 = vsel %vm501_vm0, %v1415_v13, 0.0 }
 0x9dc   : > { %1421 = vadd.xlane.f32.xlu2 %v1420_v10 }
 0x9ef   : > { %v1407_v44 = vpop.xlane.xlu0 %1406 }
 0x9f0   : > { %v1410_v6 = vmul.f32 %v1407_v44, %v1809_v12 }
 0x9f2   : > { %v1413_v14 = vsub.f32 %v1396_v59, %v1410_v6 }
 0x9f4   : > { %v1416_v15 = vmul.f32 %v1413_v14, %v1413_v14 }
 0x9f6   : > { %v1423_v16 = vsel %vm508_vm1, %v1416_v15, 0.0 }
 0x9f7   : > { %1424 = vadd.xlane.f32.xlu0 %v1423_v16 }
 0xa47   : > { %v1419_v17 = vpop.xlane.xlu1 %1418 }
 0xa48   : > { %v1426_v18 = vmul.f32 %v1419_v17, %v1809_v12 }
 0xa4a   : > { %v1429_v19 = vadd.f32 1e-06, %v1426_v18 }
 0xa4c   : > { %1674 = vrsqrt.f32 %v1429_v19  ;;  %vm1438_vm13 = vweird.f32 %v1429_v19 }
 0xa4f   : > { %v1422_v20 = vpop.xlane.xlu2 %1421 }
 0xa50   : > { %v1427_v21 = vmul.f32 %v1422_v20, %v1809_v12 }
 0xa52   : > { %v1675_v24 = vpop.eup %1674  ;;  %v1430_v23 = vadd.f32 1e-06, %v1427_v21 }
 0xa53   : > { %v1433_v22 = vmul.f32 %v1675_v24, %v1429_v19  ;;  %vm1439_vm12 = vweird.f32 %v1675_v24 }
 0xa54   : > { %1676 = vrsqrt.f32 %v1430_v23  ;;  %vm1440_vm14 = vmor %vm1438_vm13, %vm1439_vm12  ;;  %vm1448_vm2 = vweird.f32 %v1430_v23 }
 0xa55   : > { %v1434_v26 = vmul.f32 %v1675_v24, %v1433_v22 }
 0xa57   : > { %v1435_v28 = vmul.f32 0.5, %v1434_v26 }
 0xa59   : > { %v1436_v29 = vsub.f32 1.5, %v1435_v28 }
 0xa5a   : > { %v1677_v27 = vpop.eup %1676 }
 0xa5b   : > { %v1437_v30 = vmul.f32 %v1675_v24, %v1436_v29  ;;  %v1443_v31 = vmul.f32 %v1677_v27, %v1430_v23  ;;  %vm1449_vm15 = vweird.f32 %v1677_v27 }
 0xa5c   : > { %vm1450_vm3 = vmor %vm1448_vm2, %vm1449_vm15 }
 0xa5d   : > { %v1441_v34 = vsel %vm1440_vm14, %v1675_v24, %v1437_v30  ;;  %v1444_v60 = vmul.f32 %v1677_v27, %v1443_v31 }
 0xa5e   : > { %v1462_v36 = vmul.f32 %v1441_v34, %v1411_v3 }
 0xa5f   : > { %v1445_v38 = vmul.f32 0.5, %v1444_v60 }
 0xa60   : > { %v1468_v39 = vmul.f32 %v1604_v33, %v1462_v36 }
 0xa61   : > { %v1446_v2 = vsub.f32 1.5, %v1445_v38 }
 0xa62   : > { %v1474_v0 = vadd.f32 %v1605_v35, %v1468_v39 }
 0xa63   : > { %v1447_v40 = vmul.f32 %v1677_v27, %v1446_v2 }
 0xa64   : > { %1477 = vst.msk [vmem:[%s494_s29] sm:$0xff] %vm501_vm0, %v1474_v0 }
 0xa65   : > { %v1451_v41 = vsel %vm1450_vm3, %v1677_v27, %v1447_v40 }
 0xa66   : > { %v1463_v42 = vmul.f32 %v1451_v41, %v1412_v11 }
 0xa68   : > { %v1469_v43 = vmul.f32 %v1604_v33, %v1463_v42 }
 0xa6a   : > { %v1475_v45 = vadd.f32 %v1605_v35, %v1469_v43  ;;  %v1425_v4 = vpop.xlane.xlu0 %1424 }
 0xa6b   : > { %v1428_v46 = vmul.f32 %v1425_v4, %v1809_v12 }
 0xa6c   : > { %1478 = vst.msk [vmem:[%s494_s29 + $0x8] sm:$0xff] %vm501_vm0, %v1475_v45 }
 0xa6d   : > { %v1431_v47 = vadd.f32 1e-06, %v1428_v46 }
 0xa6f   : > { %1678 = vrsqrt.f32 %v1431_v47  ;;  %vm1458_vm5 = vweird.f32 %v1431_v47 }
 0xa75   : > { %v1679_v48 = vpop.eup %1678 }
 0xa76   : > { %v1453_v49 = vmul.f32 %v1679_v48, %v1431_v47  ;;  %vm1459_vm4 = vweird.f32 %v1679_v48 }
 0xa77   : > { %vm1460_vm6 = vmor %vm1458_vm5, %vm1459_vm4 }
 0xa78   : > { %v1454_v8 = vmul.f32 %v1679_v48, %v1453_v49 }
 0xa7a   : > { %v1455_v25 = vmul.f32 0.5, %v1454_v8 }
 0xa7c   : > { %v1456_v51 = vsub.f32 1.5, %v1455_v25 }
 0xa7e   : > { %v1457_v1 = vmul.f32 %v1679_v48, %v1456_v51 }
 0xa80   : > { %v1461_v50 = vsel %vm1460_vm6, %v1679_v48, %v1457_v1 }
 0xa81   : > { %v1464_v52 = vmul.f32 %v1461_v50, %v1413_v14 }
 0xa83   : > { %v1470_v53 = vmul.f32 %v1604_v33, %v1464_v52 }
 0xa85   : > { %v1476_v54 = vadd.f32 %v1605_v35, %v1470_v53 }
 0xa87   : > { %1479 = vst.msk [vmem:[%s494_s29 + $0x10] sm:$0x1] %vm508_vm1, %v1476_v54 }
 0xa88 PF: > { %s25_s18 = sadd.s32 1, %s1686_s18  }
 0xa89   : > { %p22_p4 = scmp.ge.s32.totalorder %s25_s18, 4  }
 0xa8b   :  { %24 = sbr.rel (!%p22_p4) target bundleno = 1 (0x1), region = 110 }

// kernel: blip_base_forward.4
= control target key start
LH: loop header
LB: loop body
LE: loop exit
PB: predicated region body
PF: predicated region fallthrough
CT: control target
= control target key end

     0   :  { %s1629_s25 = smov 0   ;;  %s1969_s0 = inlined_call_operand.vmem [shape: f32[2,17,32], index: 0, kind: input, shape index: {}]   ;;  %s1970_s1 = inlined_call_operand.vmem [shape: f32[1,32], index: 1, kind: input, shape index: {}]   ;;  %s1971_s2 = inlined_call_operand.vmem [shape: f32[1,32], index: 2, kind: input, shape index: {}]   ;;  %s1972_s3 = inlined_call_operand.vmem [shape: f32[32,96], index: 3, kind: input, shape index: {}]   ;;  %s1973_s4 = inlined_call_operand.vmem [shape: f32[1,96], index: 4, kind: input, shape index: {}]   ;;  %s1974_s5 = inlined_call_operand.vmem [shape: f32[32,32], index: 5, kind: input, shape index: {}]   ;;  %s1975_s6 = inlined_call_operand.vmem [shape: f32[1,32], index: 6, kind: input, shape index: {}]   ;;  %s1976_s7 = inlined_call_operand.vmem [shape: f32[1,32], index: 7, kind: input, shape index: {}]   ;;  %s1977_s8 = inlined_call_operand.vmem [shape: f32[1,32], index: 8, kind: input, shape index: {}]   ;;  %s1978_s9 = inlined_call_operand.vmem [shape: f32[32,128], index: 9, kind: input, shape index: {}]   ;;  %s1979_s10 = inlined_call_operand.vmem [shape: f32[1,128], index: 10, kind: input, shape index: {}]   ;;  %s1980_s11 = inlined_call_operand.vmem [shape: f32[128,32], index: 11, kind: input, shape index: {}]   ;;  %s1981_s12 = inlined_call_operand.vmem [shape: f32[1,32], index: 12, kind: input, shape index: {}]   ;;  %s1982_s13 = inlined_call_operand.vmem [shape: f32[2,17,32], index: 13, kind: output, shape index: {}]  }
   0x1 LB: > { %s1401_s26 = sadd.s32 4294967295, %s1544_s25   ;;  %p1405_p0 = scmp.ge.s32.totalorder %s1544_s25, 1  ;;  %s1544_s25 = sphi %s1629_s25, %s23_s25  }
   0x2   : > { %p387_p1 = scmp.lt.s32.totalorder %s1544_s25, 3 }
   0x4   : > { %p388_p2 = pnand %p1405_p0, %p387_p1 }
   0x5   : > { %p431_p3 = scmp.lt.s32.totalorder (!%p388_p2), %s1401_s26, 1  ;;  %s1547_s14 = smov (!%p388_p2), 96  }
   0x6   : > { %391 = sbr.rel (%p388_p2) target bundleno = 2431 (0x97f), region = 72  ;;  %s1548_s15 = smov (!%p388_p2), 64  }
   0x7   : > { %s1550_s16 = smov (!%p388_p2), 88   ;;  %s1551_s17 = smov (!%p388_p2), 72  }
   0x8   : > { %s1552_s18 = smov (!%p388_p2), 80   ;;  %s1553_s19 = smov (!%p388_p2), 112  }
   0x9   : > { %s1554_s20 = smov (!%p388_p2), 120   ;;  %s1555_s21 = smov (!%p388_p2), 104  }
   0xa   : > { %s1556_s24 = smov (!%p388_p2), 56   ;;  %s1557_s28 = smov (!%p388_p2), 48  }
   0xb   : > { %s1984_s26 = smov (!%p431_p3, %s1401_s26), 1  ;;  %vm447_vm0 = vcmask 261120   ;;  %vm454_vm1 = vcmask 253952   ;;  %v1546_v6 = vmov 32.0   ;;  %v536_v28 = vld [vmem:[%s1972_s3 + $0x10] sm:$0xff]  ;;  %v537_v29 = vld [vmem:[%s1972_s3 + $0x18] sm:$0xff] }
   0xc   : > { %s1440_s27 = smul.u32 24, %s1984_s26  ;;  %1470 = vrcp.f32 %v1546_v6  ;;  %v541_v30 = vpack.c.bf16 %v537_v29, %v536_v28  ;;  %v534_v33 = vld [vmem:[%s1972_s3] sm:$0xff]  ;;  %v535_v34 = vld [vmem:[%s1972_s3 + $0x8] sm:$0xff]  ;;  %vm664_vm12 = vcmask 1040384   ;;  %v1549_v28 = vmov 0   ;;  %s1558_s29 = smov 40  }
   0xd   : > { %v540_v35 = vpack.c.bf16 %v535_v34, %v534_v33  ;;  %v1462_v57 = vld [vmem:[%s1970_s1] ss:$0 sm:$0xff]  ;;  %v1707_v29 = vsel %vm664_vm12, 65535, %v1549_v28  ;;  %vm582_vm13 = vcmask 64512   ;;  %vm616_vm14 = vcmask 138240  }
   0xe   : > { %s435_s30 = scalar_lea.vmem %s1969_s0, %s1440_s27  ;;  %558 = vmatpush.bf16.msra.mxu0 %v541_v30  ;;  %vm623_vm15 = vcmask 131072  }
   0xf   : > { %v1645_v0 = vld [vmem:[%s435_s30] sm:$0xff]  ;;  %v1647_v1 = vld [vmem:[%s435_s30 + $0x10] sm:$0x1]  ;;  %v1653_v4 = vld [vmem:[%s435_s30 + $0x8] sm:$0xff] }
  0x10   : > { %v448_v2 = vsel %vm447_vm0, %v1645_v0, 0.0  ;;  %v455_v3 = vsel %vm454_vm1, %v1647_v1, 0.0  ;;  %v451_v5 = vsel %vm447_vm0, %v1653_v4, 0.0 }
  0x11   : > { %449 = vadd.xlane.f32.xlu0 %v448_v2  ;;  %456 = vadd.xlane.f32.xlu1 %v455_v3  ;;  %v1463_v2 = vld [vmem:[%s1971_s2] ss:$0 sm:$0xff] }
  0x12   : > { %v1471_v7 = vpop.eup %1470  ;;  %559 = vmatpush.bf16.msra.mxu0 %v540_v35 }
  0x13   : > { %v459_v8 = vmul.f32 32.0, %v1471_v7  ;;  %vm463_vm2 = vweird.f32 %v1471_v7 }
  0x15   : > { %v460_v9 = vsub.f32 1.0, %v459_v8 }
  0x17   : > { %v461_v10 = vmul.f32 %v1471_v7, %v460_v9 }
  0x19   : > { %452 = vadd.xlane.f32.xlu0 %v451_v5  ;;  %v462_v11 = vadd.f32 %v1471_v7, %v461_v10 }
  0x1b   : > { %v1657_v12 = vsel %vm463_vm2, %v1471_v7, %v462_v11  ;;  %vm808_vm2 = vcmask 1043456  }
  0x84   : > { %v450_v13 = vpop.xlane.xlu0 %449  ;;  %v457_v17 = vpop.xlane.xlu1 %456 }
  0x85   : > { %v465_v14 = vmul.f32 %v1657_v12, %v450_v13  ;;  %v467_v21 = vmul.f32 %v1657_v12, %v457_v17 }
  0x87   : > { %v468_v15 = vsub.f32 %v1645_v0, %v465_v14  ;;  %v1666_v23 = vsub.f32 %v1647_v1, %v467_v21 }
  0x89   : > { %v471_v16 = vmul.f32 %v468_v15, %v468_v15  ;;  %v473_v26 = vmul.f32 %v1666_v23, %v1666_v23 }
  0x8b   : > { %v474_v18 = vsel %vm447_vm0, %v471_v16, 0.0  ;;  %v480_v27 = vsel %vm454_vm1, %v473_v26, 0.0 }
  0x8c   : > { %475 = vadd.xlane.f32.xlu1 %v474_v18  ;;  %v453_v19 = vpop.xlane.xlu0 %452  ;;  %v1464_v18 = vld [vmem:[%s1973_s4] ss:$0 sm:$0xff] }
  0x8d   : > { %v466_v20 = vmul.f32 %v1657_v12, %v453_v19 }
  0x8f   : > { %v469_v22 = vsub.f32 %v1653_v4, %v466_v20 }
  0x91   : > { %v472_v24 = vmul.f32 %v469_v22, %v469_v22 }
  0x93   : > { %v477_v25 = vsel %vm447_vm0, %v472_v24, 0.0 }
  0x94   : > { %478 = vadd.xlane.f32.xlu2 %v477_v25 }
  0x9c   : > { %481 = vadd.xlane.f32.xlu2 %v480_v27 }
  0xff   : > { %v476_v31 = vpop.xlane.xlu1 %475 }
 0x100   : > { %v483_v32 = vmul.f32 %v476_v31, %v1657_v12 }
 0x102   : > { %v486_v36 = vadd.f32 1e-06, %v483_v32 }
 0x104   : > { %1472 = vrsqrt.f32 %v486_v36  ;;  %vm495_vm4 = vweird.f32 %v486_v36 }
 0x107   : > { %v479_v37 = vpop.xlane.xlu2 %478 }
 0x108   : > { %v484_v38 = vmul.f32 %v479_v37, %v1657_v12 }
 0x10a   : > { %v1473_v39 = vpop.eup %1472  ;;  %v487_v40 = vadd.f32 1e-06, %v484_v38 }
 0x10b   : > { %v490_v41 = vmul.f32 %v1473_v39, %v486_v36  ;;  %vm496_vm3 = vweird.f32 %v1473_v39 }
 0x10c   : > { %1474 = vrsqrt.f32 %v487_v40  ;;  %vm497_vm5 = vmor %vm495_vm4, %vm496_vm3  ;;  %vm505_vm7 = vweird.f32 %v487_v40 }
 0x10d   : > { %v491_v42 = vmul.f32 %v1473_v39, %v490_v41 }
 0x10f   : > { %v492_v43 = vmul.f32 0.5, %v491_v42  ;;  %v482_v44 = vpop.xlane.xlu2 %481 }
 0x110   : > { %v485_v45 = vmul.f32 %v482_v44, %v1657_v12 }
 0x111   : > { %v493_v46 = vsub.f32 1.5, %v492_v43 }
 0x112   : > { %v1475_v47 = vpop.eup %1474  ;;  %v488_v48 = vadd.f32 1e-06, %v485_v45 }
 0x113   : > { %v494_v49 = vmul.f32 %v1473_v39, %v493_v46  ;;  %v500_v50 = vmul.f32 %v1475_v47, %v487_v40  ;;  %vm506_vm6 = vweird.f32 %v1475_v47 }
 0x114   : > { %1476 = vrsqrt.f32 %v488_v48  ;;  %vm507_vm8 = vmor %vm505_vm7, %vm506_vm6  ;;  %vm515_vm9 = vweird.f32 %v488_v48 }
 0x115   : > { %v501_v51 = vmul.f32 %v1475_v47, %v500_v50  ;;  %v498_v52 = vsel %vm497_vm5, %v1473_v39, %v494_v49 }
 0x116   : > { %v519_v56 = vmul.f32 %v498_v52, %v468_v15 }
 0x117   : > { %v502_v53 = vmul.f32 0.5, %v501_v51 }
 0x118   : > { %v525_v63 = vmul.f32 %v1462_v57, %v519_v56 }
 0x119   : > { %v503_v54 = vsub.f32 1.5, %v502_v53 }
 0x11a   : > { %v1477_v55 = vpop.eup %1476  ;;  %v531_v7 = vadd.f32 %v1463_v2, %v525_v63 }
 0x11b   : > { %v504_v58 = vmul.f32 %v1475_v47, %v503_v54  ;;  %v510_v59 = vmul.f32 %v1477_v55, %v488_v48  ;;  %vm516_vm10 = vweird.f32 %v1477_v55 }
 0x11c   : > { %vm517_vm11 = vmor %vm515_vm9, %vm516_vm10 }
 0x11d   : > { %v508_v60 = vsel %vm507_vm8, %v1475_v47, %v504_v58  ;;  %v511_v61 = vmul.f32 %v1477_v55, %v510_v59 }
 0x11e   : > { %v520_v62 = vmul.f32 %v508_v60, %v469_v22  ;;  %v570_v60 = vld [vmem:[%s1974_s5] sm:$0xff] }
 0x11f   : > { %v512_v3 = vmul.f32 0.5, %v511_v61  ;;  %v690_v61 = vpack.c.bf16 %v570_v60, %v570_v60 }
 0x120   : > { %v526_v5 = vmul.f32 %v1462_v57, %v520_v62 }
 0x121   : > { %v513_v6 = vsub.f32 1.5, %v512_v3  ;;  %v837_v62 = vsel %vm808_vm2, %v690_v61, 0 }
 0x122   : > { %v532_v8 = vadd.f32 %v1463_v2, %v526_v5 }
 0x123   : > { %v514_v9 = vmul.f32 %v1477_v55, %v513_v6 }
 0x124   : > { %v538_v10 = vpack.c.bf16 %v532_v8, %v531_v7 }
 0x125   : > { %v518_v11 = vsel %vm517_vm11, %v1477_v55, %v514_v9 }
 0x126   : > { %1408 = vmatmul.msk.bf16.vlgmr.msra.gmra.mxu0 %vm447_vm0, %v538_v10  ;;  %v521_v13 = vmul.f32 %v518_v11, %v1666_v23 }
 0x128   : > { %v527_v14 = vmul.f32 %v1462_v57, %v521_v13 }
 0x12a   : > { %v533_v15 = vadd.f32 %v1463_v2, %v527_v14 }
 0x12c   : > { %v539_v16 = vpack.c.bf16 %v533_v15, %v533_v15 }
 0x136   : > { %1409 = vmatmul.msk.bf16.gmra.mxu0 %vm447_vm0, %v539_v16 }
 0x1a3   : > { %v561_v17 = vpop.f32.mrf.mxu0 }
 0x1a4   : > { %v562_v20 = vadd.f32 %v1464_v18, %v561_v17 }
 0x1ab   : > { %v563_v19 = vpop.f32.mrf.mxu0 }
 0x1ac   : > { %v564_v21 = vadd.f32 %v1464_v18, %v563_v19 }
 0x1ae   : > { %v1699_v22 = vpack.c.bf16 %v564_v21, %v562_v20 }
 0x1b0   : > { %578 = vrot.lane.b32.xlu1 %v1699_v22, %s1547_s14 }
 0x1b3   : > { %v566_v24 = vpop.f32.mrf.mxu0 }
 0x1b4   : > { %v567_v23 = vadd.f32 %v1464_v18, %v566_v24 }
 0x1b6   : > { %v1702_v25 = vpack.c.bf16 %v567_v23, %v567_v23 }
 0x1b8   : > { %655 = vrot.lane.b32.xlu1 %v1702_v25, %s1548_s15  ;;  %580 = vrot.lane.b32.xlu0 %v1702_v25, %s1547_s14 }
 0x1bb   : > { %v568_v26 = vpop.f32.mrf.mxu0 }
 0x222   : > { %v579_v27 = vpop.permute.xlu1 %578 }
 0x223   : > { %v590_v34 = vsel %vm582_vm13, %v579_v27, 0 }
 0x22a   : > { %v656_v30 = vpop.permute.xlu1 %655  ;;  %v581_v31 = vpop.permute.xlu0 %580 }
 0x22b   : > { %v593_v32 = vsel %vm582_vm13, %v581_v31, 0  ;;  %v668_v33 = vand.u32 %v1707_v29, %v656_v30 }
 0x22c   : > { %601 = vmatpush.bf16.xpose.msra.mxu1 %v593_v32  ;;  %1438 = vmatpush.bf16.xpose.msra.mxu3 %v593_v32 }
 0x22d   : > { %676 = vmatpush.bf16.msra.mxu2 %v668_v33 }
 0x234   : > { %602 = vmatpush.bf16.xpose.msra.mxu1 %v590_v34  ;;  %1439 = vmatpush.bf16.xpose.msra.mxu3 %v590_v34 }
 0x23b   : > { %1410 = vmatmul.msk.bf16.vlgmr.msra.gmra.mxu1 %vm582_vm13, %v1699_v22  ;;  %1411 = vmatmul.msk.bf16.vlgmr.msra.gmra.mxu3 %vm582_vm13, %v1702_v25 }
 0x23c   : > { %846 = vmatpush.bf16.msrb.mxu1 %v837_v62 }
 0x2b8   : > { %v604_v35 = vpop.f32.mrf.mxu1 }
 0x2b9   : > { %v613_v36 = vmul.f32 0.35355338, %v604_v35 }
 0x2bb   : > { %v617_v37 = vsel %vm616_vm14, %v613_v36, -inf }
 0x2bc   : > { %618 = vmax.xlane.f32.xlu2 %v617_v37 }
 0x2be   : > { %v609_v38 = vpop.f32.mrf.mxu3 }
 0x2bf   : > { %v615_v43 = vmul.f32 0.35355338, %v609_v38 }
 0x2c0   : > { %v606_v39 = vpop.f32.mrf.mxu1 }
 0x2c1   : > { %v614_v40 = vmul.f32 0.35355338, %v606_v39  ;;  %v624_v44 = vsel %vm623_vm15, %v615_v43, -inf }
 0x2c3   : > { %v620_v41 = vsel %vm616_vm14, %v614_v40, -inf }
 0x2c4   : > { %621 = vmax.xlane.f32.xlu2 %v620_v41 }
 0x2c6   : > { %v611_v42 = vpop.f32.mrf.mxu3 }
 0x2cc   : > { %625 = vmax.xlane.f32.xlu2 %v624_v44 }
 0x32f   : > { %v619_v45 = vpop.xlane.xlu2 %618 }
 0x330   : > { %v627_v46 = vsub.f32 %v613_v36, %v619_v45 }
 0x332   : > { %v630_v47 = vmul.f32 1.442695, %v627_v46 }
 0x334   : > { %1478 = vpow2.f32 %v630_v47 }
 0x337   : > { %v622_v48 = vpop.xlane.xlu2 %621 }
 0x338   : > { %v628_v49 = vsub.f32 %v614_v40, %v622_v48 }
 0x33a   : > { %v1479_v50 = vpop.eup %1478  ;;  %v632_v51 = vmul.f32 1.442695, %v628_v49 }
 0x33b   : > { %v636_v52 = vsel %vm616_vm14, %v1479_v50, 0.0 }
 0x33c   : > { %1480 = vpow2.f32 %v632_v51  ;;  %637 = vadd.xlane.f32.xlu0 %v636_v52 }
 0x33f   : > { %v626_v53 = vpop.xlane.xlu2 %625 }
 0x340   : > { %v629_v54 = vsub.f32 %v615_v43, %v626_v53 }
 0x342   : > { %v1481_v55 = vpop.eup %1480  ;;  %v634_v56 = vmul.f32 1.442695, %v629_v54 }
 0x343   : > { %v639_v57 = vsel %vm616_vm14, %v1481_v55, 0.0 }
 0x344   : > { %1482 = vpow2.f32 %v634_v56  ;;  %640 = vadd.xlane.f32.xlu2 %v639_v57 }
 0x34a   : > { %v1483_v58 = vpop.eup %1482 }
 0x34b   : > { %v642_v59 = vsel %vm623_vm15, %v1483_v58, 0.0 }
 0x34c   : > { %643 = vadd.xlane.f32.xlu1 %v642_v59 }
 0x350   : > { %695 = vrot.lane.b32.xlu0 %v1699_v22, %s1550_s16 }
 0x358   : > { %1004 = vrot.lane.b32.xlu0 %v1702_v25, %s1551_s17 }
 0x35c   : > { %653 = vrot.lane.b32.xlu2 %v1699_v22, %s1548_s15  ;;  %s440_s15 = scalar_lea.vmem %s1982_s13, %s1440_s27 }
 0x360   : > { %1002 = vrot.lane.b32.xlu0 %v1699_v22, %s1551_s17 }
 0x364   : > { %697 = vrot.lane.b32.xlu2 %v1702_v25, %s1550_s16 }
 0x365   : > { %863 = vrot.lane.b32.xlu1 %v1702_v25, %s1552_s18 }
 0x368   : > { %859 = vrot.lane.b32.xlu0 %v1702_v25, %s1553_s19 }
 0x36c   : > { %691 = vrot.lane.b32.xlu2 %v1699_v22, %s1554_s20 }
 0x36d   : > { %1000 = vrot.lane.b32.xlu1 %v1702_v25, %s1555_s21 }
 0x374   : > { %693 = vrot.lane.b32.xlu2 %v1702_v25, %s1554_s20 }
 0x37c   : > { %861 = vrot.lane.b32.xlu2 %v1699_v22, %s1552_s18 }
 0x384   : > { %857 = vrot.lane.b32.xlu2 %v1699_v22, %s1553_s19 }
 0x38c   : > { %998 = vrot.lane.b32.xlu2 %v1699_v22, %s1555_s21 }
 0x3af   : > { %v638_v63 = vpop.xlane.xlu0 %637 }
 0x3b0   : > { %1484 = vrcp.f32 %v638_v63 }
 0x3b6   : > { %v1485_v3 = vpop.eup %1484 }
 0x3b7   : > { %v641_v2 = vpop.xlane.xlu2 %640  ;;  %v648_v7 = vmul.f32 %v1485_v3, %v1479_v50 }
 0x3b8   : > { %1486 = vrcp.f32 %v641_v2 }
 0x3be   : > { %v1487_v5 = vpop.eup %1486 }
 0x3bf   : > { %v654_v6 = vpop.permute.xlu2 %653  ;;  %v649_v8 = vmul.f32 %v1487_v5, %v1481_v55  ;;  %v644_v9 = vpop.xlane.xlu1 %643 }
 0x3c0   : > { %677 = vmatpush.bf16.msra.mxu2 %v654_v6  ;;  %1488 = vrcp.f32 %v644_v9 }
 0x3c1   : > { %v651_v10 = vpack.c.bf16 %v649_v8, %v648_v7 }
 0x3c2   : > { %v696_v11 = vpop.permute.xlu0 %695 }
 0x3c3   : > { %1412 = vmatmul.msk.bf16.vlgmr.msra.gmra.mxu2 %vm616_vm14, %v651_v10  ;;  %v706_v20 = vsel %vm582_vm13, %v696_v11, 0 }
 0x3c6   : > { %v1489_v15 = vpop.eup %1488 }
 0x3c7   : > { %v698_v13 = vpop.permute.xlu2 %697  ;;  %v650_v18 = vmul.f32 %v1489_v15, %v1483_v58 }
 0x3c8   : > { %v709_v14 = vsel %vm582_vm13, %v698_v13, 0 }
 0x3c9   : > { %717 = vmatpush.bf16.xpose.msrb.mxu3 %v709_v14  ;;  %v652_v21 = vpack.c.bf16 %v650_v18, %v650_v18 }
 0x3ca   : > { %v1005_v16 = vpop.permute.xlu0 %1004 }
 0x3cb   : > { %v1016_v17 = vsel %vm582_vm13, %v1005_v16, 0 }
 0x3cc   : > { %1024 = vmatpush.bf16.xpose.msra.mxu1 %v1016_v17 }
 0x3cf   : > { %v692_v19 = vpop.permute.xlu2 %691 }
 0x3d1   : > { %718 = vmatpush.bf16.xpose.msrb.mxu3 %v706_v20 }
 0x3d2   : > { %v1003_v24 = vpop.permute.xlu0 %1002 }
 0x3d3   : > { %v1013_v23 = vsel %vm582_vm13, %v1003_v24, 0  ;;  %1413 = vmatmul.msk.bf16.gmra.mxu2 %vm616_vm14, %v652_v21 }
 0x3d4   : > { %1025 = vmatpush.bf16.xpose.msra.mxu1 %v1013_v23 }
 0x3d7   : > { %v864_v26 = vpop.permute.xlu1 %863  ;;  %v694_v27 = vpop.permute.xlu2 %693 }
 0x3d8   : > { %v875_v28 = vsel %vm582_vm13, %v864_v26, 0  ;;  %1414 = vmatmul.msk.bf16.vlgmr.msrb.gmra.mxu3 %vm582_vm13, %v692_v19 }
 0x3d9   : > { %883 = vmatpush.bf16.xpose.msra.mxu3 %v875_v28 }
 0x3da   : > { %v860_v33 = vpop.permute.xlu0 %859 }
 0x3df   : > { %v862_v30 = vpop.permute.xlu2 %861  ;;  %v1001_v54 = vpop.permute.xlu1 %1000 }
 0x3e0   : > { %v872_v31 = vsel %vm582_vm13, %v862_v30, 0 }
 0x3e1   : > { %884 = vmatpush.bf16.xpose.msra.mxu3 %v872_v31 }
 0x3e7   : > { %v858_v32 = vpop.permute.xlu2 %857 }
 0x3e8   : > { %1415 = vmatmul.msk.bf16.gmra.mxu3 %vm582_vm13, %v694_v27 }
 0x3ef   : > { %v999_v49 = vpop.permute.xlu2 %998 }
 0x3f8   : > { %1422 = vmatmul.msk.bf16.vlgmr.msra.gmra.mxu3 %vm582_vm13, %v858_v32 }
 0x408   : > { %1423 = vmatmul.msk.bf16.gmra.mxu3 %vm582_vm13, %v860_v33 }
 0x446   : > { %v679_v34 = vpop.f32.mrf.mxu2 }
 0x44e   : > { %v681_v35 = vpop.f32.mrf.mxu2 }
 0x44f   : > { %v688_v36 = vpack.c.bf16 %v681_v35, %v679_v34 }
 0x451   : > { %1420 = vmatmul.msk.bf16.vlgmr.msrb.gmra.mxu1 %vm582_vm13, %v688_v36 }
 0x456   : > { %v684_v37 = vpop.f32.mrf.mxu2 }
 0x457   : > { %v689_v42 = vpack.c.bf16 %v684_v37, %v684_v37 }
 0x45b   : > { %v720_v38 = vpop.f32.mrf.mxu3 }
 0x45c   : > { %v729_v39 = vmul.f32 0.35355338, %v720_v38 }
 0x45e   : > { %v686_v40 = vpop.f32.mrf.mxu2  ;;  %v732_v41 = vsel %vm616_vm14, %v729_v39, -inf }
 0x45f   : > { %733 = vmax.xlane.f32.xlu2 %v732_v41 }
 0x461   : > { %1421 = vmatmul.msk.bf16.gmra.mxu1 %vm582_vm13, %v689_v42 }
 0x463   : > { %v722_v43 = vpop.f32.mrf.mxu3 }
 0x464   : > { %v730_v44 = vmul.f32 0.35355338, %v722_v43 }
 0x466   : > { %v735_v45 = vsel %vm616_vm14, %v730_v44, -inf }
 0x467   : > { %736 = vmax.xlane.f32.xlu0 %v735_v45 }
 0x46b   : > { %v725_v46 = vpop.f32.mrf.mxu3 }
 0x46c   : > { %v731_v47 = vmul.f32 0.35355338, %v725_v46 }
 0x46e   : > { %v738_v48 = vsel %vm623_vm15, %v731_v47, -inf }
 0x46f   : > { %739 = vmax.xlane.f32.xlu1 %v738_v48 }
 0x471   : > { %1428 = vmatmul.msk.bf16.vlgmr.msra.gmra.mxu1 %vm582_vm13, %v999_v49 }
 0x473   : > { %v727_v50 = vpop.f32.mrf.mxu3 }
 0x47b   : > { %v886_v51 = vpop.f32.mrf.mxu3 }
 0x47c   : > { %v895_v52 = vmul.f32 0.35355338, %v886_v51 }
 0x47e   : > { %v898_v53 = vsel %vm616_vm14, %v895_v52, -inf }
 0x47f   : > { %899 = vmax.xlane.f32.xlu2 %v898_v53 }
 0x481   : > { %1429 = vmatmul.msk.bf16.gmra.mxu1 %vm582_vm13, %v1001_v54 }
 0x483   : > { %v888_v55 = vpop.f32.mrf.mxu3 }
 0x484   : > { %v896_v56 = vmul.f32 0.35355338, %v888_v55 }
 0x486   : > { %v901_v57 = vsel %vm616_vm14, %v896_v56, -inf }
 0x487   : > { %902 = vmax.xlane.f32.xlu0 %v901_v57 }
 0x48b   : > { %v891_v58 = vpop.f32.mrf.mxu3 }
 0x48c   : > { %v1782_v27 = vmul.f32 0.35355338, %v891_v58 }
 0x48e   : > { %v904_v30 = vsel %vm623_vm15, %v1782_v27, -inf }
 0x493   : > { %v893_v59 = vpop.f32.mrf.mxu3 }
 0x4ce   : > { %v1761_v60 = vpop.f32.mrf.mxu1 }
 0x4d2   : > { %v734_v61 = vpop.xlane.xlu2 %733 }
 0x4d3   : > { %v741_v62 = vsub.f32 %v729_v39, %v734_v61 }
 0x4d5   : > { %v744_v63 = vmul.f32 1.442695, %v741_v62 }
 0x4d6   : > { %v1763_v2 = vpop.f32.mrf.mxu1 }
 0x4d7   : > { %1490 = vpow2.f32 %v744_v63 }
 0x4da   : > { %v737_v3 = vpop.xlane.xlu0 %736 }
 0x4db   : > { %v742_v5 = vsub.f32 %v730_v44, %v737_v3 }
 0x4dd   : > { %v1765_v6 = vpop.eup %1490  ;;  %v746_v7 = vmul.f32 1.442695, %v742_v5 }
 0x4de   : > { %v1767_v8 = vpop.f32.mrf.mxu1  ;;  %v750_v9 = vsel %vm616_vm14, %v1765_v6, 0.0 }
 0x4df   : > { %1492 = vpow2.f32 %v746_v7  ;;  %751 = vadd.xlane.f32.xlu0 %v750_v9 }
 0x4e2   : > { %v740_v11 = vpop.xlane.xlu1 %739 }
 0x4e3   : > { %v743_v15 = vsub.f32 %v731_v47, %v740_v11 }
 0x4e5   : > { %v1771_v10 = vpop.eup %1492  ;;  %v748_v16 = vmul.f32 1.442695, %v743_v15 }
 0x4e6   : > { %v855_v13 = vpop.f32.mrf.mxu1  ;;  %v753_v14 = vsel %vm616_vm14, %v1771_v10, 0.0 }
 0x4e7   : > { %754 = vadd.xlane.f32.xlu1 %v753_v14  ;;  %1494 = vpow2.f32 %v748_v16 }
 0x4ed   : > { %v1777_v20 = vpop.eup %1494 }
 0x4ee   : > { %v1027_v17 = vpop.f32.mrf.mxu1  ;;  %v756_v23 = vsel %vm623_vm15, %v1777_v20, 0.0 }
 0x4ef   : > { %v1036_v18 = vmul.f32 0.35355338, %v1027_v17 }
 0x4f1   : > { %v1039_v19 = vsel %vm616_vm14, %v1036_v18, -inf }
 0x4f2   : > { %1040 = vmax.xlane.f32.xlu1 %v1039_v19  ;;  %v900_v32 = vpop.xlane.xlu2 %899 }
 0x4f3   : > { %767 = vrot.lane.b32.xlu0 %v1699_v22, %s1556_s24  ;;  %v907_v33 = vsub.f32 %v895_v52, %v900_v32 }
 0x4f5   : > { %v910_v34 = vmul.f32 1.442695, %v907_v33  ;;  %v571_v33 = vld [vmem:[%s1974_s5 + $0x8] sm:$0xff] }
 0x4f6   : > { %v1029_v21 = vpop.f32.mrf.mxu1 }
 0x4f7   : > { %v1037_v24 = vmul.f32 0.35355338, %v1029_v21  ;;  %1496 = vpow2.f32 %v910_v34  ;;  %v801_v34 = vpack.c.bf16 %v571_v33, %v571_v33 }
 0x4f9   : > { %v1042_v26 = vsel %vm616_vm14, %v1037_v24, -inf }
 0x4fa   : > { %757 = vadd.xlane.f32.xlu1 %v756_v23  ;;  %1043 = vmax.xlane.f32.xlu2 %v1042_v26  ;;  %v903_v37 = vpop.xlane.xlu0 %902 }
 0x4fb   : > { %v908_v38 = vsub.f32 %v896_v56, %v903_v37 }
 0x4fd   : > { %v1787_v35 = vpop.eup %1496  ;;  %v912_v39 = vmul.f32 1.442695, %v908_v38 }
 0x4fe   : > { %v1032_v28 = vpop.f32.mrf.mxu1  ;;  %v916_v36 = vsel %vm616_vm14, %v1787_v35, 0.0 }
 0x4ff   : > { %1498 = vpow2.f32 %v912_v39  ;;  %v1795_v42 = vmul.f32 0.35355338, %v1032_v28 }
 0x501   : > { %v1045_v43 = vsel %vm623_vm15, %v1795_v42, -inf }
 0x502   : > { %905 = vmax.xlane.f32.xlu1 %v904_v30 }
 0x505   : > { %v1499_v40 = vpop.eup %1498 }
 0x506   : > { %v1034_v31 = vpop.f32.mrf.mxu1  ;;  %v919_v41 = vsel %vm616_vm14, %v1499_v40, 0.0 }
 0x512   : > { %769 = vrot.lane.b32.xlu2 %v1702_v25, %s1556_s24 }
 0x51b   : > { %935 = vrot.lane.b32.xlu1 %v1702_v25, %s1557_s28 }
 0x51d   : > { %917 = vadd.xlane.f32.xlu0 %v916_v36 }
 0x531   : > { %1076 = vrot.lane.b32.xlu0 %v1702_v25, %s1558_s29 }
 0x53b   : > { %920 = vadd.xlane.f32.xlu2 %v919_v41 }
 0x545   : > { %1046 = vmax.xlane.f32.xlu1 %v1045_v43 }
 0x552   : > { %v752_v49 = vpop.xlane.xlu0 %751 }
 0x553   : > { %933 = vrot.lane.b32.xlu2 %v1699_v22, %s1557_s28 }
 0x55a   : > { %v755_v44 = vpop.xlane.xlu1 %754 }
 0x565   : > { %v1041_v45 = vpop.xlane.xlu1 %1040  ;;  %v768_v62 = vpop.permute.xlu0 %767 }
 0x566   : > { %v1048_v46 = vsub.f32 %v1036_v18, %v1041_v45 }
 0x568   : > { %v1051_v47 = vmul.f32 1.442695, %v1048_v46 }
 0x56a   : > { %1500 = vpow2.f32 %v1051_v47 }
 0x56b   : > { %1502 = vrcp.f32 %v755_v44 }
 0x56c   : > { %1504 = vrcp.f32 %v752_v49 }
 0x56d   : > { %v1044_v48 = vpop.xlane.xlu2 %1043  ;;  %v758_v63 = vpop.xlane.xlu1 %757 }
 0x56e   : > { %v1049_v25 = vsub.f32 %v1037_v24, %v1044_v48 }
 0x570   : > { %v1800_v50 = vpop.eup %1500  ;;  %v1053_v51 = vmul.f32 1.442695, %v1049_v25  ;;  %v572_v25 = vld [vmem:[%s1974_s5 + $0x10] sm:$0xff] }
 0x571   : > { %v1057_v52 = vsel %vm616_vm14, %v1800_v50, 0.0  ;;  %v1503_v54 = vpop.eup %1502 }
 0x572   : > { %1506 = vpow2.f32 %v1053_v51  ;;  %1058 = vadd.xlane.f32.xlu1 %v1057_v52  ;;  %v1505_v56 = vpop.eup %1504  ;;  %v763_v58 = vmul.f32 %v1503_v54, %v1771_v10  ;;  %v967_v51 = vpack.c.bf16 %v572_v25, %v572_v25 }
 0x573   : > { %v762_v61 = vmul.f32 %v1505_v56, %v1765_v6  ;;  %1508 = vrcp.f32 %v758_v63 }
 0x575   : > { %v770_v53 = vpop.permute.xlu2 %769  ;;  %v765_v3 = vpack.c.bf16 %v763_v58, %v762_v61  ;;  %v906_v5 = vpop.xlane.xlu1 %905 }
 0x576   : > { %v779_v55 = vand.u32 %v770_v53, %v1707_v29  ;;  %v909_v16 = vsub.f32 %v1782_v27, %v906_v5 }
 0x578   : > { %v1507_v57 = vpop.eup %1506  ;;  %787 = vmatpush.bf16.msrb.mxu0 %v779_v55  ;;  %v914_v18 = vmul.f32 1.442695, %v909_v16 }
 0x579   : > { %v1060_v59 = vsel %vm616_vm14, %v1507_v57, 0.0  ;;  %v1509_v7 = vpop.eup %1508 }
 0x57a   : > { %1061 = vadd.xlane.f32.xlu1 %v1060_v59  ;;  %v764_v9 = vmul.f32 %v1509_v7, %v1777_v20 }
 0x57c   : > { %788 = vmatpush.bf16.msrb.mxu0 %v768_v62  ;;  %v766_v13 = vpack.c.bf16 %v764_v9, %v764_v9 }
 0x57f   : > { %1416 = vmatmul.msk.bf16.vlgmr.msrb.gmra.mxu0 %vm616_vm14, %v765_v3  ;;  %v573_v3 = vld [vmem:[%s1974_s5 + $0x18] sm:$0xff] }
 0x580   : > { %v1108_v5 = vpack.c.bf16 %v573_v3, %v573_v3  ;;  %v1229_v3 = vld [vmem:[%s1978_s9] sm:$0xff] }
 0x582   : > { %v1116_v7 = vsel %vm808_vm2, %v1108_v5, 0  ;;  %v1230_v5 = vld [vmem:[%s1978_s9 + $0x8] sm:$0xff] }
 0x58d   : > { %v936_v11 = vpop.permute.xlu1 %935 }
 0x58e   : > { %v945_v10 = vand.u32 %v936_v11, %v1707_v29 }
 0x58f   : > { %1417 = vmatmul.msk.bf16.gmra.mxu0 %vm616_vm14, %v766_v13 }
 0x590   : > { %953 = vmatpush.bf16.msra.mxu0 %v945_v10  ;;  %v918_v6 = vpop.xlane.xlu0 %917 }
 0x591   : > { %1510 = vrcp.f32 %v918_v6 }
 0x593   : > { %1074 = vrot.lane.b32.xlu1 %v1699_v22, %s1558_s29 }
 0x597   : > { %v1511_v19 = vpop.eup %1510 }
 0x598   : > { %v928_v21 = vmul.f32 %v1511_v19, %v1787_v35  ;;  %v810_v35 = vsel %vm808_vm2, %v801_v34, 0 }
 0x599   : > { %819 = vmatpush.bf16.msrb.mxu2 %v810_v35 }
 0x5a3   : > { %v1077_v14 = vpop.permute.xlu0 %1076 }
 0x5a4   : > { %v1086_v15 = vand.u32 %v1077_v14, %v1707_v29 }
 0x5a6   : > { %1094 = vmatpush.bf16.msrb.mxu3 %v1086_v15 }
 0x5ae   : > { %v921_v17 = vpop.xlane.xlu2 %920 }
 0x5af   : > { %1512 = vrcp.f32 %v921_v17 }
 0x5b0   : > { %1514 = vpow2.f32 %v914_v18 }
 0x5b5   : > { %v1513_v20 = vpop.eup %1512 }
 0x5b6   : > { %v929_v24 = vmul.f32 %v1513_v20, %v1499_v40  ;;  %v934_v23 = vpop.permute.xlu2 %933  ;;  %v1515_v28 = vpop.eup %1514 }
 0x5b7   : > { %954 = vmatpush.bf16.msra.mxu0 %v934_v23  ;;  %v922_v30 = vsel %vm623_vm15, %v1515_v28, 0.0 }
 0x5b8   : > { %v931_v22 = vpack.c.bf16 %v929_v24, %v928_v21  ;;  %v1047_v26 = vpop.xlane.xlu1 %1046 }
 0x5b9   : > { %v1050_v29 = vsub.f32 %v1795_v42, %v1047_v26  ;;  %v1465_v26 = vld [vmem:[%s1975_s6] ss:$0 sm:$0xff] }
 0x5ba   : > { %1424 = vmatmul.msk.bf16.vlgmr.msra.gmra.mxu0 %vm616_vm14, %v931_v22 }
 0x5bb   : > { %v1055_v27 = vmul.f32 1.442695, %v1050_v29  ;;  %1125 = vmatpush.bf16.msrb.mxu0 %v1116_v7  ;;  %v1235_v7 = vpack.c.bf16 %v1230_v5, %v1229_v3  ;;  %v1294_v5 = vld [vmem:[%s1980_s11 + $0x10] sm:$0xff] }
 0x5bd   : > { %1516 = vpow2.f32 %v1055_v27  ;;  %923 = vadd.xlane.f32.xlu1 %v922_v30 }
 0x5c3   : > { %v1517_v31 = vpop.eup %1516 }
 0x5c4   : > { %v1063_v32 = vsel %vm623_vm15, %v1517_v31, 0.0 }
 0x5c5   : > { %1064 = vadd.xlane.f32.xlu0 %v1063_v32 }
 0x5e5   : > { %v1059_v36 = vpop.xlane.xlu1 %1058 }
 0x5ed   : > { %v1062_v37 = vpop.xlane.xlu1 %1061 }
 0x5ee   : > { %1518 = vrcp.f32 %v1062_v37 }
 0x5ef   : > { %1520 = vrcp.f32 %v1059_v36 }
 0x5f4   : > { %v1519_v39 = vpop.eup %1518 }
 0x5f5   : > { %v1521_v40 = vpop.eup %1520  ;;  %v1070_v41 = vmul.f32 %v1519_v39, %v1507_v57 }
 0x5f6   : > { %v1069_v43 = vmul.f32 %v1521_v40, %v1800_v50  ;;  %v975_v50 = vsel %vm808_vm2, %v967_v51, 0 }
 0x5f7   : > { %984 = vmatpush.bf16.msra.mxu2 %v975_v50 }
 0x5f8   : > { %v1072_v46 = vpack.c.bf16 %v1070_v41, %v1069_v43 }
 0x5fc   : > { %v790_v38 = vpop.f32.mrf.mxu0 }
 0x604   : > { %v792_v42 = vpop.f32.mrf.mxu0 }
 0x605   : > { %v799_v44 = vpack.c.bf16 %v792_v42, %v790_v38  ;;  %v1075_v45 = vpop.permute.xlu1 %1074 }
 0x606   : > { %1095 = vmatpush.bf16.msrb.mxu3 %v1075_v45 }
 0x607   : > { %1418 = vmatmul.msk.bf16.vlgmr.msrb.gmra.mxu2 %vm582_vm13, %v799_v44 }
 0x609   : > { %1430 = vmatmul.msk.bf16.vlgmr.msrb.gmra.mxu3 %vm616_vm14, %v1072_v46 }
 0x60c   : > { %v795_v47 = vpop.f32.mrf.mxu0 }
 0x60d   : > { %v800_v49 = vpack.c.bf16 %v795_v47, %v795_v47 }
 0x614   : > { %v797_v48 = vpop.f32.mrf.mxu0 }
 0x617   : > { %1419 = vmatmul.msk.bf16.gmra.mxu2 %vm582_vm13, %v800_v49 }
 0x630   : > { %v924_v52 = vpop.xlane.xlu1 %923 }
 0x631   : > { %1522 = vrcp.f32 %v924_v52 }
 0x637   : > { %v1523_v53 = vpop.eup %1522  ;;  %v956_v54 = vpop.f32.mrf.mxu0 }
 0x638   : > { %v1065_v55 = vpop.xlane.xlu0 %1064  ;;  %v930_v56 = vmul.f32 %v1523_v53, %v1515_v28 }
 0x639   : > { %1524 = vrcp.f32 %v1065_v55 }
 0x63a   : > { %v932_v57 = vpack.c.bf16 %v930_v56, %v930_v56 }
 0x63c   : > { %1425 = vmatmul.msk.bf16.gmra.mxu0 %vm616_vm14, %v932_v57 }
 0x63f   : > { %v1525_v58 = vpop.eup %1524  ;;  %v958_v59 = vpop.f32.mrf.mxu0 }
 0x640   : > { %v965_v61 = vpack.c.bf16 %v958_v59, %v956_v54  ;;  %v1071_v62 = vmul.f32 %v1525_v58, %v1517_v31  ;;  %v1231_v58 = vld [vmem:[%s1978_s9 + $0x10] sm:$0xff]  ;;  %v1232_v59 = vld [vmem:[%s1978_s9 + $0x18] sm:$0xff] }
 0x642   : > { %1426 = vmatmul.msk.bf16.vlgmr.msra.gmra.mxu2 %vm582_vm13, %v965_v61  ;;  %v1073_v63 = vpack.c.bf16 %v1071_v62, %v1071_v62  ;;  %v1236_v61 = vpack.c.bf16 %v1232_v59, %v1231_v58  ;;  %v1298_v58 = vld [vmem:[%s1980_s11 + $0x30] sm:$0xff]  ;;  %v1299_v59 = vld [vmem:[%s1980_s11 + $0x38] sm:$0xff] }
 0x644   : > { %1431 = vmatmul.msk.bf16.gmra.mxu3 %vm616_vm14, %v1073_v63  ;;  %1253 = vmatpush.bf16.msrb.mxu2 %v1236_v61  ;;  %v1313_v61 = vpack.c.bf16 %v1299_v59, %v1298_v58 }
 0x648   : > { %1254 = vmatpush.bf16.msrb.mxu2 %v1235_v7  ;;  %v1295_v7 = vld [vmem:[%s1980_s11 + $0x18] sm:$0xff] }
 0x68a   : > { %v821_v9 = vpop.f32.mrf.mxu2 }
 0x68b   : > { %v849_v23 = vadd.f32 %v1761_v60, %v821_v9 }
 0x68c   : > { %v1097_v11 = vpop.f32.mrf.mxu3 }
 0x692   : > { %v823_v13 = vpop.f32.mrf.mxu2 }
 0x693   : > { %v851_v31 = vadd.f32 %v1763_v2, %v823_v13 }
 0x694   : > { %v1099_v10 = vpop.f32.mrf.mxu3 }
 0x695   : > { %v1106_v6 = vpack.c.bf16 %v1099_v10, %v1097_v11 }
 0x697   : > { %1432 = vmatmul.msk.bf16.vlgmr.msrb.gmra.mxu0 %vm582_vm13, %v1106_v6 }
 0x69a   : > { %v826_v14 = vpop.f32.mrf.mxu2 }
 0x69b   : > { %v854_v2 = vadd.f32 %v1767_v8, %v826_v14 }
 0x6a2   : > { %v828_v15 = vpop.f32.mrf.mxu2 }
 0x6b9   : > { %v961_v16 = vpop.f32.mrf.mxu0 }
 0x6ba   : > { %v966_v17 = vpack.c.bf16 %v961_v16, %v961_v16 }
 0x6bc   : > { %1427 = vmatmul.msk.bf16.gmra.mxu2 %vm582_vm13, %v966_v17 }
 0x6c1   : > { %v963_v18 = vpop.f32.mrf.mxu0 }
 0x6c5   : > { %v986_v24 = vpop.f32.mrf.mxu2 }
 0x6c6   : > { %v995_v22 = vadd.f32 %v986_v24, %v849_v23 }
 0x6c7   : > { %v1102_v19 = vpop.f32.mrf.mxu3 }
 0x6c8   : > { %v1107_v20 = vpack.c.bf16 %v1102_v19, %v1102_v19 }
 0x6ca   : > { %1433 = vmatmul.msk.bf16.gmra.mxu0 %vm582_vm13, %v1107_v20 }
 0x6cd   : > { %v988_v30 = vpop.f32.mrf.mxu2 }
 0x6ce   : > { %v996_v33 = vadd.f32 %v988_v30, %v851_v31  ;;  %v1467_v30 = vld [vmem:[%s1977_s8] ss:$0 sm:$0xff] }
 0x6cf   : > { %v1104_v21 = vpop.f32.mrf.mxu3 }
 0x714   : > { %v1127_v28 = vpop.f32.mrf.mxu0 }
 0x715   : > { %v1136_v29 = vadd.f32 %v1127_v28, %v995_v22 }
 0x717   : > { %v1143_v27 = vadd.f32 %v1465_v26, %v1136_v29 }
 0x719   : > { %v1849_v32 = vadd.f32 %v1143_v27, %v1645_v0 }
 0x71b   : > { %v1151_v34 = vsel %vm447_vm0, %v1849_v32, 0.0 }
 0x71c   : > { %1152 = vadd.xlane.f32.xlu2 %v1151_v34  ;;  %v1129_v60 = vpop.f32.mrf.mxu0 }
 0x71d   : > { %v1137_v35 = vadd.f32 %v1129_v60, %v996_v33 }
 0x71f   : > { %v1144_v36 = vadd.f32 %v1465_v26, %v1137_v35 }
 0x721   : > { %v1854_v37 = vadd.f32 %v1144_v36, %v1653_v4 }
 0x723   : > { %v1154_v38 = vsel %vm447_vm0, %v1854_v37, 0.0 }
 0x724   : > { %1155 = vadd.xlane.f32.xlu1 %v1154_v38 }
 0x73f   : > { %v991_v39 = vpop.f32.mrf.mxu2 }
 0x740   : > { %v997_v0 = vadd.f32 %v991_v39, %v854_v2 }
 0x747   : > { %v993_v40 = vpop.f32.mrf.mxu2  ;;  %v1132_v41 = vpop.f32.mrf.mxu0 }
 0x748   : > { %v1138_v42 = vadd.f32 %v1132_v41, %v997_v0 }
 0x74a   : > { %v1145_v43 = vadd.f32 %v1465_v26, %v1138_v42  ;;  %v1466_v26 = vld [vmem:[%s1976_s7] ss:$0 sm:$0xff] }
 0x74c   : > { %v1860_v44 = vadd.f32 %v1145_v43, %v1647_v1 }
 0x74e   : > { %v1157_v45 = vsel %vm454_vm1, %v1860_v44, 0.0 }
 0x74f   : > { %1158 = vadd.xlane.f32.xlu0 %v1157_v45  ;;  %v1134_v4 = vpop.f32.mrf.mxu0 }
 0x78f   : > { %v1153_v46 = vpop.xlane.xlu2 %1152 }
 0x790   : > { %v1160_v47 = vmul.f32 %v1153_v46, %v1657_v12 }
 0x792   : > { %v1163_v48 = vsub.f32 %v1849_v32, %v1160_v47 }
 0x794   : > { %v1166_v49 = vmul.f32 %v1163_v48, %v1163_v48 }
 0x796   : > { %v1169_v8 = vsel %vm447_vm0, %v1166_v49, 0.0 }
 0x797   : > { %1170 = vadd.xlane.f32.xlu1 %v1169_v8  ;;  %v1156_v25 = vpop.xlane.xlu1 %1155  ;;  %v1307_v8 = vld [vmem:[%s1980_s11 + $0x78] sm:$0xff] }
 0x798   : > { %v1161_v51 = vmul.f32 %v1156_v25, %v1657_v12 }
 0x79a   : > { %v1164_v1 = vsub.f32 %v1854_v37, %v1161_v51  ;;  %v1304_v51 = vld [vmem:[%s1980_s11 + $0x60] sm:$0xff] }
 0x79c   : > { %v1167_v50 = vmul.f32 %v1164_v1, %v1164_v1 }
 0x79e   : > { %v1172_v52 = vsel %vm447_vm0, %v1167_v50, 0.0 }
 0x79f   : > { %1173 = vadd.xlane.f32.xlu2 %v1172_v52  ;;  %v1302_v52 = vld [vmem:[%s1980_s11 + $0x50] sm:$0xff] }
 0x7c2   : > { %v1159_v53 = vpop.xlane.xlu0 %1158 }
 0x7c3   : > { %v1162_v54 = vmul.f32 %v1159_v53, %v1657_v12  ;;  %v1303_v53 = vld [vmem:[%s1980_s11 + $0x58] sm:$0xff] }
 0x7c5   : > { %v1872_v55 = vsub.f32 %v1860_v44, %v1162_v54  ;;  %v1315_v54 = vpack.c.bf16 %v1303_v53, %v1302_v52 }
 0x7c7   : > { %v1168_v56 = vmul.f32 %v1872_v55, %v1872_v55 }
 0x7c9   : > { %v1175_v57 = vsel %vm454_vm1, %v1168_v56, 0.0  ;;  %v1301_v56 = vld [vmem:[%s1980_s11 + $0x48] sm:$0xff] }
 0x7ca   : > { %1176 = vadd.xlane.f32.xlu0 %v1175_v57 }
 0x80a   : > { %v1171_v62 = vpop.xlane.xlu1 %1170 }
 0x80b   : > { %v1178_v63 = vmul.f32 %v1171_v62, %v1657_v12  ;;  %v1296_v62 = vld [vmem:[%s1980_s11 + $0x20] sm:$0xff] }
 0x80d   : > { %v1181_v9 = vadd.f32 1e-06, %v1178_v63  ;;  %v1297_v63 = vld [vmem:[%s1980_s11 + $0x28] sm:$0xff] }
 0x80e   : > { %v1312_v3 = vpack.c.bf16 %v1297_v63, %v1296_v62 }
 0x80f   : > { %1526 = vrsqrt.f32 %v1181_v9  ;;  %vm1190_vm4 = vweird.f32 %v1181_v9 }
 0x812   : > { %v1174_v11 = vpop.xlane.xlu2 %1173 }
 0x813   : > { %v1179_v13 = vmul.f32 %v1174_v11, %v1657_v12  ;;  %v1292_v11 = vld [vmem:[%s1980_s11] sm:$0xff] }
 0x815   : > { %v1527_v10 = vpop.eup %1526  ;;  %v1182_v6 = vadd.f32 1e-06, %v1179_v13  ;;  %v1293_v13 = vld [vmem:[%s1980_s11 + $0x8] sm:$0xff] }
 0x816   : > { %v1185_v14 = vmul.f32 %v1527_v10, %v1181_v9  ;;  %vm1191_vm3 = vweird.f32 %v1527_v10  ;;  %v1311_v9 = vpack.c.bf16 %v1295_v7, %v1294_v5 }
 0x817   : > { %1528 = vrsqrt.f32 %v1182_v6  ;;  %vm1192_vm5 = vmor %vm1190_vm4, %vm1191_vm3  ;;  %vm1200_vm7 = vweird.f32 %v1182_v6 }
 0x818   : > { %v1186_v15 = vmul.f32 %v1527_v10, %v1185_v14 }
 0x81a   : > { %v1187_v16 = vmul.f32 0.5, %v1186_v15 }
 0x81c   : > { %v1188_v17 = vsub.f32 1.5, %v1187_v16 }
 0x81d   : > { %v1529_v18 = vpop.eup %1528 }
 0x81e   : > { %v1189_v19 = vmul.f32 %v1527_v10, %v1188_v17  ;;  %v1195_v20 = vmul.f32 %v1529_v18, %v1182_v6  ;;  %vm1201_vm6 = vweird.f32 %v1529_v18  ;;  %v1468_v6 = vld [vmem:[%s1979_s10] ss:$0 sm:$0xff] }
 0x81f   : > { %vm1202_vm8 = vmor %vm1200_vm7, %vm1201_vm6 }
 0x820   : > { %v1196_v21 = vmul.f32 %v1529_v18, %v1195_v20  ;;  %v1193_v24 = vsel %vm1192_vm5, %v1527_v10, %v1189_v19  ;;  %v1310_v10 = vpack.c.bf16 %v1293_v13, %v1292_v11 }
 0x821   : > { %v1214_v28 = vmul.f32 %v1193_v24, %v1163_v48 }
 0x822   : > { %v1197_v23 = vmul.f32 0.5, %v1196_v21 }
 0x823   : > { %v1220_v31 = vmul.f32 %v1466_v26, %v1214_v28 }
 0x824   : > { %v1198_v22 = vsub.f32 1.5, %v1197_v23 }
 0x825   : > { %v1226_v60 = vadd.f32 %v1467_v30, %v1220_v31 }
 0x826   : > { %v1199_v29 = vmul.f32 %v1529_v18, %v1198_v22 }
 0x828   : > { %v1203_v27 = vsel %vm1202_vm8, %v1529_v18, %v1199_v29 }
 0x829   : > { %v1215_v33 = vmul.f32 %v1203_v27, %v1164_v1  ;;  %v1305_v1 = vld [vmem:[%s1980_s11 + $0x68] sm:$0xff] }
 0x82a   : > { %v1316_v50 = vpack.c.bf16 %v1305_v1, %v1304_v51 }
 0x82b   : > { %v1221_v34 = vmul.f32 %v1466_v26, %v1215_v33 }
 0x82d   : > { %v1227_v35 = vadd.f32 %v1467_v30, %v1221_v34 }
 0x82f   : > { %v1233_v36 = vpack.c.bf16 %v1227_v35, %v1226_v60 }
 0x831   : > { %1434 = vmatmul.msk.bf16.vlgmr.msrb.gmra.mxu2 %vm447_vm0, %v1233_v36 }
 0x83d   : > { %v1177_v38 = vpop.xlane.xlu0 %1176 }
 0x83e   : > { %v1180_v39 = vmul.f32 %v1177_v38, %v1657_v12  ;;  %v1306_v12 = vld [vmem:[%s1980_s11 + $0x70] sm:$0xff] }
 0x83f   : > { %v1317_v25 = vpack.c.bf16 %v1307_v8, %v1306_v12  ;;  %v1469_v12 = vld [vmem:[%s1981_s12] ss:$0 sm:$0xff] }
 0x840   : > { %v1183_v2 = vadd.f32 1e-06, %v1180_v39 }
 0x841   : > { %1322 = vmatpush.bf16.msrb.mxu1 %v1317_v25 }
 0x842   : > { %1530 = vrsqrt.f32 %v1183_v2  ;;  %vm1210_vm10 = vweird.f32 %v1183_v2 }
 0x845   : > { %1323 = vmatpush.bf16.msrb.mxu1 %v1316_v50 }
 0x848   : > { %v1531_v0 = vpop.eup %1530 }
 0x849   : > { %v1205_v40 = vmul.f32 %v1531_v0, %v1183_v2  ;;  %vm1211_vm9 = vweird.f32 %v1531_v0  ;;  %1324 = vmatpush.bf16.msrb.mxu1 %v1315_v54 }
 0x84a   : > { %vm1212_vm11 = vmor %vm1210_vm10, %vm1211_vm9 }
 0x84b   : > { %v1206_v41 = vmul.f32 %v1531_v0, %v1205_v40 }
 0x84d   : > { %v1207_v42 = vmul.f32 0.5, %v1206_v41 }
 0x84f   : > { %v1208_v43 = vsub.f32 1.5, %v1207_v42 }
 0x851   : > { %v1209_v45 = vmul.f32 %v1531_v0, %v1208_v43 }
 0x853   : > { %v1213_v4 = vsel %vm1212_vm11, %v1531_v0, %v1209_v45 }
 0x854   : > { %v1216_v46 = vmul.f32 %v1213_v4, %v1872_v55  ;;  %v1300_v55 = vld [vmem:[%s1980_s11 + $0x40] sm:$0xff] }
 0x855   : > { %v1314_v57 = vpack.c.bf16 %v1301_v56, %v1300_v55 }
 0x856   : > { %v1222_v47 = vmul.f32 %v1466_v26, %v1216_v46 }
 0x857   : > { %1325 = vmatpush.bf16.msrb.mxu1 %v1314_v57 }
 0x858   : > { %v1228_v48 = vadd.f32 %v1467_v30, %v1222_v47 }
 0x85a   : > { %v1234_v49 = vpack.c.bf16 %v1228_v48, %v1228_v48 }
 0x85b   : > { %1326 = vmatpush.bf16.msrb.mxu1 %v1313_v61 }
 0x85c   : > { %1435 = vmatmul.msk.bf16.gmra.mxu2 %vm447_vm0, %v1234_v49 }
 0x85f   : > { %1327 = vmatpush.bf16.msrb.mxu1 %v1312_v3 }
 0x863   : > { %1328 = vmatpush.bf16.msrb.mxu1 %v1311_v9 }
 0x867   : > { %1329 = vmatpush.bf16.msrb.mxu1 %v1310_v10 }
 0x8b4   : > { %v1256_v14 = vpop.f32.mrf.mxu2 }
 0x8b5   : > { %v1257_v15 = vadd.f32 %v1468_v6, %v1256_v14 }
 0x8b7   : > { %v1268_v16 = vmul.f32 0.044715, %v1257_v15  ;;  %v1265_v33 = vmul.f32 0.5, %v1257_v15 }
 0x8b9   : > { %v1271_v17 = vmul.f32 %v1268_v16, %v1257_v15 }
 0x8bb   : > { %v1274_v18 = vmul.f32 %v1271_v17, %v1257_v15 }
 0x8bc   : > { %v1258_v19 = vpop.f32.mrf.mxu2 }
 0x8bd   : > { %v1277_v20 = vadd.f32 %v1274_v18, %v1257_v15  ;;  %v1259_v21 = vadd.f32 %v1468_v6, %v1258_v19 }
 0x8bf   : > { %v1269_v24 = vmul.f32 0.044715, %v1259_v21  ;;  %v1280_v23 = vmul.f32 0.7978846, %v1277_v20  ;;  %v1266_v34 = vmul.f32 0.5, %v1259_v21 }
 0x8c1   : > { %v1272_v22 = vmul.f32 %v1269_v24, %v1259_v21  ;;  %1532 = vtanh.f32 %v1280_v23 }
 0x8c3   : > { %v1275_v26 = vmul.f32 %v1272_v22, %v1259_v21 }
 0x8c5   : > { %v1278_v28 = vadd.f32 %v1275_v26, %v1259_v21 }
 0x8c7   : > { %v1281_v29 = vmul.f32 0.7978846, %v1278_v28  ;;  %v1533_v27 = vpop.eup %1532 }
 0x8c8   : > { %v1286_v30 = vadd.f32 1.0, %v1533_v27 }
 0x8c9   : > { %1534 = vtanh.f32 %v1281_v29 }
 0x8ca   : > { %v1289_v35 = vmul.f32 %v1286_v30, %v1265_v33 }
 0x8cf   : > { %v1535_v31 = vpop.eup %1534 }
 0x8d0   : > { %v1287_v60 = vadd.f32 1.0, %v1535_v31 }
 0x8d2   : > { %v1290_v36 = vmul.f32 %v1287_v60, %v1266_v34 }
 0x8d4   : > { %v1308_v38 = vpack.c.bf16 %v1290_v36, %v1289_v35 }
 0x8d6   : > { %1330 = vmatmul.bf16.vlgmr.msrb.gmra.mxu1 %v1308_v38 }
 0x8df   : > { %v1261_v39 = vpop.f32.mrf.mxu2 }
 0x8e0   : > { %v1262_v2 = vadd.f32 %v1468_v6, %v1261_v39 }
 0x8e2   : > { %v1270_v0 = vmul.f32 0.044715, %v1262_v2  ;;  %v1267_v46 = vmul.f32 0.5, %v1262_v2 }
 0x8e4   : > { %v1273_v40 = vmul.f32 %v1270_v0, %v1262_v2 }
 0x8e6   : > { %v1276_v41 = vmul.f32 %v1273_v40, %v1262_v2 }
 0x8e7   : > { %v1263_v42 = vpop.f32.mrf.mxu2 }
 0x8e8   : > { %v1279_v43 = vadd.f32 %v1276_v41, %v1262_v2 }
 0x8ea   : > { %v1282_v45 = vmul.f32 0.7978846, %v1279_v43 }
 0x8ec   : > { %1536 = vtanh.f32 %v1282_v45 }
 0x8f2   : > { %v1537_v4 = vpop.eup %1536 }
 0x8f3   : > { %v1288_v47 = vadd.f32 1.0, %v1537_v4 }
 0x8f5   : > { %v1291_v48 = vmul.f32 %v1288_v47, %v1267_v46 }
 0x8f7   : > { %v1309_v49 = vpack.c.bf16 %v1291_v48, %v1291_v48 }
 0x8f9   : > { %1335 = vmatmul.bf16.gmra.mxu1 %v1309_v49 }
 0x953   : > { %v1331_v8 = vpop.f32.mrf.mxu1 }
 0x954   : > { %v1332_v25 = vadd.f32 %v1469_v12, %v1331_v8 }
 0x956   : > { %v1340_v51 = vadd.f32 %v1332_v25, %v1849_v32 }
 0x958   : > { %1343 = vst.msk [vmem:[%s440_s15] sm:$0xff] %vm447_vm0, %v1340_v51 }
 0x95b   : > { %v1333_v1 = vpop.f32.mrf.mxu1 }
 0x95c   : > { %v1334_v50 = vadd.f32 %v1469_v12, %v1333_v1 }
 0x95e   : > { %v1341_v52 = vadd.f32 %v1334_v50, %v1854_v37 }
 0x960   : > { %1344 = vst.msk [vmem:[%s440_s15 + $0x8] sm:$0xff] %vm447_vm0, %v1341_v52 }
 0x976   : > { %v1336_v53 = vpop.f32.mrf.mxu1 }
 0x977   : > { %v1337_v54 = vadd.f32 %v1469_v12, %v1336_v53 }
 0x979   : > { %v1342_v55 = vadd.f32 %v1337_v54, %v1860_v44 }
 0x97b   : > { %1345 = vst.msk [vmem:[%s440_s15 + $0x10] sm:$0x1] %vm454_vm1, %v1342_v55 }
 0x97e   : > { %v1338_v56 = vpop.f32.mrf.mxu1 }
 0x97f PF: > { %s23_s25 = sadd.s32 1, %s1544_s25  }
 0x980   : > { %p20_p4 = scmp.ge.s32.totalorder %s23_s25, 4  }
 0x982   :  { %22 = sbr.rel (!%p20_p4) target bundleno = 1 (0x1), region = 102 }

</bundles_post_ra>
